<compile_context>
chip_gen: v5e
topology: v5e:2x2
jax: 0.10.0
libtpu: 0.0.40
codegen_flags: <defaults>
</compile_context>

<pallas_src>
import functools

import jax
import jax.numpy as jnp
import numpy as np
from jax.experimental import pallas as pl
from jax.experimental.pallas import tpu as pltpu


def _round_up(x, m):
    return (x + m - 1) // m * m


# ---------------------------------------------------------------------------
# Pallas kernel: one (batch element, output-row block) per grid step.
#   1x1 expand  (MXU, bf16 in / f32 acc) + folded BN + ReLU6
#   3x3 depthwise conv (stride, pad=1)  (VPU, f32) + folded BN + ReLU6
#   1x1 project (MXU, bf16 in / f32 acc) + folded BN
#   optional residual add
# ---------------------------------------------------------------------------
def _bottleneck_kernel(x_ref, w1_ref, wd_ref, w3_ref, sb_ref, out_ref, acc_ref,
                       *, stride, add_residual):
    # x_ref  : (H+2, W+2, Cin_p)  f32, spatial 1px zero pad + channel zero pad
    # w1_ref : (Cin_p, Cmid_p)    bf16  1x1 expand weight
    # wd_ref : (9, Cmid_p)        f32   depthwise taps, row = dh*3 + dw
    # w3_ref : (Cmid_p, Cout_p)   bf16  1x1 project weight
    # sb_ref : (8, Cmax_p)        f32   rows 0..5 = s1, b1, s2, b2, s3, b3
    # out_ref: (TH, Wout, Cout_p) f32   one output row block
    # acc_ref: (TH, Wout, Cmid_p) f32   depthwise accumulator scratch
    hp, wp, cin_p = x_ref.shape
    th, wout, cout_p = out_ref.shape
    cmid_p = acc_ref.shape[-1]
    hin = th * stride + 2                          # input rows needed incl. halo

    i = pl.program_id(1)                           # output-row block index
    row0 = pl.multiple_of(i * (th * stride), th * stride)

    # ---- 1x1 expand on the MXU (bf16 in, f32 acc) + folded BN + ReLU6 ------
    xw = x_ref[pl.ds(row0, hin), :, :]                          # (hin, wp, cin_p)
    h = jnp.dot(xw.astype(jnp.bfloat16).reshape(hin * wp, cin_p), w1_ref[...],
                preferred_element_type=jnp.float32)             # (hin*wp, cmid_p)
    h = jnp.clip(h * sb_ref[0:1, :cmid_p] + sb_ref[1:2, :cmid_p], 0.0, 6.0)
    h = h.reshape(hin, wp, cmid_p)

    # Zero the spatial padding ring: the folded BN bias (then ReLU6) would
    # otherwise put non-zeros where the 3x3 conv must see zero padding.
    grow = row0 + jax.lax.broadcasted_iota(jnp.int32, (hin, wp, 1), 0)
    gcol = jax.lax.broadcasted_iota(jnp.int32, (hin, wp, 1), 1)
    interior = ((grow >= 1) & (grow <= hp - 2) &
                (gcol >= 1) & (gcol <= wp - 2))
    h = jnp.where(interior, h, 0.0)

    # ---- 3x3 depthwise conv, stride s, zero padding (VPU, f32) -------------
    acc_ref[...] = jnp.zeros_like(acc_ref)
    if stride == 1:
        for dh in range(3):
            for dw in range(3):
                win = h[dh:dh + th, dw:dw + wout, :]
                acc_ref[...] += win * wd_ref[dh * 3 + dw:dh * 3 + dw + 1, :]
    else:
        # Split h into stride phases once; every tap is then a contiguous slice.
        hh = h.reshape(hin // stride, stride, wp // stride, stride, cmid_p)
        for dh in range(3):
            for dw in range(3):
                oh, ph = dh // stride, dh % stride
                ow, pw = dw // stride, dw % stride
                win = hh[oh:oh + th, ph, ow:ow + wout, pw, :]
                acc_ref[...] += win * wd_ref[dh * 3 + dw:dh * 3 + dw + 1, :]

    s2 = sb_ref[2:3, :cmid_p].reshape(1, 1, cmid_p)
    b2 = sb_ref[3:4, :cmid_p].reshape(1, 1, cmid_p)
    g = jnp.clip(acc_ref[...] * s2 + b2, 0.0, 6.0)              # (th, wout, cmid_p)

    # ---- 1x1 project on the MXU + folded BN ---------------------------------
    y = jnp.dot(g.astype(jnp.bfloat16).reshape(th * wout, cmid_p), w3_ref[...],
                preferred_element_type=jnp.float32)             # (th*wout, cout_p)
    y = y * sb_ref[4:5, :cout_p] + sb_ref[5:6, :cout_p]
    y = y.reshape(th, wout, cout_p)

    if add_residual:              # stride == 1 and Cin == Cout (cin_p == cout_p)
        y = y + x_ref[pl.ds(row0 + 1, th), 1:wp - 1, :]

    out_ref[...] = y.astype(out_ref.dtype)


# ---------------------------------------------------------------------------
# Wrapper: NCHW <-> NHWC glue, channel padding, BN fold packing, grid/tiling
# ---------------------------------------------------------------------------
def _pick_row_tile(hout, stride, wp, wout, cmid_p, cout_p,
                   budget_bytes=8 * 1024 * 1024, max_rows=32):
    """Largest divisor of hout (<= max_rows) whose per-block working set fits."""
    best = 1
    for th in range(1, min(hout, max_rows) + 1):
        if hout % th:
            continue
        hin = th * stride + 2
        blk = (2 * hin * wp * cmid_p * 4             # expanded features (+ relayout)
               + th * wout * cmid_p * (4 + 4 + 2)    # acc scratch + g f32 + g bf16
               + 3 * th * wout * cout_p * 4)         # y + double-buffered out block
        if blk <= budget_bytes:
            best = th
    return best


def linear_bottleneck(x_nchw, params, *, stride, in_channels, out_channels,
                      row_tile=None):
    N, C, H, W = x_nchw.shape
    assert C == in_channels
    assert stride in (1, 2)
    if stride == 2:
        assert H % 2 == 0 and W % 2 == 0

    w1, s1, b1, wd, s2, b2, w3, s3, b3 = params
    cmid = w1.shape[1]
    hout = (H + 2 - 3) // stride + 1
    wout = (W + 2 - 3) // stride + 1
    add_res = (stride == 1) and (in_channels == out_channels)

    # ---- pad channels to lane multiples, pack weights / fused scale-bias ----
    cin_p = _round_up(in_channels, 128)
    cmid_p = _round_up(cmid, 128)
    cout_p = _round_up(out_channels, 128)
    cmax_p = max(cmid_p, cout_p)

    w1_p = jnp.zeros((cin_p, cmid_p), jnp.bfloat16)
    w1_p = w1_p.at[:in_channels, :cmid].set(w1.astype(jnp.bfloat16))
    w3_p = jnp.zeros((cmid_p, cout_p), jnp.bfloat16)
    w3_p = w3_p.at[:cmid, :out_channels].set(w3.astype(jnp.bfloat16))
    wd_p = jnp.zeros((9, cmid_p), jnp.float32).at[:, :cmid].set(wd)
    sb = jnp.zeros((8, cmax_p), jnp.float32)
    sb = sb.at[0, :cmid].set(s1).at[1, :cmid].set(b1)
    sb = sb.at[2, :cmid].set(s2).at[3, :cmid].set(b2)
    sb = sb.at[4, :out_channels].set(s3).at[5, :out_channels].set(b3)

    # NCHW -> NHWC; add the 1px spatial halo and channel pad in one jnp.pad.
    # TODO(synk): in a full network, keep activations NHWC + channel-padded
    # end-to-end and drop this per-call transpose/pad/slice glue.
    x = jnp.transpose(x_nchw, (0, 2, 3, 1))
    x = jnp.pad(x, ((0, 0), (1, 1), (1, 1), (0, cin_p - in_channels)))

    th = row_tile if row_tile is not None else _pick_row_tile(
        hout, stride, W + 2, wout, cmid_p, cout_p)
    assert hout % th == 0, (hout, th)

    kernel = functools.partial(_bottleneck_kernel, stride=stride,
                               add_residual=add_res)

    out = pl.pallas_call(
        kernel,
        out_shape=jax.ShapeDtypeStruct((N, hout, wout, cout_p), jnp.float32),
        grid_spec=pltpu.PrefetchScalarGridSpec(
            num_scalar_prefetch=0,
            grid=(N, hout // th),
            in_specs=[
                # Full (padded) image per batch element: block index is constant
                # along the row-block axis, so it is DMA'd only when n changes.
                pl.BlockSpec((None, H + 2, W + 2, cin_p),
                             lambda n, i: (n, 0, 0, 0)),
                pl.BlockSpec((cin_p, cmid_p), lambda n, i: (0, 0)),
                pl.BlockSpec((9, cmid_p), lambda n, i: (0, 0)),
                pl.BlockSpec((cmid_p, cout_p), lambda n, i: (0, 0)),
                pl.BlockSpec((8, cmax_p), lambda n, i: (0, 0)),
            ],
            out_specs=pl.BlockSpec((None, th, wout, cout_p),
                                   lambda n, i: (n, i, 0, 0)),
            scratch_shapes=[pltpu.VMEM((th, wout, cmid_p), jnp.float32)],
        ),
        compiler_params=pltpu.CompilerParams(
            dimension_semantics=("parallel", "parallel"),
            vmem_limit_bytes=64 * 1024 * 1024,
        ),
    )(x, w1_p, wd_p, w3_p, sb)

    out = out[..., :out_channels]                  # drop channel padding
    return jnp.transpose(out, (0, 3, 1, 2))        # NHWC -> NCHW


# ---------------------------------------------------------------------------
# Deterministic parameter construction (PyTorch-shaped, then BN-folded)
# ---------------------------------------------------------------------------
def init_params(key, in_channels, out_channels, t=6, eps=1e-5):
    cmid = in_channels * t
    keys = jax.random.split(key, 18)

    w1_t = 0.1 * jax.random.normal(keys[0], (cmid, in_channels, 1, 1), jnp.float32)
    cb1 = 0.1 * jax.random.normal(keys[1], (cmid,), jnp.float32)
    wd_t = 0.1 * jax.random.normal(keys[2], (cmid, 1, 3, 3), jnp.float32)
    cbd = 0.1 * jax.random.normal(keys[3], (cmid,), jnp.float32)
    w3_t = 0.1 * jax.random.normal(keys[4], (out_channels, cmid, 1, 1), jnp.float32)
    cb3 = 0.1 * jax.random.normal(keys[5], (out_channels,), jnp.float32)

    def bn_params(ks, c):
        gamma = 1.0 + 0.1 * jax.random.normal(ks[0], (c,), jnp.float32)
        beta = 0.1 * jax.random.normal(ks[1], (c,), jnp.float32)
        mean = 0.1 * jax.random.normal(ks[2], (c,), jnp.float32)
        var = jnp.abs(jax.random.normal(ks[3], (c,), jnp.float32)) + 0.5
        return gamma, beta, mean, var

    bn1 = bn_params(keys[6:10], cmid)
    bn2 = bn_params(keys[10:14], cmid)
    bn3 = bn_params(keys[14:18], out_channels)

    def fold(conv_bias, bn):
        gamma, beta, mean, var = bn
        scale = gamma * jax.lax.rsqrt(var + eps)
        bias = beta + scale * (conv_bias - mean)
        return scale, bias

    # Repack: 1x1 convs as (Cin, Cout) matmul weights; depthwise 3x3 as
    # (9, Cmid) with tap index = dh*3 + dw.
    w1 = jnp.transpose(w1_t[:, :, 0, 0], (1, 0))             # (Cin, Cmid)
    wd = jnp.transpose(wd_t[:, 0, :, :], (1, 2, 0)).reshape(9, cmid)
    w3 = jnp.transpose(w3_t[:, :, 0, 0], (1, 0))             # (Cmid, Cout)

    s1, b1 = fold(cb1, bn1)
    s2, b2 = fold(cbd, bn2)
    s3, b3 = fold(cb3, bn3)
    return (w1, s1, b1, wd, s2, b2, w3, s3, b3)


# ---------------------------------------------------------------------------
# Pure-JAX f32 reference (same folded params) for correctness check
# ---------------------------------------------------------------------------
def reference(x_nchw, params, *, stride, in_channels, out_channels):
    w1, s1, b1, wd, s2, b2, w3, s3, b3 = params
    x = jnp.transpose(x_nchw, (0, 2, 3, 1))                  # NHWC
    cmid = w1.shape[1]

    h = jnp.clip(jnp.einsum('nhwc,cd->nhwd', x, w1) * s1 + b1, 0.0, 6.0)

    wd4 = wd.reshape(3, 3, 1, cmid)                          # HWIO, groups=Cmid
    g = jax.lax.conv_general_dilated(
        h, wd4, window_strides=(stride, stride), padding=((1, 1), (1, 1)),
        dimension_numbers=('NHWC', 'HWIO', 'NHWC'),
        feature_group_count=cmid)
    g = jnp.clip(g * s2 + b2, 0.0, 6.0)

    y = jnp.einsum('nhwc,cd->nhwd', g, w3) * s3 + b3
    if stride == 1 and in_channels == out_channels:
        y = y + x
    return jnp.transpose(y, (0, 3, 1, 2))                    # back to NCHW


if __name__ == "__main__":
    # Small shapes consistent with the module: batch=2, channels=4, spatial=16.
    N, Cin, H, W = 2, 4, 16, 16
    Cout, stride, t = 4, 1, 6                                # residual path active

    key = jax.random.PRNGKey(0)
    kx, kp = jax.random.split(key)
    x = jax.random.normal(kx, (N, Cin, H, W), jnp.float32)   # NCHW (PyTorch-style)
    params = init_params(kp, Cin, Cout, t=t)

    # row_tile=8 -> grid (N, 2): exercises the row-block tiling + halo masking.
    out = linear_bottleneck(x, params, stride=stride, in_channels=Cin,
                            out_channels=Cout, row_tile=8)
    out = jax.block_until_ready(out)

    ref = jax.block_until_ready(
        reference(x, params, stride=stride, in_channels=Cin, out_channels=Cout))

    # bf16 MXU inputs with f32 accumulation -> slightly loosened tolerance
    # against the f32 reference.
    np.testing.assert_allclose(np.asarray(out), np.asarray(ref),
                               rtol=1e-2, atol=1e-2)
    print("KERNEL_OK")
</pallas_src>

<mosaic_0001>
module attributes {stable_mosaic.version = 11 : i64} {
  func.func @_bottleneck_kernel(%arg0: i32, %arg1: i32, %arg2: memref<1x18x18x128xf32, #tpu.memory_space<vmem>>, %arg3: memref<128x128xbf16, #tpu.memory_space<vmem>>, %arg4: memref<9x128xf32, #tpu.memory_space<vmem>>, %arg5: memref<128x128xbf16, #tpu.memory_space<vmem>>, %arg6: memref<8x128xf32, #tpu.memory_space<vmem>>, %arg7: memref<1x8x16x128xf32, #tpu.memory_space<vmem>>, %arg8: memref<8x16x128xf32, #tpu.memory_space<vmem>>) attributes {dimension_semantics = [#tpu.dimension_semantics<parallel>, #tpu.dimension_semantics<parallel>], iteration_bounds = array<i64: 2, 2>, scalar_prefetch = 0 : i64, scratch_operands = 1 : i64, tpu.core_type = #tpu.core_type<tc>, window_params = [{transform_indices = @transform_0, window_bounds = array<i64: 1, 18, 18, 128>}, {pipeline_mode = #tpu.pipeline_mode<synchronous>, transform_indices = @transform_1, window_bounds = array<i64: 128, 128>}, {pipeline_mode = #tpu.pipeline_mode<synchronous>, transform_indices = @transform_2, window_bounds = array<i64: 9, 128>}, {pipeline_mode = #tpu.pipeline_mode<synchronous>, transform_indices = @transform_3, window_bounds = array<i64: 128, 128>}, {pipeline_mode = #tpu.pipeline_mode<synchronous>, transform_indices = @transform_4, window_bounds = array<i64: 8, 128>}, {transform_indices = @transform_5, window_bounds = array<i64: 1, 8, 16, 128>}]} {
    %c8_i32 = arith.constant 8 : i32
    %0 = arith.muli %arg1, %c8_i32 : i32
    %1 = tpu.assume_multiple %0, 8 : i32
    %c0 = arith.constant 0 : index
    %2 = arith.index_cast %1 : i32 to index
    %c0_0 = arith.constant 0 : index
    %c0_1 = arith.constant 0 : index
    %3 = vector.load %arg2[%c0, %2, %c0_0, %c0_1] : memref<1x18x18x128xf32, #tpu.memory_space<vmem>>, vector<1x10x18x128xf32>
    %4 = vector.shape_cast %3 : vector<1x10x18x128xf32> to vector<10x18x128xf32>
    %5 = arith.truncf %4 : vector<10x18x128xf32> to vector<10x18x128xbf16>
    %6 = vector.shape_cast %5 : vector<10x18x128xbf16> to vector<180x128xbf16>
    %c0_2 = arith.constant 0 : index
    %c0_3 = arith.constant 0 : index
    %7 = vector.load %arg3[%c0_2, %c0_3] : memref<128x128xbf16, #tpu.memory_space<vmem>>, vector<128x128xbf16>
    %cst = arith.constant dense<0.000000e+00> : vector<180x128xf32>
    %8 = tpu.matmul %6, %7, %cst {dimension_numbers = #tpu.dot_dimension_numbers<[1], [0], [0], [1], [0, 0, 1, 1], [], []>} : vector<180x128xbf16>, vector<128x128xbf16>, vector<180x128xf32> -> vector<180x128xf32>
    %c0_4 = arith.constant 0 : index
    %c0_5 = arith.constant 0 : index
    %9 = vector.load %arg6[%c0_4, %c0_5] : memref<8x128xf32, #tpu.memory_space<vmem>>, vector<1x128xf32>
    %10 = vector.broadcast %9 : vector<1x128xf32> to vector<180x128xf32>
    %11 = arith.mulf %8, %10 : vector<180x128xf32>
    %c1 = arith.constant 1 : index
    %c0_6 = arith.constant 0 : index
    %12 = vector.load %arg6[%c1, %c0_6] : memref<8x128xf32, #tpu.memory_space<vmem>>, vector<1x128xf32>
    %13 = vector.broadcast %12 : vector<1x128xf32> to vector<180x128xf32>
    %14 = arith.addf %11, %13 : vector<180x128xf32>
    %cst_7 = arith.constant 0.000000e+00 : f32
    %cst_8 = arith.constant 6.000000e+00 : f32
    %15 = vector.broadcast %cst_7 : f32 to vector<180x128xf32>
    %16 = arith.maximumf %15, %14 : vector<180x128xf32>
    %17 = vector.broadcast %cst_8 : f32 to vector<180x128xf32>
    %18 = arith.minimumf %17, %16 : vector<180x128xf32>
    %19 = vector.shape_cast %18 : vector<180x128xf32> to vector<10x18x128xf32>
    %20 = tpu.iota {dimensions = array<i32: 0>} : vector<10x18x1xi32>
    %21 = vector.broadcast %1 : i32 to vector<10x18x1xi32>
    %22 = arith.addi %21, %20 : vector<10x18x1xi32>
    %23 = tpu.iota {dimensions = array<i32: 1>} : vector<10x18x1xi32>
    %c1_i32 = arith.constant 1 : i32
    %24 = vector.broadcast %c1_i32 : i32 to vector<10x18x1xi32>
    %25 = arith.cmpi sge, %22, %24 : vector<10x18x1xi32>
    %c16_i32 = arith.constant 16 : i32
    %26 = vector.broadcast %c16_i32 : i32 to vector<10x18x1xi32>
    %27 = arith.cmpi sle, %22, %26 : vector<10x18x1xi32>
    %28 = arith.andi %25, %27 : vector<10x18x1xi1>
    %c1_i32_9 = arith.constant 1 : i32
    %29 = vector.broadcast %c1_i32_9 : i32 to vector<10x18x1xi32>
    %30 = arith.cmpi sge, %23, %29 : vector<10x18x1xi32>
    %31 = arith.andi %28, %30 : vector<10x18x1xi1>
    %c16_i32_10 = arith.constant 16 : i32
    %32 = vector.broadcast %c16_i32_10 : i32 to vector<10x18x1xi32>
    %33 = arith.cmpi sle, %23, %32 : vector<10x18x1xi32>
    %34 = arith.andi %31, %33 : vector<10x18x1xi1>
    %cst_11 = arith.constant 0.000000e+00 : f32
    %35 = vector.shape_cast %34 : vector<10x18x1xi1> to vector<10x18x1xi1>
    %36 = vector.broadcast %35 : vector<10x18x1xi1> to vector<10x18x128xi1>
    %37 = vector.broadcast %cst_11 : f32 to vector<10x18x128xf32>
    %38 = arith.select %36, %19, %37 : vector<10x18x128xi1>, vector<10x18x128xf32>
    %cst_12 = arith.constant 0.000000e+00 : f32
    %39 = vector.broadcast %cst_12 : f32 to vector<8x16x128xf32>
    %c0_13 = arith.constant 0 : index
    %c0_14 = arith.constant 0 : index
    %c0_15 = arith.constant 0 : index
    %40 = vector.load %arg8[%c0_13, %c0_14, %c0_15] : memref<8x16x128xf32, #tpu.memory_space<vmem>>, vector<8x16x128xf32>
    tpu.vector_store %arg8[%c0_13, %c0_14, %c0_15], %39 {strides = array<i32>} : memref<8x16x128xf32, #tpu.memory_space<vmem>>, vector<8x16x128xf32>,
    %41 = vector.extract_strided_slice %38 {offsets = [0, 0, 0], sizes = [8, 16, 128], strides = [1, 1, 1]} : vector<10x18x128xf32> to vector<8x16x128xf32>
    %c0_16 = arith.constant 0 : index
    %c0_17 = arith.constant 0 : index
    %c0_18 = arith.constant 0 : index
    %42 = vector.load %arg8[%c0_16, %c0_17, %c0_18] : memref<8x16x128xf32, #tpu.memory_space<vmem>>, vector<8x16x128xf32>
    %c0_19 = arith.constant 0 : index
    %c0_20 = arith.constant 0 : index
    %43 = vector.load %arg4[%c0_19, %c0_20] : memref<9x128xf32, #tpu.memory_space<vmem>>, vector<1x128xf32>
    %44 = vector.shape_cast %43 : vector<1x128xf32> to vector<1x1x128xf32>
    %45 = vector.broadcast %44 : vector<1x1x128xf32> to vector<8x16x128xf32>
    %46 = arith.mulf %41, %45 : vector<8x16x128xf32>
    %47 = arith.addf %42, %46 : vector<8x16x128xf32>
    %c0_21 = arith.constant 0 : index
    %c0_22 = arith.constant 0 : index
    %c0_23 = arith.constant 0 : index
    %48 = vector.load %arg8[%c0_21, %c0_22, %c0_23] : memref<8x16x128xf32, #tpu.memory_space<vmem>>, vector<8x16x128xf32>
    tpu.vector_store %arg8[%c0_21, %c0_22, %c0_23], %47 {strides = array<i32>} : memref<8x16x128xf32, #tpu.memory_space<vmem>>, vector<8x16x128xf32>,
    %49 = vector.extract_strided_slice %38 {offsets = [0, 1, 0], sizes = [8, 16, 128], strides = [1, 1, 1]} : vector<10x18x128xf32> to vector<8x16x128xf32>
    %c0_24 = arith.constant 0 : index
    %c0_25 = arith.constant 0 : index
    %c0_26 = arith.constant 0 : index
    %50 = vector.load %arg8[%c0_24, %c0_25, %c0_26] : memref<8x16x128xf32, #tpu.memory_space<vmem>>, vector<8x16x128xf32>
    %c1_27 = arith.constant 1 : index
    %c0_28 = arith.constant 0 : index
    %51 = vector.load %arg4[%c1_27, %c0_28] : memref<9x128xf32, #tpu.memory_space<vmem>>, vector<1x128xf32>
    %52 = vector.shape_cast %51 : vector<1x128xf32> to vector<1x1x128xf32>
    %53 = vector.broadcast %52 : vector<1x1x128xf32> to vector<8x16x128xf32>
    %54 = arith.mulf %49, %53 : vector<8x16x128xf32>
    %55 = arith.addf %50, %54 : vector<8x16x128xf32>
    %c0_29 = arith.constant 0 : index
    %c0_30 = arith.constant 0 : index
    %c0_31 = arith.constant 0 : index
    %56 = vector.load %arg8[%c0_29, %c0_30, %c0_31] : memref<8x16x128xf32, #tpu.memory_space<vmem>>, vector<8x16x128xf32>
    tpu.vector_store %arg8[%c0_29, %c0_30, %c0_31], %55 {strides = array<i32>} : memref<8x16x128xf32, #tpu.memory_space<vmem>>, vector<8x16x128xf32>,
    %57 = vector.extract_strided_slice %38 {offsets = [0, 2, 0], sizes = [8, 16, 128], strides = [1, 1, 1]} : vector<10x18x128xf32> to vector<8x16x128xf32>
    %c0_32 = arith.constant 0 : index
    %c0_33 = arith.constant 0 : index
    %c0_34 = arith.constant 0 : index
    %58 = vector.load %arg8[%c0_32, %c0_33, %c0_34] : memref<8x16x128xf32, #tpu.memory_space<vmem>>, vector<8x16x128xf32>
    %c2 = arith.constant 2 : index
    %c0_35 = arith.constant 0 : index
    %59 = vector.load %arg4[%c2, %c0_35] : memref<9x128xf32, #tpu.memory_space<vmem>>, vector<1x128xf32>
    %60 = vector.shape_cast %59 : vector<1x128xf32> to vector<1x1x128xf32>
    %61 = vector.broadcast %60 : vector<1x1x128xf32> to vector<8x16x128xf32>
    %62 = arith.mulf %57, %61 : vector<8x16x128xf32>
    %63 = arith.addf %58, %62 : vector<8x16x128xf32>
    %c0_36 = arith.constant 0 : index
    %c0_37 = arith.constant 0 : index
    %c0_38 = arith.constant 0 : index
    %64 = vector.load %arg8[%c0_36, %c0_37, %c0_38] : memref<8x16x128xf32, #tpu.memory_space<vmem>>, vector<8x16x128xf32>
    tpu.vector_store %arg8[%c0_36, %c0_37, %c0_38], %63 {strides = array<i32>} : memref<8x16x128xf32, #tpu.memory_space<vmem>>, vector<8x16x128xf32>,
    %65 = vector.extract_strided_slice %38 {offsets = [1, 0, 0], sizes = [8, 16, 128], strides = [1, 1, 1]} : vector<10x18x128xf32> to vector<8x16x128xf32>
    %c0_39 = arith.constant 0 : index
    %c0_40 = arith.constant 0 : index
    %c0_41 = arith.constant 0 : index
    %66 = vector.load %arg8[%c0_39, %c0_40, %c0_41] : memref<8x16x128xf32, #tpu.memory_space<vmem>>, vector<8x16x128xf32>
    %c3 = arith.constant 3 : index
    %c0_42 = arith.constant 0 : index
    %67 = vector.load %arg4[%c3, %c0_42] : memref<9x128xf32, #tpu.memory_space<vmem>>, vector<1x128xf32>
    %68 = vector.shape_cast %67 : vector<1x128xf32> to vector<1x1x128xf32>
    %69 = vector.broadcast %68 : vector<1x1x128xf32> to vector<8x16x128xf32>
    %70 = arith.mulf %65, %69 : vector<8x16x128xf32>
    %71 = arith.addf %66, %70 : vector<8x16x128xf32>
    %c0_43 = arith.constant 0 : index
    %c0_44 = arith.constant 0 : index
    %c0_45 = arith.constant 0 : index
    %72 = vector.load %arg8[%c0_43, %c0_44, %c0_45] : memref<8x16x128xf32, #tpu.memory_space<vmem>>, vector<8x16x128xf32>
    tpu.vector_store %arg8[%c0_43, %c0_44, %c0_45], %71 {strides = array<i32>} : memref<8x16x128xf32, #tpu.memory_space<vmem>>, vector<8x16x128xf32>,
    %73 = vector.extract_strided_slice %38 {offsets = [1, 1, 0], sizes = [8, 16, 128], strides = [1, 1, 1]} : vector<10x18x128xf32> to vector<8x16x128xf32>
    %c0_46 = arith.constant 0 : index
    %c0_47 = arith.constant 0 : index
    %c0_48 = arith.constant 0 : index
    %74 = vector.load %arg8[%c0_46, %c0_47, %c0_48] : memref<8x16x128xf32, #tpu.memory_space<vmem>>, vector<8x16x128xf32>
    %c4 = arith.constant 4 : index
    %c0_49 = arith.constant 0 : index
    %75 = vector.load %arg4[%c4, %c0_49] : memref<9x128xf32, #tpu.memory_space<vmem>>, vector<1x128xf32>
    %76 = vector.shape_cast %75 : vector<1x128xf32> to vector<1x1x128xf32>
    %77 = vector.broadcast %76 : vector<1x1x128xf32> to vector<8x16x128xf32>
    %78 = arith.mulf %73, %77 : vector<8x16x128xf32>
    %79 = arith.addf %74, %78 : vector<8x16x128xf32>
    %c0_50 = arith.constant 0 : index
    %c0_51 = arith.constant 0 : index
    %c0_52 = arith.constant 0 : index
    %80 = vector.load %arg8[%c0_50, %c0_51, %c0_52] : memref<8x16x128xf32, #tpu.memory_space<vmem>>, vector<8x16x128xf32>
    tpu.vector_store %arg8[%c0_50, %c0_51, %c0_52], %79 {strides = array<i32>} : memref<8x16x128xf32, #tpu.memory_space<vmem>>, vector<8x16x128xf32>,
    %81 = vector.extract_strided_slice %38 {offsets = [1, 2, 0], sizes = [8, 16, 128], strides = [1, 1, 1]} : vector<10x18x128xf32> to vector<8x16x128xf32>
    %c0_53 = arith.constant 0 : index
    %c0_54 = arith.constant 0 : index
    %c0_55 = arith.constant 0 : index
    %82 = vector.load %arg8[%c0_53, %c0_54, %c0_55] : memref<8x16x128xf32, #tpu.memory_space<vmem>>, vector<8x16x128xf32>
    %c5 = arith.constant 5 : index
    %c0_56 = arith.constant 0 : index
    %83 = vector.load %arg4[%c5, %c0_56] : memref<9x128xf32, #tpu.memory_space<vmem>>, vector<1x128xf32>
    %84 = vector.shape_cast %83 : vector<1x128xf32> to vector<1x1x128xf32>
    %85 = vector.broadcast %84 : vector<1x1x128xf32> to vector<8x16x128xf32>
    %86 = arith.mulf %81, %85 : vector<8x16x128xf32>
    %87 = arith.addf %82, %86 : vector<8x16x128xf32>
    %c0_57 = arith.constant 0 : index
    %c0_58 = arith.constant 0 : index
    %c0_59 = arith.constant 0 : index
    %88 = vector.load %arg8[%c0_57, %c0_58, %c0_59] : memref<8x16x128xf32, #tpu.memory_space<vmem>>, vector<8x16x128xf32>
    tpu.vector_store %arg8[%c0_57, %c0_58, %c0_59], %87 {strides = array<i32>} : memref<8x16x128xf32, #tpu.memory_space<vmem>>, vector<8x16x128xf32>,
    %89 = vector.extract_strided_slice %38 {offsets = [2, 0, 0], sizes = [8, 16, 128], strides = [1, 1, 1]} : vector<10x18x128xf32> to vector<8x16x128xf32>
    %c0_60 = arith.constant 0 : index
    %c0_61 = arith.constant 0 : index
    %c0_62 = arith.constant 0 : index
    %90 = vector.load %arg8[%c0_60, %c0_61, %c0_62] : memref<8x16x128xf32, #tpu.memory_space<vmem>>, vector<8x16x128xf32>
    %c6 = arith.constant 6 : index
    %c0_63 = arith.constant 0 : index
    %91 = vector.load %arg4[%c6, %c0_63] : memref<9x128xf32, #tpu.memory_space<vmem>>, vector<1x128xf32>
    %92 = vector.shape_cast %91 : vector<1x128xf32> to vector<1x1x128xf32>
    %93 = vector.broadcast %92 : vector<1x1x128xf32> to vector<8x16x128xf32>
    %94 = arith.mulf %89, %93 : vector<8x16x128xf32>
    %95 = arith.addf %90, %94 : vector<8x16x128xf32>
    %c0_64 = arith.constant 0 : index
    %c0_65 = arith.constant 0 : index
    %c0_66 = arith.constant 0 : index
    %96 = vector.load %arg8[%c0_64, %c0_65, %c0_66] : memref<8x16x128xf32, #tpu.memory_space<vmem>>, vector<8x16x128xf32>
    tpu.vector_store %arg8[%c0_64, %c0_65, %c0_66], %95 {strides = array<i32>} : memref<8x16x128xf32, #tpu.memory_space<vmem>>, vector<8x16x128xf32>,
    %97 = vector.extract_strided_slice %38 {offsets = [2, 1, 0], sizes = [8, 16, 128], strides = [1, 1, 1]} : vector<10x18x128xf32> to vector<8x16x128xf32>
    %c0_67 = arith.constant 0 : index
    %c0_68 = arith.constant 0 : index
    %c0_69 = arith.constant 0 : index
    %98 = vector.load %arg8[%c0_67, %c0_68, %c0_69] : memref<8x16x128xf32, #tpu.memory_space<vmem>>, vector<8x16x128xf32>
    %c7 = arith.constant 7 : index
    %c0_70 = arith.constant 0 : index
    %99 = vector.load %arg4[%c7, %c0_70] : memref<9x128xf32, #tpu.memory_space<vmem>>, vector<1x128xf32>
    %100 = vector.shape_cast %99 : vector<1x128xf32> to vector<1x1x128xf32>
    %101 = vector.broadcast %100 : vector<1x1x128xf32> to vector<8x16x128xf32>
    %102 = arith.mulf %97, %101 : vector<8x16x128xf32>
    %103 = arith.addf %98, %102 : vector<8x16x128xf32>
    %c0_71 = arith.constant 0 : index
    %c0_72 = arith.constant 0 : index
    %c0_73 = arith.constant 0 : index
    %104 = vector.load %arg8[%c0_71, %c0_72, %c0_73] : memref<8x16x128xf32, #tpu.memory_space<vmem>>, vector<8x16x128xf32>
    tpu.vector_store %arg8[%c0_71, %c0_72, %c0_73], %103 {strides = array<i32>} : memref<8x16x128xf32, #tpu.memory_space<vmem>>, vector<8x16x128xf32>,
    %105 = vector.extract_strided_slice %38 {offsets = [2, 2, 0], sizes = [8, 16, 128], strides = [1, 1, 1]} : vector<10x18x128xf32> to vector<8x16x128xf32>
    %c0_74 = arith.constant 0 : index
    %c0_75 = arith.constant 0 : index
    %c0_76 = arith.constant 0 : index
    %106 = vector.load %arg8[%c0_74, %c0_75, %c0_76] : memref<8x16x128xf32, #tpu.memory_space<vmem>>, vector<8x16x128xf32>
    %c8 = arith.constant 8 : index
    %c0_77 = arith.constant 0 : index
    %107 = vector.load %arg4[%c8, %c0_77] : memref<9x128xf32, #tpu.memory_space<vmem>>, vector<1x128xf32>
    %108 = vector.shape_cast %107 : vector<1x128xf32> to vector<1x1x128xf32>
    %109 = vector.broadcast %108 : vector<1x1x128xf32> to vector<8x16x128xf32>
    %110 = arith.mulf %105, %109 : vector<8x16x128xf32>
    %111 = arith.addf %106, %110 : vector<8x16x128xf32>
    %c0_78 = arith.constant 0 : index
    %c0_79 = arith.constant 0 : index
    %c0_80 = arith.constant 0 : index
    %112 = vector.load %arg8[%c0_78, %c0_79, %c0_80] : memref<8x16x128xf32, #tpu.memory_space<vmem>>, vector<8x16x128xf32>
    tpu.vector_store %arg8[%c0_78, %c0_79, %c0_80], %111 {strides = array<i32>} : memref<8x16x128xf32, #tpu.memory_space<vmem>>, vector<8x16x128xf32>,
    %c2_81 = arith.constant 2 : index
    %c0_82 = arith.constant 0 : index
    %113 = vector.load %arg6[%c2_81, %c0_82] : memref<8x128xf32, #tpu.memory_space<vmem>>, vector<1x128xf32>
    %114 = vector.shape_cast %113 : vector<1x128xf32> to vector<1x1x128xf32>
    %c3_83 = arith.constant 3 : index
    %c0_84 = arith.constant 0 : index
    %115 = vector.load %arg6[%c3_83, %c0_84] : memref<8x128xf32, #tpu.memory_space<vmem>>, vector<1x128xf32>
    %116 = vector.shape_cast %115 : vector<1x128xf32> to vector<1x1x128xf32>
    %c0_85 = arith.constant 0 : index
    %c0_86 = arith.constant 0 : index
    %c0_87 = arith.constant 0 : index
    %117 = vector.load %arg8[%c0_85, %c0_86, %c0_87] : memref<8x16x128xf32, #tpu.memory_space<vmem>>, vector<8x16x128xf32>
    %118 = vector.broadcast %114 : vector<1x1x128xf32> to vector<8x16x128xf32>
    %119 = arith.mulf %117, %118 : vector<8x16x128xf32>
    %120 = vector.broadcast %116 : vector<1x1x128xf32> to vector<8x16x128xf32>
    %121 = arith.addf %119, %120 : vector<8x16x128xf32>
    %cst_88 = arith.constant 0.000000e+00 : f32
    %cst_89 = arith.constant 6.000000e+00 : f32
    %122 = vector.broadcast %cst_88 : f32 to vector<8x16x128xf32>
    %123 = arith.maximumf %122, %121 : vector<8x16x128xf32>
    %124 = vector.broadcast %cst_89 : f32 to vector<8x16x128xf32>
    %125 = arith.minimumf %124, %123 : vector<8x16x128xf32>
    %126 = arith.truncf %125 : vector<8x16x128xf32> to vector<8x16x128xbf16>
    %127 = vector.shape_cast %126 : vector<8x16x128xbf16> to vector<128x128xbf16>
    %c0_90 = arith.constant 0 : index
    %c0_91 = arith.constant 0 : index
    %128 = vector.load %arg5[%c0_90, %c0_91] : memref<128x128xbf16, #tpu.memory_space<vmem>>, vector<128x128xbf16>
    %cst_92 = arith.constant dense<0.000000e+00> : vector<128x128xf32>
    %129 = tpu.matmul %127, %128, %cst_92 {dimension_numbers = #tpu.dot_dimension_numbers<[1], [0], [0], [1], [0, 0, 1, 1], [], []>} : vector<128x128xbf16>, vector<128x128xbf16>, vector<128x128xf32> -> vector<128x128xf32>
    %c4_93 = arith.constant 4 : index
    %c0_94 = arith.constant 0 : index
    %130 = vector.load %arg6[%c4_93, %c0_94] : memref<8x128xf32, #tpu.memory_space<vmem>>, vector<1x128xf32>
    %131 = vector.broadcast %130 : vector<1x128xf32> to vector<128x128xf32>
    %132 = arith.mulf %129, %131 : vector<128x128xf32>
    %c5_95 = arith.constant 5 : index
    %c0_96 = arith.constant 0 : index
    %133 = vector.load %arg6[%c5_95, %c0_96] : memref<8x128xf32, #tpu.memory_space<vmem>>, vector<1x128xf32>
    %134 = vector.broadcast %133 : vector<1x128xf32> to vector<128x128xf32>
    %135 = arith.addf %132, %134 : vector<128x128xf32>
    %136 = vector.shape_cast %135 : vector<128x128xf32> to vector<8x16x128xf32>
    %c1_i32_97 = arith.constant 1 : i32
    %137 = arith.addi %1, %c1_i32_97 : i32
    %c0_98 = arith.constant 0 : index
    %138 = arith.index_cast %137 : i32 to index
    %c1_99 = arith.constant 1 : index
    %c0_100 = arith.constant 0 : index
    %139 = vector.load %arg2[%c0_98, %138, %c1_99, %c0_100] : memref<1x18x18x128xf32, #tpu.memory_space<vmem>>, vector<1x8x16x128xf32>
    %140 = vector.shape_cast %139 : vector<1x8x16x128xf32> to vector<8x16x128xf32>
    %141 = arith.addf %136, %140 : vector<8x16x128xf32>
    %c0_101 = arith.constant 0 : index
    %c0_102 = arith.constant 0 : index
    %c0_103 = arith.constant 0 : index
    %c0_104 = arith.constant 0 : index
    %142 = vector.load %arg7[%c0_101, %c0_102, %c0_103, %c0_104] : memref<1x8x16x128xf32, #tpu.memory_space<vmem>>, vector<1x8x16x128xf32>
    %143 = vector.shape_cast %142 : vector<1x8x16x128xf32> to vector<8x16x128xf32>
    %144 = vector.shape_cast %141 : vector<8x16x128xf32> to vector<1x8x16x128xf32>
    tpu.vector_store %arg7[%c0_101, %c0_102, %c0_103, %c0_104], %144 {strides = array<i32>} : memref<1x8x16x128xf32, #tpu.memory_space<vmem>>, vector<1x8x16x128xf32>,
    return
  }
  func.func @transform_0(%arg0: i32, %arg1: i32) -> (i32, i32, i32, i32) {
    %c0_i32 = arith.constant 0 : i32
    %c0_i32_0 = arith.constant 0 : i32
    %c0_i32_1 = arith.constant 0 : i32
    %c0_i32_2 = arith.constant 0 : i32
    return %arg0, %c0_i32, %c0_i32_0, %c0_i32_1 : i32, i32, i32, i32
  }
  func.func @transform_1(%arg0: i32, %arg1: i32) -> (i32, i32) {
    %c0_i32 = arith.constant 0 : i32
    %c0_i32_0 = arith.constant 0 : i32
    %c0_i32_1 = arith.constant 0 : i32
    return %c0_i32, %c0_i32_0 : i32, i32
  }
  func.func @transform_2(%arg0: i32, %arg1: i32) -> (i32, i32) {
    %c0_i32 = arith.constant 0 : i32
    %c0_i32_0 = arith.constant 0 : i32
    %c0_i32_1 = arith.constant 0 : i32
    return %c0_i32, %c0_i32_0 : i32, i32
  }
  func.func @transform_3(%arg0: i32, %arg1: i32) -> (i32, i32) {
    %c0_i32 = arith.constant 0 : i32
    %c0_i32_0 = arith.constant 0 : i32
    %c0_i32_1 = arith.constant 0 : i32
    return %c0_i32, %c0_i32_0 : i32, i32
  }
  func.func @transform_4(%arg0: i32, %arg1: i32) -> (i32, i32) {
    %c0_i32 = arith.constant 0 : i32
    %c0_i32_0 = arith.constant 0 : i32
    %c0_i32_1 = arith.constant 0 : i32
    return %c0_i32, %c0_i32_0 : i32, i32
  }
  func.func @transform_5(%arg0: i32, %arg1: i32) -> (i32, i32, i32, i32) {
    %c0_i32 = arith.constant 0 : i32
    %c0_i32_0 = arith.constant 0 : i32
    %c0_i32_1 = arith.constant 0 : i32
    return %arg0, %arg1, %c0_i32, %c0_i32_0 : i32, i32, i32, i32
  }
}

</mosaic_0001>

<bundles_post_ra>
// kernel: tpu_custom_call.1
= control target key start
LH: loop header
LB: loop body
LE: loop exit
PB: predicated region body
PF: predicated region fallthrough
CT: control target
= control target key end

     0   :  { %10 = vsyncpa [#allocation4], 0  ;;  %s4922_s0 = inlined_call_operand.vmem [shape: f32[2,18,18,128], index: 0, kind: input, shape index: {}]   ;;  %s4923_s1 = inlined_call_operand.vmem [shape: bf16[128,128], index: 1, kind: input, shape index: {}]   ;;  %s4924_s2 = inlined_call_operand.vmem [shape: f32[9,128], index: 2, kind: input, shape index: {}]   ;;  %s4925_s3 = inlined_call_operand.vmem [shape: bf16[128,128], index: 3, kind: input, shape index: {}]   ;;  %s4926_s4 = inlined_call_operand.vmem [shape: f32[8,128], index: 4, kind: input, shape index: {}]   ;;  %s4927_s5 = inlined_call_operand.hbm [shape: f32[2,16,16,128], index: 5, kind: output, shape index: {}]  }
   0x1   :  { %12 = vsyncpa [#allocation4 + $0x1], 0  ;;  %s3449_s18 = smov 0   ;;  %s3451_s19 = smov 0  }
   0x2   :  { %s3453_s20 = smov 0   ;;  %s3455_s21 = smov 0  }
   0x3   :  { %s3457_s22 = smov 0   ;;  %s3459_s23 = smov 0  }
   0x4   :  { %s3461_s24 = smov 0   ;;  %s3463_s25 = smov 0  }
   0x5 LB: > { %s3080_s26 = sadd.s32 4294967295, %s3415_s25   ;;  %s3081_s27 = sadd.s32 4294967294, %s3415_s25   ;;  %s3415_s25 = sphi %s3463_s25, %s18_s25   ;;  %s3411_s24 = sphi %s3461_s24, %s4960_s24   ;;  %s3407_s23 = sphi %s3459_s23, %s4959_s23   ;;  %s3403_s22 = sphi %s3457_s22, %s4958_s22   ;;  %s3399_s21 = sphi %s3455_s21, %s4957_s21   ;;  %s3395_s20 = sphi %s3453_s20, %s4956_s20   ;;  %s3391_s19 = sphi %s3451_s19, %s4955_s19   ;;  %s3387_s18 = sphi %s3449_s18, %s4954_s18  }
   0x6   : > { %s27_s28 = sadd.s32 1, %s3407_s23  ;;  %s30_s29 = sadd.s32 1, %s3411_s24 }
   0x7   : > { %p28_p0 = scmp.ge.s32.totalorder %s27_s28, 2  ;;  %p159_p1 = scmp.ne.s32.totalorder %s3395_s20, %s3391_s19 }
   0x8   : > { %p160_p2 = scmp.eq.s32.totalorder %s3080_s26, 3  ;;  %p165_p5 = scmp.ne.s32.totalorder %s3391_s19, %s3387_s18 }
   0x9   : > { %s4962_s28 = smov (%p28_p0, %s27_s28), 0  ;;  %s4964_s29 = smov (!%p28_p0, %s30_s29), %s3411_s24 }
   0xa   : > { %s145_s30 = ssub.s32 %s3407_s23, %s4962_s28  ;;  %p3500_p3 = por %p160_p2, %p159_p1 }
   0xb   : > { %p32_p4 = scmp.ge.s32.totalorder %s4964_s29, 2  ;;  %p166_p6 = scmp.eq.s32.totalorder %s3081_s27, 3 }
   0xc   : > { %p3084_p7 = scmp.ge.s32.totalorder %s3415_s25, 1  ;;  %p204_p9 = scmp.lt.s32.totalorder %s3415_s25, 5 }
   0xd   : > { %s4966_s29 = smov (%p32_p4, %s4964_s29), 0  ;;  %p3509_p8 = por %p166_p6, %p165_p5 }
   0xe   : > { %s144_s8 = ssub.s32 %s3411_s24, %s4966_s29  ;;  %s149_s9 = sadd.s32 1, %s3395_s20 }
   0xf   : > { %s146_s10 = sor.u32 %s145_s30, %s144_s8  ;;  %p205_p10 = pnand %p3084_p7, %p204_p9 }
  0x10   : > { %p147_p11 = scmp.eq.s32.totalorder %s146_s10, 0  ;;  %p232_p12 = scmp.lt.s32.totalorder (!%p205_p10), %s3403_s22, 1 }
  0x11   : > { %208 = sbr.rel (%p205_p10) target bundleno = 599 (0x257), region = 40  ;;  %s3087_s16 = sshll.u32 (!%p205_p10), %s3399_s21, 3 }
  0x12   : > { %s3518_s11 = scalar_select %p147_p11, %s3395_s20, %s149_s9  }
  0x13   : > { %s3088_s14 = smul.u32 (!%p205_p10), 192, %s3399_s21  ;;  %s3194_s9 = sshll.u32 (!%p205_p10), %s3399_s21, 4 }
  0x16   : > { %v3185_v0 = vld [vmem:[%s4923_s1 + $0x38] sm:$0xff]  ;;  %v3184_v1 = vld [vmem:[%s4923_s1 + $0x30] sm:$0xff]  ;;  %s233_s17 = scalar_select %p232_p12, %s3403_s22, 1  ;;  %v3183_v2 = vld [vmem:[%s4923_s1 + $0x28] sm:$0xff]  ;;  %vm361_vm0 = vcmask 1040384   ;;  %vm365_vm1 = vcmask 1041409  }
  0x17   : > { %880 = vmatpush.bf16.msra.mxu0 %v3185_v0  ;;  %3195 = vmatpush.bf16.msra.mxu2 %v3185_v0  ;;  %v3182_v7 = vld [vmem:[%s4923_s1 + $0x20] sm:$0xff]  ;;  %vm369_vm2 = vcmask 1042434   ;;  %vm373_vm3 = vcmask 1043459   ;;  %v3181_v15 = vld [vmem:[%s4923_s1 + $0x18] sm:$0xff]  ;;  %v3180_v29 = vld [vmem:[%s4923_s1 + $0x10] sm:$0xff]  ;;  %vm1639_vm14 = vcmask 1046528  }
  0x18   : > { %3196 = vmatpush.bf16.msra.mxu3 %v3185_v0  ;;  %s3219_s30 = smul.u32 432, %s233_s17  ;;  %v3179_v33 = vld [vmem:[%s4923_s1 + $0x8] sm:$0xff]  ;;  %v3178_v38 = vld [vmem:[%s4923_s1] sm:$0xff]  ;;  %vm1794_vm15 = vcmask 1045504   ;;  %s229_s17 = sand.u32 1, %s3391_s19  }
  0x19   : > { %s2980_s27 = scalar_lea.sflag [#allocation4], %s229_s17 }
  0x1a   : > { %s236_s10 = scalar_lea.vmem %s4922_s0, %s3219_s30  ;;  %s3085_s30 = sshll.u32 %s229_s17, 7 }
  0x1b   : > { %881 = vmatpush.bf16.msra.mxu0 %v3184_v1  ;;  %3197 = vmatpush.bf16.msra.mxu2 %v3184_v1  ;;  %s3535_s12 = scalar_lea.vmem %s236_s10, %s3088_s14  ;;  %s4815_s8 = scalar_lea.vmem [#allocation3], %s3085_s30 }
  0x1c   : > { %3198 = vmatpush.bf16.msra.mxu3 %v3184_v1  ;;  %v241_v3 = vld [vmem:[%s3535_s12] sm:$0xff]  ;;  %v242_v4 = vld [vmem:[%s3535_s12 + $0x8] sm:$0xff]  ;;  %v244_v14 = vld [vmem:[%s3535_s12 + $0x18] sm:$0xff]  ;;  %s3174_s10 = sshll.u32 %s3403_s22, 5  ;;  %s2995_s21 = sshll.u32 %s4815_s8, 4  ;;  %s2996_s21 = int_to_ptr.vmem [resolvable:$true] %s2995_s21 }
  0x1d   : > { %v271_v5 = vpack.c.bf16 %v241_v3, %v241_v3  ;;  %v272_v6 = vpack.c.bf16 %v242_v4, %v242_v4  ;;  %v243_v23 = vld [vmem:[%s3535_s12 + $0x10] sm:$0x3]  ;;  %v274_v26 = vpack.c.bf16 %v244_v14, %v244_v14  ;;  %v245_v28 = vld [vmem:[%s3535_s12 + $0x20] sm:$0xff]  ;;  %v246_v51 = vld [vmem:[%s3535_s12 + $0x28] sm:$0x3]  ;;  %s2992_s13 = sadd.s32 %s3194_s9, %s3174_s10 }
  0x1e   : > { %v273_v30 = vpack.c.bf16 %v243_v23, %v243_v23  ;;  %v275_v31 = vpack.c.bf16 %v245_v28, %v245_v28  ;;  %v247_v48 = vld [vmem:[%s3535_s12 + $0x30] sm:$0xff]  ;;  %v248_v54 = vld [vmem:[%s3535_s12 + $0x38] sm:$0xff]  ;;  %v276_v55 = vpack.c.bf16 %v246_v51, %v246_v51  ;;  %s3175_s15 = sshll.u32 %s2992_s13, 3 }
  0x1f   : > { %882 = vmatpush.bf16.msra.mxu0 %v3183_v2  ;;  %3199 = vmatpush.bf16.msra.mxu2 %v3183_v2  ;;  %v331_v8 = vrot.slane %v271_v5, 3  ;;  %v332_v9 = vrot.slane %v272_v6, 3  ;;  %v334_v32 = vrot.slane %v274_v26, 3  ;;  %v277_v53 = vpack.c.bf16 %v247_v48, %v247_v48  ;;  %v251_v14 = vld [vmem:[%s3535_s12 + $0x50] sm:$0xff]  ;;  %s2994_s26 = scalar_lea.hbm %s4927_s5, %s3175_s15 }
  0x20   : > { %3200 = vmatpush.bf16.msra.mxu3 %v3183_v2  ;;  %v333_v34 = vrot.slane %v273_v30, 3  ;;  %v335_v35 = vrot.slane %v275_v31, 3  ;;  %v278_v56 = vpack.c.bf16 %v248_v54, %v248_v54  ;;  %v336_v59 = vrot.slane %v276_v55, 3  ;;  %s2997_s22 = sshll.u32 %s2994_s26, 4  ;;  %s2998_s22 = int_to_ptr.hbm [resolvable:$true] %s2997_s22 }
  0x21   : > { %v364_v10 = vsel %vm361_vm0, %v271_v5, %v331_v8  ;;  %v366_v11 = vsel %vm365_vm1, %v271_v5, %v331_v8  ;;  %v370_v12 = vsel %vm369_vm2, %v271_v5, %v331_v8  ;;  %v374_v13 = vsel %vm373_vm3, %v271_v5, %v331_v8  ;;  %v250_v8 = vld [vmem:[%s3535_s12 + $0x48] sm:$0xff]  ;;  %s3335_s30 = sshra.s32 %s2998_s22, 4  ;;  %s3336_s30 = int_to_ptr.hbm [resolvable:$true] %s3335_s30 }
  0x22   : > { %v368_v16 = vrot.slane %v366_v11, 1  ;;  %v372_v17 = vrot.slane %v370_v12, 2  ;;  %v376_v18 = vrot.slane %v374_v13, 3  ;;  %v379_v19 = vsel %vm361_vm0, %v272_v6, %v332_v9  ;;  %651 = vst [vmem:[#allocation1] ss:$9 sm:$0xff] %v364_v10  ;;  %s3337_s9 = scalar_lea.hbm %s3336_s30, 128  ;;  %p3342_p2 = scmp.lt.s32.totalorder %s3336_s30, %s4927_s5 }
  0x23   : > { %883 = vmatpush.bf16.msra.mxu0 %v3182_v7  ;;  %3201 = vmatpush.bf16.msra.mxu2 %v3182_v7  ;;  %v380_v20 = vsel %vm365_vm1, %v272_v6, %v332_v9  ;;  %v383_v21 = vsel %vm369_vm2, %v272_v6, %v332_v9  ;;  %v386_v22 = vsel %vm373_vm3, %v272_v6, %v332_v9  ;;  %v337_v57 = vrot.slane %v277_v53, 3  ;;  %v249_v11 = vld [vmem:[%s3535_s12 + $0x40] sm:$0x3]  ;;  %p3338_p13 = scmp.ne.s32.totalorder %s3336_s30, %s3337_s9 }
  0x24   : > { %662 = vst [vmem:[#allocation1 + $0x4] ss:$9 sm:$0xff] %v379_v19  ;;  %v382_v24 = vrot.slane %v380_v20, 1  ;;  %v385_v25 = vrot.slane %v383_v21, 2  ;;  %3202 = vmatpush.bf16.msra.mxu3 %v3182_v7  ;;  %v388_v27 = vrot.slane %v386_v22, 3  ;;  %v395_v36 = vsel %vm365_vm1, %v274_v26, %v334_v32 }
  0x25   : > { %654 = vst [vmem:[#allocation1 + $0x1] ss:$9 sm:$0xff] %v368_v16  ;;  %v398_v37 = vsel %vm369_vm2, %v274_v26, %v334_v32  ;;  %v391_v39 = vsel %vm361_vm0, %v273_v30, %v333_v34  ;;  %v401_v40 = vsel %vm373_vm3, %v274_v26, %v334_v32  ;;  %v394_v41 = vsel %vm361_vm0, %v274_v26, %v334_v32  ;;  %p3339_p0 = pnand %p3338_p13, %p3500_p3 }
  0x26   : > { %657 = vst [vmem:[#allocation1 + $0x2] ss:$9 sm:$0xff] %v372_v17  ;;  %v397_v42 = vrot.slane %v395_v36, 1  ;;  %v400_v44 = vrot.slane %v398_v37, 2  ;;  %v407_v45 = vsel %vm365_vm1, %v275_v31, %v335_v35  ;;  %v403_v46 = vrot.slane %v401_v40, 3 }
  0x27   : > { %884 = vmatpush.bf16.msra.mxu0 %v3181_v15  ;;  %660 = vst [vmem:[#allocation1 + $0x3] ss:$9 sm:$0xff] %v376_v18  ;;  %3203 = vmatpush.bf16.msra.mxu2 %v3181_v15  ;;  %v410_v47 = vsel %vm369_vm2, %v275_v31, %v335_v35  ;;  %v406_v49 = vsel %vm361_vm0, %v275_v31, %v335_v35  ;;  %v409_v50 = vrot.slane %v407_v45, 1  ;;  %v338_v60 = vrot.slane %v278_v56, 3  ;;  %p3340_p1 = pneg %p3339_p0 }
  0x28   : > { %665 = vst [vmem:[#allocation1 + $0x5] ss:$9 sm:$0xff] %v382_v24  ;;  %3204 = vmatpush.bf16.msra.mxu3 %v3181_v15  ;;  %v412_v52 = vrot.slane %v410_v47, 2  ;;  %v413_v58 = vsel %vm373_vm3, %v275_v31, %v335_v35  ;;  %v422_v62 = vsel %vm365_vm1, %v277_v53, %v337_v57  ;;  %v425_v63 = vsel %vm369_vm2, %v277_v53, %v337_v57  ;;  %v253_v31 = vld [vmem:[%s3535_s12 + $0x60] sm:$0xff] }
  0x29   : > { %668 = vst [vmem:[#allocation1 + $0x6] ss:$9 sm:$0xff] %v385_v25  ;;  %v415_v61 = vrot.slane %v413_v58, 3  ;;  %v418_v0 = vsel %vm361_vm0, %v276_v55, %v336_v59  ;;  %v428_v1 = vsel %vm373_vm3, %v277_v53, %v337_v57  ;;  %v421_v3 = vsel %vm361_vm0, %v277_v53, %v337_v57  ;;  %v256_v55 = vld [vmem:[%s3535_s12 + $0x78] sm:$0xff]  ;;  %v255_v57 = vld [vmem:[%s3535_s12 + $0x70] sm:$0x3] }
  0x2a   : > { %671 = vst [vmem:[#allocation1 + $0x7] ss:$9 sm:$0xff] %v388_v27  ;;  %v424_v4 = vrot.slane %v422_v62, 1  ;;  %v427_v5 = vrot.slane %v425_v63, 2  ;;  %v434_v6 = vsel %vm365_vm1, %v278_v56, %v338_v60  ;;  %v430_v7 = vrot.slane %v428_v1, 3 }
  0x2b   : > { %885 = vmatpush.bf16.msra.mxu0 %v3180_v29  ;;  %3205 = vmatpush.bf16.msra.mxu2 %v3180_v29  ;;  %v433_v9 = vsel %vm361_vm0, %v278_v56, %v338_v60  ;;  %v436_v10 = vrot.slane %v434_v6, 1  ;;  %v280_v12 = vpack.c.bf16 %v250_v8, %v250_v8  ;;  %v279_v13 = vpack.c.bf16 %v249_v11, %v249_v11  ;;  %v257_v8 = vld [vmem:[%s3535_s12 + $0x80] sm:$0xff] }
  0x2c   : > { %3206 = vmatpush.bf16.msra.mxu3 %v3180_v29  ;;  %v437_v16 = vsel %vm369_vm2, %v278_v56, %v338_v60  ;;  %v440_v17 = vsel %vm373_vm3, %v278_v56, %v338_v60  ;;  %v281_v19 = vpack.c.bf16 %v251_v14, %v251_v14  ;;  %v283_v35 = vpack.c.bf16 %v253_v31, %v253_v31 }
  0x2d   : > { %v340_v15 = vrot.slane %v280_v12, 3  ;;  %v339_v18 = vrot.slane %v279_v13, 3  ;;  %v439_v20 = vrot.slane %v437_v16, 2  ;;  %v442_v21 = vrot.slane %v440_v17, 3  ;;  %v258_v16 = vld [vmem:[%s3535_s12 + $0x88] sm:$0x3] }
  0x2e   : > { %v341_v27 = vrot.slane %v281_v19, 3  ;;  %v286_v59 = vpack.c.bf16 %v256_v55, %v256_v55  ;;  %v285_v60 = vpack.c.bf16 %v255_v57, %v255_v57  ;;  %v263_v57 = vld [vmem:[%s3535_s12 + $0xb0] sm:$0xff] }
  0x2f   : > { %886 = vmatpush.bf16.msra.mxu0 %v3179_v33  ;;  %3207 = vmatpush.bf16.msra.mxu2 %v3179_v33  ;;  %v449_v22 = vsel %vm365_vm1, %v280_v12, %v340_v15  ;;  %v452_v23 = vsel %vm369_vm2, %v280_v12, %v340_v15  ;;  %v445_v25 = vsel %vm361_vm0, %v279_v13, %v339_v18 }
  0x30   : > { %3208 = vmatpush.bf16.msra.mxu3 %v3179_v33  ;;  %v455_v26 = vsel %vm373_vm3, %v280_v12, %v340_v15  ;;  %v448_v28 = vsel %vm361_vm0, %v280_v12, %v340_v15  ;;  %v451_v29 = vrot.slane %v449_v22, 1  ;;  %v454_v30 = vrot.slane %v452_v23, 2  ;;  %v252_v33 = vld [vmem:[%s3535_s12 + $0x58] sm:$0x3]  ;;  %v259_v15 = vld [vmem:[%s3535_s12 + $0x90] sm:$0xff] }
  0x31   : > { %v672_v43 = vld [vmem:[#allocation1] sm:$0xff]  ;;  %v457_v32 = vrot.slane %v455_v26, 3  ;;  %v460_v34 = vsel %vm361_vm0, %v281_v19, %v341_v27  ;;  %v282_v36 = vpack.c.bf16 %v252_v33, %v252_v33  ;;  %v461_v37 = vsel %vm365_vm1, %v281_v19, %v341_v27  ;;  %v260_v33 = vld [vmem:[%s3535_s12 + $0x98] sm:$0xff] }
  0x32   : > { %673 = vst [vmem:[#allocation1] ss:$9 sm:$0xff] %v391_v39  ;;  %v464_v39 = vsel %vm369_vm2, %v281_v19, %v341_v27  ;;  %v467_v40 = vsel %vm373_vm3, %v281_v19, %v341_v27  ;;  %v346_v62 = vrot.slane %v286_v59, 3  ;;  %v345_v1 = vrot.slane %v285_v60, 3 }
  0x33   : > { %887 = vmatpush.bf16.msra.mxu0 %v3178_v38  ;;  %674 = vst [vmem:[#allocation1 + $0x1] ss:$9 sm:$0xff] %v394_v41  ;;  %3209 = vmatpush.bf16.msra.mxu2 %v3178_v38  ;;  %v342_v41 = vrot.slane %v282_v36, 3  ;;  %v469_v45 = vrot.slane %v467_v40, 3  ;;  %v287_v13 = vpack.c.bf16 %v257_v8, %v257_v8  ;;  %v289_v18 = vpack.c.bf16 %v259_v15, %v259_v15  ;;  %v262_v40 = vld [vmem:[%s3535_s12 + $0xa8] sm:$0xff]  ;;  %v265_v8 = vld [vmem:[%s3535_s12 + $0xc0] sm:$0xff] }
  0x34   : > { %676 = vst [vmem:[#allocation1 + $0x2] ss:$9 sm:$0xff] %v397_v42  ;;  %3210 = vmatpush.bf16.msra.mxu3 %v3178_v38  ;;  %v343_v38 = vrot.slane %v283_v35, 3  ;;  %v463_v42 = vrot.slane %v461_v37, 1  ;;  %v503_v6 = vsel %vm365_vm1, %v286_v59, %v346_v62  ;;  %v502_v11 = vsel %vm361_vm0, %v286_v59, %v346_v62 }
  0x35   : > { %678 = vst [vmem:[#allocation1 + $0x3] ss:$9 sm:$0xff] %v400_v44  ;;  %v254_v44 = vld [vmem:[%s3535_s12 + $0x68] sm:$0xff]  ;;  %v505_v12 = vrot.slane %v503_v6, 1  ;;  %v347_v17 = vrot.slane %v287_v13, 3  ;;  %v509_v19 = vsel %vm373_vm3, %v286_v59, %v346_v62  ;;  %v349_v22 = vrot.slane %v289_v18, 3 }
  0x36   : > { %888 = vmatmul.bf16.vlgmr.msra.gmra.mxu0 %v672_v43  ;;  %680 = vst [vmem:[#allocation1 + $0x4] ss:$9 sm:$0xff] %v403_v46  ;;  %v466_v43 = vrot.slane %v464_v39, 2  ;;  %v476_v46 = vsel %vm365_vm1, %v283_v35, %v343_v38  ;;  %v479_v47 = vsel %vm369_vm2, %v283_v35, %v343_v38  ;;  %v284_v51 = vpack.c.bf16 %v254_v44, %v254_v44 }
  0x37   : > { %681 = vst [vmem:[#allocation1 + $0x5] ss:$9 sm:$0xff] %v406_v49  ;;  %v472_v49 = vsel %vm361_vm0, %v282_v36, %v342_v41  ;;  %v478_v53 = vrot.slane %v476_v46, 1  ;;  %v481_v54 = vrot.slane %v479_v47, 2  ;;  %v511_v23 = vrot.slane %v509_v19, 3 }
  0x38   : > { %683 = vst [vmem:[#allocation1 + $0x6] ss:$9 sm:$0xff] %v409_v50  ;;  %v482_v50 = vsel %vm373_vm3, %v283_v35, %v343_v38  ;;  %v344_v58 = vrot.slane %v284_v51, 3  ;;  %v514_v27 = vsel %vm361_vm0, %v287_v13, %v347_v17  ;;  %v290_v37 = vpack.c.bf16 %v260_v33, %v260_v33 }
  0x39   : > { %685 = vst [vmem:[#allocation1 + $0x7] ss:$9 sm:$0xff] %v412_v52  ;;  %v475_v52 = vsel %vm361_vm0, %v283_v35, %v343_v38  ;;  %v484_v56 = vrot.slane %v482_v50, 3  ;;  %v529_v35 = vsel %vm361_vm0, %v289_v18, %v349_v22  ;;  %v261_v38 = vld [vmem:[%s3535_s12 + $0xa0] sm:$0x3]  ;;  %v533_v41 = vsel %vm369_vm2, %v289_v18, %v349_v22 }
  0x3a   : > { %v491_v63 = vsel %vm369_vm2, %v284_v51, %v344_v58  ;;  %v350_v39 = vrot.slane %v290_v37, 3  ;;  %v292_v44 = vpack.c.bf16 %v262_v40, %v262_v40  ;;  %v295_v15 = vpack.c.bf16 %v265_v8, %v265_v8  ;;  %v269_v40 = vld [vmem:[%s3535_s12 + $0xe0] sm:$0xff] }
  0x3c   : > { %v542_v46 = vsel %vm365_vm1, %v290_v37, %v350_v39 }
  0x40   : > { %v686_v2 = vld [vmem:[#allocation1] sm:$0xff] }
  0x41   : > { %688 = vst [vmem:[#allocation1] ss:$9 sm:$0xff] %v415_v61  ;;  %v488_v61 = vsel %vm365_vm1, %v284_v51, %v344_v58 }
  0x42   : > { %689 = vst [vmem:[#allocation1 + $0x1] ss:$9 sm:$0xff] %v418_v0  ;;  %v494_v0 = vsel %vm373_vm3, %v284_v51, %v344_v58 }
  0x43   : > { %690 = vst [vmem:[#allocation1 + $0x2] ss:$9 sm:$0xff] %v421_v3  ;;  %v490_v3 = vrot.slane %v488_v61, 1  ;;  %v264_v61 = vld [vmem:[%s3535_s12 + $0xb8] sm:$0x3] }
  0x44   : > { %692 = vst [vmem:[#allocation1 + $0x3] ss:$9 sm:$0xff] %v424_v4  ;;  %v493_v4 = vrot.slane %v491_v63, 2 }
  0x45   : > { %694 = vst [vmem:[#allocation1 + $0x4] ss:$9 sm:$0xff] %v427_v5  ;;  %v496_v5 = vrot.slane %v494_v0, 3 }
  0x46   : > { %893 = vmatmul.bf16.gmra.mxu0 %v686_v2  ;;  %696 = vst [vmem:[#allocation1 + $0x5] ss:$9 sm:$0xff] %v430_v7  ;;  %v487_v2 = vsel %vm361_vm0, %v284_v51, %v344_v58 }
  0x47   : > { %697 = vst [vmem:[#allocation1 + $0x6] ss:$9 sm:$0xff] %v433_v9  ;;  %v506_v9 = vsel %vm369_vm2, %v286_v59, %v346_v62 }
  0x48   : > { %699 = vst [vmem:[#allocation1 + $0x7] ss:$9 sm:$0xff] %v436_v10  ;;  %v499_v10 = vsel %vm361_vm0, %v285_v60, %v345_v1  ;;  %v508_v14 = vrot.slane %v506_v9, 2  ;;  %v293_v60 = vpack.c.bf16 %v263_v57, %v263_v57 }
  0x4a   : > { %v353_v62 = vrot.slane %v293_v60, 3 }
  0x4f   : > { %v700_v24 = vld [vmem:[#allocation1] sm:$0xff] }
  0x50   : > { %702 = vst [vmem:[#allocation1] ss:$9 sm:$0xff] %v439_v20  ;;  %v288_v20 = vpack.c.bf16 %v258_v16, %v258_v16 }
  0x51   : > { %704 = vst [vmem:[#allocation1 + $0x1] ss:$9 sm:$0xff] %v442_v21  ;;  %v515_v21 = vsel %vm365_vm1, %v287_v13, %v347_v17 }
  0x52   : > { %705 = vst [vmem:[#allocation1 + $0x2] ss:$9 sm:$0xff] %v445_v25  ;;  %v521_v25 = vsel %vm373_vm3, %v287_v13, %v347_v17  ;;  %v348_v26 = vrot.slane %v288_v20, 3 }
  0x53   : > { %706 = vst [vmem:[#allocation1 + $0x3] ss:$9 sm:$0xff] %v448_v28  ;;  %v517_v28 = vrot.slane %v515_v21, 1  ;;  %v523_v31 = vrot.slane %v521_v25, 3 }
  0x54   : > { %708 = vst [vmem:[#allocation1 + $0x4] ss:$9 sm:$0xff] %v451_v29 }
  0x55   : > { %710 = vst [vmem:[#allocation1 + $0x5] ss:$9 sm:$0xff] %v454_v30 }
  0x56   : > { %898 = vmatmul.bf16.gmra.mxu0 %v700_v24  ;;  %712 = vst [vmem:[#allocation1 + $0x6] ss:$9 sm:$0xff] %v457_v32  ;;  %v518_v24 = vsel %vm369_vm2, %v287_v13, %v347_v17  ;;  %v530_v32 = vsel %vm365_vm1, %v289_v18, %v349_v22  ;;  %v266_v17 = vld [vmem:[%s3535_s12 + $0xc8] sm:$0xff] }
  0x57   : > { %713 = vst [vmem:[#allocation1 + $0x7] ss:$9 sm:$0xff] %v460_v34  ;;  %v520_v30 = vrot.slane %v518_v24, 2  ;;  %v526_v34 = vsel %vm361_vm0, %v288_v20, %v348_v26  ;;  %v532_v36 = vrot.slane %v530_v32, 1  ;;  %v296_v19 = vpack.c.bf16 %v266_v17, %v266_v17  ;;  %v268_v32 = vld [vmem:[%s3535_s12 + $0xd8] sm:$0xff] }
  0x58   : > { %v355_v20 = vrot.slane %v295_v15, 3 }
  0x59   : > { %v356_v21 = vrot.slane %v296_v19, 3 }
  0x5a   : > { %v590_v24 = vsel %vm373_vm3, %v295_v15, %v355_v20  ;;  %v583_v25 = vsel %vm361_vm0, %v295_v15, %v355_v20 }
  0x5b   : > { %v602_v33 = vsel %vm373_vm3, %v296_v19, %v356_v21 }
  0x5e   : > { %v714_v48 = vld [vmem:[#allocation1] sm:$0xff] }
  0x5f   : > { %716 = vst [vmem:[#allocation1] ss:$9 sm:$0xff] %v463_v42  ;;  %v536_v42 = vsel %vm373_vm3, %v289_v18, %v349_v22  ;;  %v584_v22 = vsel %vm365_vm1, %v295_v15, %v355_v20 }
  0x60   : > { %718 = vst [vmem:[#allocation1 + $0x1] ss:$9 sm:$0xff] %v466_v43  ;;  %v291_v43 = vpack.c.bf16 %v261_v38, %v261_v38  ;;  %v538_v47 = vrot.slane %v536_v42, 3  ;;  %v586_v26 = vrot.slane %v584_v22, 1  ;;  %v298_v38 = vpack.c.bf16 %v268_v32, %v268_v32 }
  0x61   : > { %720 = vst [vmem:[#allocation1 + $0x2] ss:$9 sm:$0xff] %v469_v45  ;;  %v535_v45 = vrot.slane %v533_v41, 2  ;;  %v299_v42 = vpack.c.bf16 %v269_v40, %v269_v40  ;;  %v3691_v32 = vstv %s3087_s16 }
  0x62   : > { %721 = vst [vmem:[#allocation1 + $0x3] ss:$9 sm:$0xff] %v472_v49  ;;  %v548_v49 = vsel %vm373_vm3, %v290_v37, %v350_v39  ;;  %v351_v51 = vrot.slane %v291_v43, 3  ;;  %vm1148_vm4 = vcmp.ge.s32.totalorder %v3691_v32, 1  ;;  %vm1158_vm5 = vcmp.le.s32.totalorder %v3691_v32, 16 }
  0x63   : > { %722 = vst [vmem:[#allocation1 + $0x4] ss:$9 sm:$0xff] %v475_v52  ;;  %v541_v52 = vsel %vm361_vm0, %v290_v37, %v350_v39  ;;  %vm3701_vm6 = vmand %vm1148_vm4, %vm1158_vm5 }
  0x64   : > { %724 = vst [vmem:[#allocation1 + $0x5] ss:$9 sm:$0xff] %v478_v53  ;;  %v544_v53 = vrot.slane %v542_v46, 1  ;;  %v553_v58 = vsel %vm361_vm0, %v291_v43, %v351_v51  ;;  %v358_v43 = vrot.slane %v298_v38, 3  ;;  %v359_v46 = vrot.slane %v299_v42, 3 }
  0x65   : > { %726 = vst [vmem:[#allocation1 + $0x6] ss:$9 sm:$0xff] %v481_v54  ;;  %v352_v54 = vrot.slane %v292_v44, 3 }
  0x66   : > { %728 = vst [vmem:[#allocation1 + $0x7] ss:$9 sm:$0xff] %v484_v56  ;;  %903 = vmatmul.bf16.gmra.mxu0 %v714_v48  ;;  %v545_v48 = vsel %vm369_vm2, %v290_v37, %v350_v39  ;;  %v550_v56 = vrot.slane %v548_v49, 3  ;;  %v604_v39 = vrot.slane %v602_v33, 3  ;;  %v610_v51 = vsel %vm361_vm0, %v298_v38, %v358_v43 }
  0x67   : > { %v547_v55 = vrot.slane %v545_v48, 2  ;;  %v556_v59 = vsel %vm361_vm0, %v292_v44, %v352_v54  ;;  %v557_v63 = vsel %vm365_vm1, %v292_v44, %v352_v54  ;;  %v560_v0 = vsel %vm369_vm2, %v292_v44, %v352_v54 }
  0x68   : > { %v563_v1 = vsel %vm373_vm3, %v292_v44, %v352_v54  ;;  %v614_v48 = vsel %vm369_vm2, %v298_v38, %v358_v43  ;;  %v626_v57 = vsel %vm369_vm2, %v299_v42, %v359_v46 }
  0x69   : > { %v565_v6 = vrot.slane %v563_v1, 3  ;;  %v616_v54 = vrot.slane %v614_v48, 2 }
  0x6d   : > { %v729_v7 = vld [vmem:[#allocation1] sm:$0xff] }
  0x6e   : > { %730 = vst [vmem:[#allocation1] ss:$9 sm:$0xff] %v487_v2  ;;  %v294_v2 = vpack.c.bf16 %v264_v61, %v264_v61  ;;  %v270_v61 = vld [vmem:[%s3535_s12 + $0xe8] sm:$0x3] }
  0x6f   : > { %732 = vst [vmem:[#allocation1 + $0x1] ss:$9 sm:$0xff] %v490_v3  ;;  %v559_v3 = vrot.slane %v557_v63, 1  ;;  %v628_v63 = vrot.slane %v626_v57, 2 }
  0x70   : > { %734 = vst [vmem:[#allocation1 + $0x2] ss:$9 sm:$0xff] %v493_v4  ;;  %v562_v4 = vrot.slane %v560_v0, 2  ;;  %v3678_v0 = vld [vmem:[%s4926_s4 + $0x1] ss:$0 sm:$0xff] }
  0x71   : > { %736 = vst [vmem:[#allocation1 + $0x3] ss:$9 sm:$0xff] %v496_v5  ;;  %v569_v5 = vsel %vm365_vm1, %v293_v60, %v353_v62 }
  0x72   : > { %737 = vst [vmem:[#allocation1 + $0x4] ss:$9 sm:$0xff] %v499_v10  ;;  %v575_v10 = vsel %vm373_vm3, %v293_v60, %v353_v62  ;;  %v571_v13 = vrot.slane %v569_v5, 1 }
  0x73   : > { %738 = vst [vmem:[#allocation1 + $0x5] ss:$9 sm:$0xff] %v502_v11  ;;  %v354_v11 = vrot.slane %v294_v2, 3  ;;  %v577_v16 = vrot.slane %v575_v10, 3 }
  0x74   : > { %740 = vst [vmem:[#allocation1 + $0x6] ss:$9 sm:$0xff] %v505_v12  ;;  %v568_v12 = vsel %vm361_vm0, %v293_v60, %v353_v62 }
  0x75   : > { %742 = vst [vmem:[#allocation1 + $0x7] ss:$9 sm:$0xff] %v508_v14  ;;  %v580_v18 = vsel %vm361_vm0, %v294_v2, %v354_v11 }
  0x76   : > { %908 = vmatmul.bf16.gmra.mxu0 %v729_v7  ;;  %v572_v7 = vsel %vm369_vm2, %v293_v60, %v353_v62 }
  0x77   : > { %v574_v14 = vrot.slane %v572_v7, 2 }
  0x7c   : > { %v743_v29 = vld [vmem:[#allocation1] sm:$0xff] }
  0x7d   : > { %913 = vmatmul.bf16.vlgmr.msra.gmra.mxu2 %v743_v29  ;;  %745 = vst [vmem:[#allocation1] ss:$9 sm:$0xff] %v511_v23  ;;  %v587_v23 = vsel %vm369_vm2, %v295_v15, %v355_v20 }
  0x7e   : > { %746 = vst [vmem:[#allocation1 + $0x1] ss:$9 sm:$0xff] %v514_v27  ;;  %v589_v27 = vrot.slane %v587_v23, 2 }
  0x7f   : > { %748 = vst [vmem:[#allocation1 + $0x2] ss:$9 sm:$0xff] %v517_v28  ;;  %v596_v28 = vsel %vm365_vm1, %v296_v19, %v356_v21 }
  0x80   : > { %750 = vst [vmem:[#allocation1 + $0x3] ss:$9 sm:$0xff] %v520_v30  ;;  %v592_v30 = vrot.slane %v590_v24, 3 }
  0x81   : > { %752 = vst [vmem:[#allocation1 + $0x4] ss:$9 sm:$0xff] %v523_v31  ;;  %v599_v31 = vsel %vm369_vm2, %v296_v19, %v356_v21 }
  0x82   : > { %753 = vst [vmem:[#allocation1 + $0x5] ss:$9 sm:$0xff] %v526_v34  ;;  %v595_v34 = vsel %vm361_vm0, %v296_v19, %v356_v21  ;;  %v601_v37 = vrot.slane %v599_v31, 2 }
  0x83   : > { %754 = vst [vmem:[#allocation1 + $0x6] ss:$9 sm:$0xff] %v529_v35  ;;  %v598_v35 = vrot.slane %v596_v28, 1  ;;  %v1144_v28 = vlaneseq }
  0x84   : > { %756 = vst [vmem:[#allocation1 + $0x7] ss:$9 sm:$0xff] %v532_v36  ;;  %v267_v36 = vld [vmem:[%s3535_s12 + $0xd0] sm:$0x3] }
  0x85   : > { %v297_v41 = vpack.c.bf16 %v267_v36, %v267_v36 }
  0x87   : > { %v357_v44 = vrot.slane %v297_v41, 3 }
  0x89   : > { %v607_v49 = vsel %vm361_vm0, %v297_v41, %v357_v44 }
  0x8b   : > { %v757_v50 = vld [vmem:[#allocation1] sm:$0xff] }
  0x8c   : > { %759 = vst [vmem:[#allocation1] ss:$9 sm:$0xff] %v535_v45 }
  0x8d   : > { %918 = vmatmul.bf16.gmra.mxu2 %v757_v50  ;;  %761 = vst [vmem:[#allocation1 + $0x1] ss:$9 sm:$0xff] %v538_v47  ;;  %v611_v47 = vsel %vm365_vm1, %v298_v38, %v358_v43  ;;  %v617_v50 = vsel %vm373_vm3, %v298_v38, %v358_v43  ;;  %v1135_v43 = vadd.s32 1, %v3691_v32 }
  0x8e   : > { %762 = vst [vmem:[#allocation1 + $0x2] ss:$9 sm:$0xff] %v541_v52  ;;  %v613_v52 = vrot.slane %v611_v47, 1 }
  0x8f   : > { %764 = vst [vmem:[#allocation1 + $0x3] ss:$9 sm:$0xff] %v544_v53  ;;  %vm1149_vm8 = vcmp.ge.s32.totalorder %v1135_v43, 1  ;;  %vm1159_vm9 = vcmp.le.s32.totalorder %v1135_v43, 16 }
  0x90   : > { %766 = vst [vmem:[#allocation1 + $0x4] ss:$9 sm:$0xff] %v547_v55  ;;  %v623_v55 = vsel %vm365_vm1, %v299_v42, %v359_v46  ;;  %vm3729_vm11 = vmand %vm1149_vm8, %vm1159_vm9 }
  0x91   : > { %768 = vst [vmem:[#allocation1 + $0x5] ss:$9 sm:$0xff] %v550_v56  ;;  %v619_v56 = vrot.slane %v617_v50, 3  ;;  %v625_v60 = vrot.slane %v623_v55, 1  ;;  %v3736_v55 = vld [vmem:[%s4924_s2 + $0x2] ss:$0 sm:$0xff] }
  0x92   : > { %769 = vst [vmem:[#allocation1 + $0x6] ss:$9 sm:$0xff] %v553_v58  ;;  %v3671_v58 = vld [vmem:[%s4926_s4] ss:$0 sm:$0xff] }
  0x93   : > { %770 = vst [vmem:[#allocation1 + $0x7] ss:$9 sm:$0xff] %v556_v59  ;;  %v622_v59 = vsel %vm361_vm0, %v299_v42, %v359_v46 }
  0x9a   : > { %v771_v9 = vld [vmem:[#allocation1] sm:$0xff] }
  0x9b   : > { %773 = vst [vmem:[#allocation1] ss:$9 sm:$0xff] %v559_v3  ;;  %v300_v3 = vpack.c.bf16 %v270_v61, %v270_v61 }
  0x9c   : > { %775 = vst [vmem:[#allocation1 + $0x1] ss:$9 sm:$0xff] %v562_v4 }
  0x9d   : > { %923 = vmatmul.bf16.gmra.mxu2 %v771_v9  ;;  %777 = vst [vmem:[#allocation1 + $0x2] ss:$9 sm:$0xff] %v565_v6  ;;  %v629_v6 = vsel %vm373_vm3, %v299_v42, %v359_v46  ;;  %v360_v8 = vrot.slane %v300_v3, 3  ;;  %v3713_v46 = vld [vmem:[%s4924_s2 + $0x1] ss:$0 sm:$0xff] }
  0x9e   : > { %778 = vst [vmem:[#allocation1 + $0x3] ss:$9 sm:$0xff] %v568_v12  ;;  %v631_v11 = vrot.slane %v629_v6, 3 }
  0x9f   : > { %780 = vst [vmem:[#allocation1 + $0x4] ss:$9 sm:$0xff] %v571_v13 }
  0xa0   : > { %782 = vst [vmem:[#allocation1 + $0x5] ss:$9 sm:$0xff] %v574_v14  ;;  %v634_v14 = vsel %vm361_vm0, %v300_v3, %v360_v8 }
  0xa1   : > { %784 = vst [vmem:[#allocation1 + $0x6] ss:$9 sm:$0xff] %v577_v16 }
  0xa2   : > { %785 = vst [vmem:[#allocation1 + $0x7] ss:$9 sm:$0xff] %v580_v18 }
  0xa9   : > { %v786_v29 = vld [vmem:[#allocation1] sm:$0xff] }
  0xaa   : > { %787 = vst [vmem:[#allocation1] ss:$9 sm:$0xff] %v583_v25 }
  0xab   : > { %789 = vst [vmem:[#allocation1 + $0x1] ss:$9 sm:$0xff] %v586_v26 }
  0xac   : > { %791 = vst [vmem:[#allocation1 + $0x2] ss:$9 sm:$0xff] %v589_v27 }
  0xad   : > { %928 = vmatmul.bf16.gmra.mxu2 %v786_v29  ;;  %793 = vst [vmem:[#allocation1 + $0x3] ss:$9 sm:$0xff] %v592_v30 }
  0xae   : > { %794 = vst [vmem:[#allocation1 + $0x4] ss:$9 sm:$0xff] %v595_v34 }
  0xaf   : > { %796 = vst [vmem:[#allocation1 + $0x5] ss:$9 sm:$0xff] %v598_v35 }
  0xb0   : > { %798 = vst [vmem:[#allocation1 + $0x6] ss:$9 sm:$0xff] %v601_v37  ;;  %v3693_v37 = vshrl.u32 %v1144_v28, 7 }
  0xb1   : > { %800 = vst [vmem:[#allocation1 + $0x7] ss:$9 sm:$0xff] %v604_v39 }
  0xb2   : > { %vm1178_vm7 = vcmp.ge.s32.totalorder %v3693_v37, 1 }
  0xb3   : > { %v889_v45 = vpop.f32.mrf.mxu0  ;;  %vm1181_vm10 = vmand %vm3701_vm6, %vm1178_vm7 }
  0xb4   : > { %v950_v2 = vmul.f32 %v3671_v58, %v889_v45  ;;  %vm3750_vm12 = vmand %vm3729_vm11, %vm1178_vm7 }
  0xb6   : > { %v975_v7 = vadd.f32 %v3678_v0, %v950_v2 }
  0xb8   : > { %v801_v53 = vld [vmem:[#allocation1] sm:$0xff]  ;;  %v998_v13 = vmax.f32 %v975_v7, 0.0 }
  0xb9   : > { %802 = vst [vmem:[#allocation1] ss:$9 sm:$0xff] %v607_v49  ;;  %v3764_v7 = vld [vmem:[%s4924_s2 + $0x4] ss:$0 sm:$0xff] }
  0xba   : > { %803 = vst [vmem:[#allocation1 + $0x1] ss:$9 sm:$0xff] %v610_v51  ;;  %v1021_v21 = vmin.f32 %v998_v13, 6.0  ;;  %v3725_v51 = vadd.s32 16, %v3693_v37  ;;  %v3783_v13 = vld [vmem:[%s4924_s2 + $0x3] ss:$0 sm:$0xff] }
  0xbb   : > { %805 = vst [vmem:[#allocation1 + $0x2] ss:$9 sm:$0xff] %v613_v52  ;;  %v891_v62 = vpop.f32.mrf.mxu0 }
  0xbc   : > { %807 = vst [vmem:[#allocation1 + $0x3] ss:$9 sm:$0xff] %v616_v54  ;;  %v951_v1 = vmul.f32 %v3671_v58, %v891_v62  ;;  %v1067_v25 = vrot.slane %v1021_v21, 2  ;;  %v1068_v27 = vrot.slane %v1021_v21, 4  ;;  %v1069_v29 = vrot.slane %v1021_v21, 6 }
  0xbd   : > { %933 = vmatmul.bf16.gmra.mxu2 %v801_v53  ;;  %809 = vst [vmem:[#allocation1 + $0x4] ss:$9 sm:$0xff] %v619_v56  ;;  %vm1213_vm13 = vcmp.le.s32.totalorder %v3725_v51, 16 }
  0xbe   : > { %810 = vst [vmem:[#allocation1 + $0x5] ss:$9 sm:$0xff] %v622_v59  ;;  %v976_v4 = vadd.f32 %v3678_v0, %v951_v1  ;;  %v3742_v59 = vld [vmem:[%s4924_s2] ss:$0 sm:$0xff]  ;;  %vm3773_vm0 = vmand %vm3701_vm6, %vm1213_vm13 }
  0xbf   : > { %812 = vst [vmem:[#allocation1 + $0x6] ss:$9 sm:$0xff] %v625_v60  ;;  %vm3801_vm1 = vmand %vm3729_vm11, %vm1213_vm13 }
  0xc0   : > { %814 = vst [vmem:[#allocation1 + $0x7] ss:$9 sm:$0xff] %v628_v63  ;;  %v999_v5 = vmax.f32 %v976_v4, 0.0 }
  0xc2   : > { %v1022_v9 = vmin.f32 %v999_v5, 6.0 }
  0xc3   : > { %v894_v10 = vpop.f32.mrf.mxu0 }
  0xc4   : > { %v952_v12 = vmul.f32 %v3671_v58, %v894_v10  ;;  %v1070_v17 = vrot.slane %v1022_v9, 2  ;;  %v1071_v18 = vrot.slane %v1022_v9, 4  ;;  %v1072_v19 = vrot.slane %v1022_v9, 6 }
  0xc6   : > { %v977_v15 = vadd.f32 %v3678_v0, %v952_v12 }
  0xc7   : > { %v815_v16 = vld [vmem:[#allocation1] sm:$0xff] }
  0xc8   : > { %938 = vmatmul.bf16.vlgmr.msra.gmra.mxu3 %v815_v16  ;;  %817 = vst [vmem:[#allocation1] ss:$9 sm:$0xff] %v631_v11  ;;  %v1000_v20 = vmax.f32 %v977_v15, 0.0 }
  0xc9   : > { %818 = vst [vmem:[#allocation1 + $0x1] ss:$9 sm:$0xff] %v634_v14 }
  0xca   : > { %1312 = vst [vmem:[#allocation1 + $0x20] ss:$4 sm:$0xff] %v1022_v9  ;;  %v1023_v24 = vmin.f32 %v1000_v20, 6.0 }
  0xcb   : > { %1314 = vst [vmem:[#allocation1 + $0x21] ss:$4 sm:$0xff] %v1070_v17  ;;  %v896_v22 = vpop.f32.mrf.mxu0 }
  0xcc   : > { %1316 = vst [vmem:[#allocation1 + $0x22] ss:$4 sm:$0xff] %v1071_v18  ;;  %v953_v23 = vmul.f32 %v3671_v58, %v896_v22  ;;  %v1073_v33 = vrot.slane %v1023_v24, 2  ;;  %v1074_v34 = vrot.slane %v1023_v24, 4  ;;  %v1075_v35 = vrot.slane %v1023_v24, 6 }
  0xcd   : > { %1318 = vst [vmem:[#allocation1 + $0x23] ss:$4 sm:$0xff] %v1072_v19  ;;  %v3791_v19 = vld [vmem:[%s4924_s2 + $0x5] ss:$0 sm:$0xff] }
  0xce   : > { %v978_v26 = vadd.f32 %v3678_v0, %v953_v23 }
  0xd0   : > { %v819_v30 = vld [vmem:[#allocation1] sm:$0xff]  ;;  %v1001_v31 = vmax.f32 %v978_v26, 0.0 }
  0xd1   : > { %1304 = vst [vmem:[#allocation1] ss:$4 sm:$0xff] %v1021_v21 }
  0xd2   : > { %1306 = vst [vmem:[#allocation1 + $0x1] ss:$4 sm:$0xff] %v1067_v25  ;;  %v3697_v39 = vmin.f32 %v1001_v31, 6.0 }
  0xd3   : > { %1308 = vst [vmem:[#allocation1 + $0x2] ss:$4 sm:$0xff] %v1068_v27  ;;  %v899_v36 = vpop.f32.mrf.mxu0 }
  0xd4   : > { %1310 = vst [vmem:[#allocation1 + $0x3] ss:$4 sm:$0xff] %v1069_v29  ;;  %v1320_v38 = vld.sshfl [vmem:[#allocation1 + $0x20] sm:$0xff pattern:$0x73625140]  ;;  %v954_v40 = vmul.f32 %v3671_v58, %v899_v36  ;;  %v1076_v2 = vrot.slane %v3697_v39, 2 }
  0xd5   : > { %1323 = vst [vmem:[#allocation1 + $0x20] ss:$4 sm:$0xff] %v1073_v33  ;;  %v1462_v44 = vsel %vm3701_vm6, %v1320_v38, 0.0  ;;  %v1077_v6 = vrot.slane %v3697_v39, 4  ;;  %v1078_v8 = vrot.slane %v3697_v39, 6 }
  0xd6   : > { %1324 = vst [vmem:[#allocation1 + $0x21] ss:$4 sm:$0xff] %v1074_v34  ;;  %v979_v41 = vadd.f32 %v3678_v0, %v954_v40  ;;  %v3722_v48 = vmul.f32 %v3713_v46, %v1462_v44  ;;  %v3756_v1 = vmul.f32 %v3736_v55, %v1462_v44  ;;  %v1526_v17 = vmul.f32 %v3742_v59, %v1462_v44 }
  0xd7   : > { %1325 = vst [vmem:[#allocation1 + $0x22] ss:$4 sm:$0xff] %v1075_v35  ;;  %v3829_v44 = vadd.s32 2, %v3691_v32 }
  0xd8   : > { %943 = vmatmul.bf16.gmra.mxu3 %v819_v30  ;;  %1326 = vst [vmem:[#allocation1 + $0x23] ss:$4 sm:$0xff] %v3697_v39  ;;  %v1002_v45 = vmax.f32 %v979_v41, 0.0  ;;  %v1641_v61 = vrot.slane %v3722_v48, 1  ;;  %v1796_v18 = vrot.slane %v3756_v1, 2 }
  0xd9   : > { %vm1150_vm2 = vcmp.ge.s32.totalorder %v3829_v44, 1  ;;  %vm1160_vm3 = vcmp.le.s32.totalorder %v3829_v44, 16 }
  0xda   : > { %v3715_v47 = vmin.f32 %v1002_v45, 6.0  ;;  %vm3896_vm4 = vmand %vm1150_vm2, %vm1160_vm3 }
  0xdb   : > { %v1319_v49 = vld.sshfl [vmem:[#allocation1] sm:$0xff pattern:$0x73625140]  ;;  %v901_v50 = vpop.f32.mrf.mxu0  ;;  %vm3929_vm5 = vmand %vm3896_vm4, %vm1178_vm7 }
  0xdc   : > { %1321 = vst [vmem:[#allocation1] ss:$4 sm:$0xff] %v1023_v24  ;;  %v1079_v52 = vrot.slane %v3715_v47, 2  ;;  %v955_v53 = vmul.f32 %v3671_v58, %v901_v50  ;;  %v1461_v56 = vsel %vm1181_vm10, %v1319_v49, 0.0  ;;  %v1080_v20 = vrot.slane %v3715_v47, 4  ;;  %vm3989_vm6 = vmand %vm3896_vm4, %vm1213_vm13 }
  0xdd   : > { %v1591_v60 = vmul.f32 %v3713_v46, %v1461_v56  ;;  %v1746_v5 = vmul.f32 %v3736_v55, %v1461_v56  ;;  %v1525_v16 = vmul.f32 %v3742_v59, %v1461_v56  ;;  %v1081_v29 = vrot.slane %v3715_v47, 6 }
  0xde   : > { %v980_v57 = vadd.f32 %v3678_v0, %v955_v53 }
  0xdf   : > { %v1327_v62 = vld.sshfl [vmem:[#allocation1 + $0x20] sm:$0xff pattern:$0x73625140]  ;;  %v1640_v4 = vrot.slane %v1591_v60, 1  ;;  %v1795_v23 = vrot.slane %v1746_v5, 2 }
  0xe0   : > { %1332 = vst [vmem:[#allocation1 + $0x20] ss:$4 sm:$0xff] %v1079_v52  ;;  %v1003_v3 = vmax.f32 %v980_v57, 0.0  ;;  %v1464_v11 = vsel %vm3750_vm12, %v1327_v62, 0.0 }
  0xe1   : > { %v1642_v12 = vsel %vm1639_vm14, %v1640_v4, %v1641_v61  ;;  %v3808_v28 = vmul.f32 %v3764_v7, %v1464_v11  ;;  %v1797_v35 = vsel %vm1794_vm15, %v1795_v23, %v1796_v18  ;;  %v1901_v36 = vmul.f32 %v3783_v13, %v1464_v11  ;;  %v3193_v4 = vld [vmem:[%s4925_s3 + $0x38] sm:$0xff] }
  0xe2   : > { %v3767_v9 = vmin.f32 %v1003_v3, 6.0  ;;  %v1696_v27 = vadd.f32 %v1642_v12, %v1525_v16  ;;  %v3818_v38 = vmul.f32 %v3791_v19, %v1464_v11  ;;  %v3821_v39 = vmul.f32 %v3713_v46, %v1464_v11  ;;  %2843 = vmatpush.bf16.msra.mxu1 %v3193_v4  ;;  %3211 = vmatpush.bf16.msrb.mxu3 %v3193_v4  ;;  %v3917_v4 = vld [vmem:[%s4924_s2 + $0x8] ss:$0 sm:$0xff] }
  0xe3   : > { %v1322_v14 = vld.sshfl [vmem:[#allocation1] sm:$0xff pattern:$0x73625140]  ;;  %v904_v15 = vpop.f32.mrf.mxu0  ;;  %v3826_v43 = vmul.f32 %v3736_v55, %v1464_v11  ;;  %v3833_v48 = vmul.f32 %v3742_v59, %v1464_v11 }
  0xe4   : > { %1328 = vst [vmem:[#allocation1] ss:$4 sm:$0xff] %v1076_v2  ;;  %v1083_v21 = vrot.slane %v3767_v9, 4  ;;  %v956_v22 = vmul.f32 %v3671_v58, %v904_v15  ;;  %v1084_v24 = vrot.slane %v3767_v9, 6  ;;  %v1463_v26 = vsel %vm3773_vm0, %v1322_v14, 0.0 }
  0xe5   : > { %1329 = vst [vmem:[#allocation1 + $0x1] ss:$4 sm:$0xff] %v1077_v6  ;;  %v1593_v31 = vmul.f32 %v3713_v46, %v1463_v26  ;;  %v1748_v33 = vmul.f32 %v3736_v55, %v1463_v26  ;;  %v1851_v45 = vadd.f32 %v1797_v35, %v1696_v27  ;;  %v1082_v56 = vrot.slane %v3767_v9, 2  ;;  %v3883_v35 = vld [vmem:[%s4924_s2 + $0x6] ss:$0 sm:$0xff] }
  0xe6   : > { %1330 = vst [vmem:[#allocation1 + $0x2] ss:$4 sm:$0xff] %v1078_v8  ;;  %v981_v30 = vadd.f32 %v3678_v0, %v956_v22  ;;  %v2169_v62 = vrot.slane %v3818_v38, 2  ;;  %v1645_v63 = vrot.slane %v3821_v39, 1 }
  0xe7   : > { %1331 = vst [vmem:[#allocation1 + $0x3] ss:$4 sm:$0xff] %v3715_v47  ;;  %v1334_v34 = vld.sshfl [vmem:[#allocation1 + $0x20] sm:$0xff pattern:$0x73625140]  ;;  %v1643_v42 = vrot.slane %v1593_v31, 1  ;;  %v1917_v3 = vadd.f32 %v1901_v36, %v1851_v45 }
  0xe8   : > { %1339 = vst [vmem:[#allocation1 + $0x20] ss:$4 sm:$0xff] %v1083_v21  ;;  %v1004_v40 = vmax.f32 %v981_v30, 0.0  ;;  %v1466_v41 = vsel %vm3801_vm1, %v1334_v34, 0.0  ;;  %v2015_v47 = vrot.slane %v3808_v28, 1  ;;  %v1798_v52 = vrot.slane %v1748_v33, 2 }
  0xe9   : > { %1340 = vst [vmem:[#allocation1 + $0x21] ss:$4 sm:$0xff] %v1084_v24  ;;  %v1644_v50 = vsel %vm1639_vm14, %v1641_v61, %v1643_v42  ;;  %v3839_v53 = vmul.f32 %v3764_v7, %v1466_v41  ;;  %v1800_v61 = vrot.slane %v3826_v43, 2  ;;  %v2123_v5 = vmul.f32 %v3791_v19, %v1466_v41 }
  0xea   : > { %v3835_v49 = vmin.f32 %v1004_v40, 6.0  ;;  %v1697_v60 = vadd.f32 %v1644_v50, %v1526_v17  ;;  %v3855_v6 = vmul.f32 %v3713_v46, %v1466_v41  ;;  %v1799_v11 = vsel %vm1794_vm15, %v1796_v18, %v1798_v52 }
  0xeb   : > { %v906_v57 = vpop.f32.mrf.mxu0  ;;  %v2018_v12 = vrot.slane %v3839_v53, 1  ;;  %v3861_v14 = vmul.f32 %v3736_v55, %v1466_v41  ;;  %v2172_v25 = vrot.slane %v2123_v5, 2  ;;  %v3903_v53 = vld [vmem:[%s4924_s2 + $0x7] ss:$0 sm:$0xff] }
  0xec   : > { %v1085_v1 = vrot.slane %v3835_v49, 2  ;;  %1341 = vst [vmem:[#allocation1 + $0x22] ss:$4 sm:$0xff] %v3835_v49  ;;  %v957_v2 = vmul.f32 %v3671_v58, %v906_v57  ;;  %v1086_v15 = vrot.slane %v3835_v49, 4  ;;  %v1087_v16 = vrot.slane %v3835_v49, 6  ;;  %v3191_v57 = vld [vmem:[%s4925_s3 + $0x28] sm:$0xff] }
  0xed   : > { %v1852_v21 = vadd.f32 %v1799_v11, %v1697_v60  ;;  %v1648_v26 = vrot.slane %v3855_v6, 1  ;;  %v1803_v33 = vrot.slane %v3861_v14, 2 }
  0xee   : > { %v1333_v8 = vld.sshfl [vmem:[#allocation1] sm:$0xff pattern:$0x73625140]  ;;  %1342 = vst [vmem:[#allocation1 + $0x23] ss:$4 sm:$0xff] %v1085_v1  ;;  %v982_v10 = vadd.f32 %v3678_v0, %v957_v2 }
  0xef   : > { %1335 = vst [vmem:[#allocation1] ss:$4 sm:$0xff] %v1080_v20  ;;  %v1465_v17 = vsel %vm3729_vm11, %v1333_v8, 0.0  ;;  %v3192_v20 = vld [vmem:[%s4925_s3 + $0x30] sm:$0xff] }
  0xf0   : > { %1336 = vst [vmem:[#allocation1 + $0x1] ss:$4 sm:$0xff] %v1081_v29  ;;  %v1005_v22 = vmax.f32 %v982_v10, 0.0  ;;  %v1902_v18 = vmul.f32 %v3783_v13, %v1465_v17  ;;  %v1968_v23 = vmul.f32 %v3764_v7, %v1465_v17  ;;  %v2122_v24 = vmul.f32 %v3791_v19, %v1465_v17  ;;  %2844 = vmatpush.bf16.msra.mxu1 %v3192_v20 }
  0xf1   : > { %1337 = vst [vmem:[#allocation1 + $0x2] ss:$4 sm:$0xff] %v3767_v9  ;;  %v1595_v54 = vmul.f32 %v3713_v46, %v1465_v17  ;;  %v1750_v27 = vmul.f32 %v3736_v55, %v1465_v17  ;;  %v3886_v36 = vmul.f32 %v3742_v59, %v1465_v17  ;;  %3212 = vmatpush.bf16.msrb.mxu3 %v3192_v20 }
  0xf2   : > { %1338 = vst [vmem:[#allocation1 + $0x3] ss:$4 sm:$0xff] %v1082_v56  ;;  %v3877_v29 = vmin.f32 %v1005_v22, 6.0  ;;  %v2016_v30 = vrot.slane %v1968_v23, 1  ;;  %v2170_v31 = vrot.slane %v2122_v24, 2  ;;  %v1918_v9 = vadd.f32 %v1902_v18, %v1852_v21  ;;  %v3190_v21 = vld [vmem:[%s4925_s3 + $0x20] sm:$0xff] }
  0xf3   : > { %v909_v34 = vpop.f32.mrf.mxu0  ;;  %v1646_v38 = vrot.slane %v1595_v54, 1  ;;  %v1801_v40 = vrot.slane %v1750_v27, 2 }
  0xf4   : > { %v1088_v41 = vrot.slane %v3877_v29, 2  ;;  %v1089_v42 = vrot.slane %v3877_v29, 4  ;;  %v1090_v45 = vrot.slane %v3877_v29, 6  ;;  %v958_v50 = vmul.f32 %v3671_v58, %v909_v34  ;;  %2845 = vmatpush.bf16.msra.mxu1 %v3191_v57 }
  0xf5   : > { %v1344_v56 = vld.sshfl [vmem:[#allocation1 + $0x20] sm:$0xff pattern:$0x73625140]  ;;  %v2017_v60 = vsel %vm1639_vm14, %v2015_v47, %v2016_v30  ;;  %v2019_v44 = vsel %vm1639_vm14, %v2016_v30, %v2018_v12  ;;  %v2171_v1 = vsel %vm1794_vm15, %v2169_v62, %v2170_v31  ;;  %v2173_v2 = vsel %vm1794_vm15, %v2170_v31, %v2172_v25  ;;  %3213 = vmatpush.bf16.msrb.mxu3 %v3191_v57  ;;  %v3189_v31 = vld [vmem:[%s4925_s3 + $0x18] sm:$0xff] }
  0xf6   : > { %1347 = vst [vmem:[#allocation1 + $0x20] ss:$4 sm:$0xff] %v1087_v16  ;;  %v983_v5 = vadd.f32 %v3678_v0, %v958_v50  ;;  %v3922_v6 = vsel %vm3896_vm4, %v1344_v56, 0.0  ;;  %v2071_v28 = vadd.f32 %v2017_v60, %v1917_v3  ;;  %v2072_v47 = vadd.f32 %v2019_v44, %v1918_v9  ;;  %v4002_v60 = vld [vmem:[%s4926_s4 + $0x2] ss:$0 sm:$0xff] }
  0xf7   : > { %1348 = vst [vmem:[#allocation1 + $0x21] ss:$4 sm:$0xff] %v3877_v29  ;;  %v2276_v8 = vmul.f32 %v3883_v35, %v3922_v6  ;;  %v3937_v10 = vmul.f32 %v3903_v53, %v3922_v6  ;;  %v3941_v3 = vmul.f32 %v3917_v4, %v3922_v6  ;;  %v1647_v16 = vsel %vm1639_vm14, %v1645_v63, %v1646_v38 }
  0xf8   : > { %1349 = vst [vmem:[#allocation1 + $0x22] ss:$4 sm:$0xff] %v1088_v41  ;;  %v1006_v11 = vmax.f32 %v983_v5, 0.0  ;;  %v2225_v12 = vadd.f32 %v2171_v1, %v2071_v28  ;;  %v2226_v14 = vadd.f32 %v2173_v2, %v2072_v47  ;;  %v1649_v22 = vsel %vm1639_vm14, %v1646_v38, %v1648_v26  ;;  %2846 = vmatpush.bf16.msra.mxu1 %v3190_v21  ;;  %v4007_v5 = vld [vmem:[%s4926_s4 + $0x3] ss:$0 sm:$0xff] }
  0xf9   : > { %v1343_v17 = vld.sshfl [vmem:[#allocation1] sm:$0xff pattern:$0x73625140]  ;;  %1350 = vst [vmem:[#allocation1 + $0x23] ss:$4 sm:$0xff] %v1089_v42  ;;  %v1698_v18 = vadd.f32 %v1647_v16, %v3833_v48  ;;  %v1802_v23 = vsel %vm1794_vm15, %v1800_v61, %v1801_v40  ;;  %v1804_v24 = vsel %vm1794_vm15, %v1801_v40, %v1803_v33  ;;  %v2390_v25 = vrot.slane %v3937_v10, 1  ;;  %3214 = vmatpush.bf16.msrb.mxu3 %v3190_v21 }
  0xfa   : > { %1345 = vst [vmem:[#allocation1] ss:$4 sm:$0xff] %v1086_v15  ;;  %v3957_v39 = vmin.f32 %v1006_v11, 6.0  ;;  %v3961_v63 = vsel %vm3929_vm5, %v1343_v17, 0.0  ;;  %v3963_v20 = vadd.f32 %v2276_v8, %v2226_v14  ;;  %v2544_v15 = vrot.slane %v3941_v3, 2 }
  0xfb   : > { %v911_v48 = vpop.f32.mrf.mxu0  ;;  %v2275_v43 = vmul.f32 %v3883_v35, %v3961_v63  ;;  %v2341_v61 = vmul.f32 %v3903_v53, %v3961_v63  ;;  %v2495_v49 = vmul.f32 %v3917_v4, %v3961_v63  ;;  %v1137_v38 = vadd.s32 3, %v3691_v32 }
  0xfc   : > { %v1091_v54 = vrot.slane %v3957_v39, 2  ;;  %v1092_v26 = vrot.slane %v3957_v39, 4  ;;  %v1093_v27 = vrot.slane %v3957_v39, 6  ;;  %v959_v30 = vmul.f32 %v3671_v58, %v911_v48  ;;  %2847 = vmatpush.bf16.msra.mxu1 %v3189_v31 }
  0xfd   : > { %v2291_v33 = vadd.f32 %v2275_v43, %v2225_v12  ;;  %v2389_v34 = vrot.slane %v2341_v61, 1  ;;  %v2543_v9 = vrot.slane %v2495_v49, 2  ;;  %v1699_v41 = vadd.f32 %v1649_v22, %v3886_v36  ;;  %3215 = vmatpush.bf16.msrb.mxu3 %v3189_v31  ;;  %v3188_v12 = vld [vmem:[%s4925_s3 + $0x10] sm:$0xff] }
  0xfe   : > { %v984_v40 = vadd.f32 %v3678_v0, %v959_v30  ;;  %v1853_v42 = vadd.f32 %v1802_v23, %v1698_v18  ;;  %v1903_v50 = vmul.f32 %v3783_v13, %v3961_v63  ;;  %vm1151_vm8 = vcmp.ge.s32.totalorder %v1137_v38, 1 }
  0xff   : > { %v2391_v57 = vsel %vm1639_vm14, %v2389_v34, %v2390_v25  ;;  %v2545_v36 = vsel %vm1794_vm15, %v2543_v9, %v2544_v15  ;;  %vm1161_vm9 = vcmp.le.s32.totalorder %v1137_v38, 16  ;;  %v1854_v47 = vadd.f32 %v1804_v24, %v1699_v41 }
 0x100   : > { %v914_v52 = vpop.f32.mrf.mxu2  ;;  %v1351_v44 = vld.sshfl [vmem:[#allocation1 + $0x20] sm:$0xff pattern:$0x73625140]  ;;  %v1007_v1 = vmax.f32 %v984_v40, 0.0  ;;  %v2445_v2 = vadd.f32 %v2391_v57, %v2291_v33  ;;  %vm4009_vm10 = vmand %vm1151_vm8, %vm1161_vm9  ;;  %v1904_v62 = vmul.f32 %v3783_v13, %v3922_v6  ;;  %v1919_v14 = vadd.f32 %v1903_v50, %v1853_v42  ;;  %2848 = vmatpush.bf16.msra.mxu1 %v3188_v12 }
 0x101   : > { %v1346_v8 = vld.sshfl [vmem:[#allocation1] sm:$0xff pattern:$0x73625140]  ;;  %v960_v11 = vmul.f32 %v3671_v58, %v914_v52  ;;  %1356 = vst [vmem:[#allocation1 + $0x20] ss:$4 sm:$0xff] %v1093_v27  ;;  %vm1190_vm11 = vmand %vm4009_vm10, %vm1178_vm7  ;;  %v1970_v16 = vmul.f32 %v3764_v7, %v3961_v63  ;;  %v1971_v17 = vmul.f32 %v3764_v7, %v3922_v6  ;;  %3216 = vmatpush.bf16.msrb.mxu3 %v3188_v12 }
 0x102   : > { %1352 = vst [vmem:[#allocation1] ss:$4 sm:$0xff] %v1090_v45  ;;  %v4029_v21 = vmin.f32 %v1007_v1, 6.0  ;;  %v4033_v22 = vsel %vm3989_vm6, %v1346_v8, 0.0  ;;  %v2599_v18 = vadd.f32 %v2545_v36, %v2445_v2  ;;  %v4035_v23 = vsel %vm1190_vm11, %v1351_v44, 0.0  ;;  %vm4065_vm12 = vmand %vm4009_vm10, %vm1213_vm13 }
 0x103   : > { %v985_v24 = vadd.f32 %v3678_v0, %v960_v11  ;;  %1353 = vst [vmem:[#allocation1 + $0x1] ss:$4 sm:$0xff] %v3957_v39  ;;  %v2343_v48 = vmul.f32 %v3903_v53, %v4033_v22  ;;  %v2497_v29 = vmul.f32 %v3917_v4, %v4033_v22  ;;  %v2020_v45 = vrot.slane %v1970_v16, 1  ;;  %v3187_v39 = vld [vmem:[%s4925_s3 + $0x8] sm:$0xff] }
 0x104   : > { %1354 = vst [vmem:[#allocation1 + $0x2] ss:$4 sm:$0xff] %v1091_v54  ;;  %v1094_v43 = vrot.slane %v4029_v21, 2  ;;  %v1095_v61 = vrot.slane %v4029_v21, 4  ;;  %v1096_v49 = vrot.slane %v4029_v21, 6  ;;  %v2650_v27 = vmul.f32 %v4002_v60, %v2599_v18  ;;  %2849 = vmatpush.bf16.msra.mxu1 %v3187_v39 }
 0x105   : > { %v1008_v30 = vmax.f32 %v985_v24, 0.0  ;;  %1355 = vst [vmem:[#allocation1 + $0x3] ss:$4 sm:$0xff] %v1092_v26  ;;  %v2392_v31 = vrot.slane %v2343_v48, 1  ;;  %v2546_v33 = vrot.slane %v2497_v29, 2  ;;  %v1920_v34 = vadd.f32 %v1904_v62, %v1854_v47  ;;  %3217 = vmatpush.bf16.msrb.mxu3 %v3187_v39  ;;  %v3186_v47 = vld [vmem:[%s4925_s3] sm:$0xff] }
 0x106   : > { %v2667_v54 = vadd.f32 %v4007_v5, %v2650_v27  ;;  %v1972_v9 = vmul.f32 %v3764_v7, %v4033_v22  ;;  %v2021_v38 = vrot.slane %v1971_v17, 1  ;;  %v2124_v40 = vmul.f32 %v3791_v19, %v3961_v63 }
 0x107   : > { %v1031_v41 = vmin.f32 %v1008_v30, 6.0  ;;  %v2393_v26 = vsel %vm1639_vm14, %v2390_v25, %v2392_v31  ;;  %v2547_v42 = vsel %vm1794_vm15, %v2544_v15, %v2546_v33  ;;  %v2125_v56 = vmul.f32 %v3791_v19, %v3922_v6 }
 0x108   : > { %v916_v57 = vpop.f32.mrf.mxu2  ;;  %v1358_v36 = vld.sshfl [vmem:[#allocation1 + $0x20] sm:$0xff pattern:$0x73625140]  ;;  %v2446_v10 = vadd.f32 %v2393_v26, %v3963_v20  ;;  %v2683_v25 = vmax.f32 %v2667_v54, 0.0  ;;  %v2022_v3 = vsel %vm1639_vm14, %v2020_v45, %v2021_v38  ;;  %v2023_v52 = vrot.slane %v1972_v9, 1  ;;  %2850 = vmatpush.bf16.msra.mxu1 %v3186_v47 }
 0x109   : > { %v1097_v15 = vrot.slane %v1031_v41, 2  ;;  %v1098_v44 = vrot.slane %v1031_v41, 4  ;;  %v1099_v1 = vrot.slane %v1031_v41, 6  ;;  %v961_v2 = vmul.f32 %v3671_v58, %v916_v57  ;;  %1363 = vst [vmem:[#allocation1 + $0x20] ss:$4 sm:$0xff] %v1031_v41  ;;  %3218 = vmatpush.bf16.msrb.mxu3 %v3186_v47 }
 0x10a   : > { %v2600_v62 = vadd.f32 %v2547_v42, %v2446_v10  ;;  %v2699_v8 = vmin.f32 %v2683_v25, 6.0  ;;  %v4079_v20 = vsel %vm4065_vm12, %v1358_v36, 0.0  ;;  %v2024_v11 = vsel %vm1639_vm14, %v2021_v38, %v2023_v52 }
 0x10b   : > { %v986_v12 = vadd.f32 %v3678_v0, %v961_v2  ;;  %1364 = vst [vmem:[#allocation1 + $0x21] ss:$4 sm:$0xff] %v1097_v15  ;;  %v2073_v16 = vadd.f32 %v2022_v3, %v1919_v14  ;;  %v2074_v17 = vadd.f32 %v2024_v11, %v1920_v34  ;;  %v2174_v18 = vrot.slane %v2124_v40, 2 }
 0x10c   : > { %v1357_v24 = vld.sshfl [vmem:[#allocation1] sm:$0xff pattern:$0x73625140]  ;;  %1365 = vst [vmem:[#allocation1 + $0x22] ss:$4 sm:$0xff] %v1098_v44  ;;  %v2651_v48 = vmul.f32 %v4002_v60, %v2600_v62  ;;  %v2715_v29 = vpack.c.bf16 %v2699_v8, %v2699_v8  ;;  %v2126_v45 = vmul.f32 %v3791_v19, %v4033_v22  ;;  %v2175_v27 = vrot.slane %v2125_v56, 2 }
 0x10d   : > { %v1009_v30 = vmax.f32 %v986_v12, 0.0  ;;  %1366 = vst [vmem:[#allocation1 + $0x23] ss:$4 sm:$0xff] %v1099_v1  ;;  %v4088_v39 = vsel %vm4009_vm10, %v1357_v24, 0.0  ;;  %v2277_v14 = vmul.f32 %v3883_v35, %v4035_v23  ;;  %v2344_v31 = vmul.f32 %v3903_v53, %v4035_v23 }
 0x10e   : > { %1359 = vst [vmem:[#allocation1] ss:$4 sm:$0xff] %v4029_v21  ;;  %v2668_v33 = vadd.f32 %v4007_v5, %v2651_v48  ;;  %v2763_v34 = vunpack.c.l.b16 %v2715_v29  ;;  %v2176_v54 = vsel %vm1794_vm15, %v2174_v18, %v2175_v27  ;;  %v2177_v9 = vrot.slane %v2126_v45, 2 }
 0x10f   : > { %v1032_v38 = vmin.f32 %v1009_v30, 6.0  ;;  %1360 = vst [vmem:[#allocation1 + $0x1] ss:$4 sm:$0xff] %v1094_v43  ;;  %v2227_v40 = vadd.f32 %v2176_v54, %v2073_v16  ;;  %v2278_v28 = vmul.f32 %v3883_v35, %v4088_v39  ;;  %v2345_v41 = vmul.f32 %v3903_v53, %v4088_v39 }
 0x110   : > { %v919_v26 = vpop.f32.mrf.mxu2  ;;  %1361 = vst [vmem:[#allocation1 + $0x2] ss:$4 sm:$0xff] %v1095_v61  ;;  %v2684_v42 = vmax.f32 %v2668_v33, 0.0  ;;  %v2178_v50 = vsel %vm1794_vm15, %v2175_v27, %v2177_v9  ;;  %v2346_v56 = vmul.f32 %v3903_v53, %v4079_v20  ;;  %v2394_v57 = vrot.slane %v2344_v31, 1 }
 0x111   : > { %v1100_v36 = vrot.slane %v1032_v38, 2  ;;  %v1101_v43 = vrot.slane %v1032_v38, 4  ;;  %v1102_v10 = vrot.slane %v1032_v38, 6  ;;  %v962_v25 = vmul.f32 %v3671_v58, %v919_v26  ;;  %1362 = vst [vmem:[#allocation1 + $0x3] ss:$4 sm:$0xff] %v1096_v49 }
 0x112   : > { %v2700_v3 = vmin.f32 %v2684_v42, 6.0  ;;  %v2228_v52 = vadd.f32 %v2178_v50, %v2074_v17  ;;  %v2293_v15 = vadd.f32 %v2277_v14, %v2227_v40  ;;  %v2395_v44 = vrot.slane %v2345_v41, 1 }
 0x113   : > { %v987_v61 = vadd.f32 %v3678_v0, %v962_v25  ;;  %v2397_v1 = vrot.slane %v2346_v56, 1  ;;  %v2498_v2 = vmul.f32 %v3917_v4, %v4035_v23  ;;  %v2499_v47 = vmul.f32 %v3917_v4, %v4088_v39 }
 0x114   : > { %v1368_v62 = vld.sshfl [vmem:[#allocation1 + $0x20] sm:$0xff pattern:$0x73625140]  ;;  %v2716_v8 = vpack.c.bf16 %v2700_v3, %v2700_v3  ;;  %v2294_v11 = vadd.f32 %v2278_v28, %v2228_v52  ;;  %v2396_v12 = vsel %vm1639_vm14, %v2394_v57, %v2395_v44  ;;  %v2500_v21 = vmul.f32 %v3917_v4, %v4079_v20 }
 0x115   : > { %1371 = vst [vmem:[#allocation1 + $0x20] ss:$4 sm:$0xff] %v1100_v36  ;;  %v1010_v49 = vmax.f32 %v987_v61, 0.0  ;;  %v2398_v16 = vsel %vm1639_vm14, %v2395_v44, %v2397_v1  ;;  %v2447_v17 = vadd.f32 %v2396_v12, %v2293_v15  ;;  %v2548_v18 = vrot.slane %v2498_v2, 2 }
 0x116   : > { %1372 = vst [vmem:[#allocation1 + $0x21] ss:$4 sm:$0xff] %v1101_v43  ;;  %v2764_v24 = vunpack.c.l.b16 %v2716_v8  ;;  %v2448_v48 = vadd.f32 %v2398_v16, %v2294_v11  ;;  %v2549_v29 = vrot.slane %v2499_v47, 2  ;;  %v2551_v45 = vrot.slane %v2500_v21, 2 }
 0x117   : > { %1373 = vst [vmem:[#allocation1 + $0x22] ss:$4 sm:$0xff] %v1102_v10  ;;  %v4118_v27 = vmin.f32 %v1010_v49, 6.0  ;;  %v1138_v30 = vadd.s32 4, %v3691_v32  ;;  %v1529_v14 = vmul.f32 %v3742_v59, %v3961_v63  ;;  %v1530_v31 = vmul.f32 %v3742_v59, %v3922_v6 }
 0x118   : > { %v921_v33 = vpop.f32.mrf.mxu2  ;;  %v2779_v54 = vpack.c.b16 %v2764_v24, %v2763_v34  ;;  %v2550_v9 = vsel %vm1794_vm15, %v2548_v18, %v2549_v29  ;;  %v2552_v40 = vsel %vm1794_vm15, %v2549_v29, %v2551_v45  ;;  %v1367_v28 = vld.sshfl [vmem:[#allocation1] sm:$0xff pattern:$0x73625140]  ;;  %v1597_v41 = vmul.f32 %v3713_v46, %v3961_v63 }
 0x119   : > { %v1103_v26 = vrot.slane %v4118_v27, 2  ;;  %v1104_v42 = vrot.slane %v4118_v27, 4  ;;  %v1105_v50 = vrot.slane %v4118_v27, 6  ;;  %1374 = vst [vmem:[#allocation1 + $0x23] ss:$4 sm:$0xff] %v4118_v27  ;;  %v963_v56 = vmul.f32 %v3671_v58, %v921_v33 }
 0x11a   : > { %2851 = vmatmul.bf16.vlgmr.msra.gmra.mxu1 %v2779_v54  ;;  %v2601_v34 = vadd.f32 %v2550_v9, %v2447_v17  ;;  %v2602_v57 = vadd.f32 %v2552_v40, %v2448_v48  ;;  %vm1152_vm0 = vcmp.ge.s32.totalorder %v1138_v30, 1  ;;  %vm1162_vm1 = vcmp.le.s32.totalorder %v1138_v30, 16  ;;  %1369 = vst [vmem:[#allocation1] ss:$4 sm:$0xff] %v1032_v38 }
 0x11b   : > { %v988_v36 = vadd.f32 %v3678_v0, %v963_v56  ;;  %vm4135_vm2 = vmand %vm1152_vm0, %vm1162_vm1  ;;  %v1598_v10 = vmul.f32 %v3713_v46, %v3922_v6  ;;  %v1599_v25 = vmul.f32 %v3713_v46, %v4033_v22  ;;  %v1650_v3 = vrot.slane %v1597_v41, 1 }
 0x11c   : > { %v2652_v52 = vmul.f32 %v4002_v60, %v2601_v34  ;;  %v2653_v15 = vmul.f32 %v4002_v60, %v2602_v57  ;;  %vm1193_vm3 = vmand %vm4135_vm2, %vm1178_vm7  ;;  %v4151_v38 = vsel %vm4135_vm2, %v1368_v62, 0.0  ;;  %v1752_v44 = vmul.f32 %v3736_v55, %v3961_v63 }
 0x11d   : > { %v1011_v61 = vmax.f32 %v988_v36, 0.0  ;;  %v4155_v1 = vsel %vm1193_vm3, %v1367_v28, 0.0  ;;  %v1651_v2 = vrot.slane %v1598_v10, 1  ;;  %v1653_v47 = vrot.slane %v1599_v25, 1  ;;  %vm4169_vm4 = vmand %vm4135_vm2, %vm1213_vm13 }
 0x11e   : > { %v2669_v8 = vadd.f32 %v4007_v5, %v2652_v52  ;;  %v2670_v11 = vadd.f32 %v4007_v5, %v2653_v15  ;;  %v1753_v12 = vmul.f32 %v3736_v55, %v3922_v6  ;;  %v1754_v21 = vmul.f32 %v3736_v55, %v4033_v22 }
 0x11f   : > { %v4163_v62 = vmin.f32 %v1011_v61, 6.0  ;;  %v1652_v49 = vsel %vm1639_vm14, %v1650_v3, %v1651_v2  ;;  %v1654_v16 = vsel %vm1639_vm14, %v1651_v2, %v1653_v47  ;;  %v1805_v17 = vrot.slane %v1752_v44, 2 }
 0x120   : > { %v4175_v18 = vld.sshfl [vmem:[#allocation1 + $0x20] sm:$0xff pattern:$0x73625140]  ;;  %v924_v6 = vpop.f32.mrf.mxu2  ;;  %v2685_v24 = vmax.f32 %v2669_v8, 0.0  ;;  %v2686_v22 = vmax.f32 %v2670_v11, 0.0  ;;  %v1700_v48 = vadd.f32 %v1652_v49, %v1529_v14  ;;  %v1701_v29 = vadd.f32 %v1654_v16, %v1530_v31 }
 0x121   : > { %v1106_v45 = vrot.slane %v4163_v62, 2  ;;  %v1107_v27 = vrot.slane %v4163_v62, 4  ;;  %v1108_v30 = vrot.slane %v4163_v62, 6  ;;  %v964_v33 = vmul.f32 %v3671_v58, %v924_v6  ;;  %v1370_v54 = vld.sshfl [vmem:[#allocation1] sm:$0xff pattern:$0x73625140] }
 0x122   : > { %v2701_v9 = vmin.f32 %v2685_v24, 6.0  ;;  %v2702_v40 = vmin.f32 %v2686_v22, 6.0  ;;  %v4183_v28 = vsel %vm4169_vm4, %v1370_v54, 0.0  ;;  %v1806_v41 = vrot.slane %v1753_v12, 2  ;;  %1376 = vst [vmem:[#allocation1] ss:$4 sm:$0xff] %v1103_v26 }
 0x123   : > { %1380 = vst [vmem:[#allocation1 + $0x20] ss:$4 sm:$0xff] %v1106_v45  ;;  %v989_v14 = vadd.f32 %v3678_v0, %v964_v33  ;;  %v1808_v31 = vrot.slane %v1754_v21, 2  ;;  %v1905_v56 = vmul.f32 %v3783_v13, %v4035_v23  ;;  %v1906_v34 = vmul.f32 %v3783_v13, %v4088_v39 }
 0x124   : > { %v2717_v57 = vpack.c.bf16 %v2701_v9, %v2701_v9  ;;  %v2718_v36 = vpack.c.bf16 %v2702_v40, %v2702_v40  ;;  %v1807_v43 = vsel %vm1794_vm15, %v1805_v17, %v1806_v41  ;;  %v1973_v10 = vmul.f32 %v3764_v7, %v4035_v23  ;;  %1377 = vst [vmem:[#allocation1 + $0x1] ss:$4 sm:$0xff] %v1104_v42 }
 0x125   : > { %v1012_v25 = vmax.f32 %v989_v14, 0.0  ;;  %v1809_v26 = vsel %vm1794_vm15, %v1806_v41, %v1808_v31  ;;  %v1855_v3 = vadd.f32 %v1807_v43, %v1700_v48  ;;  %v1974_v52 = vmul.f32 %v3764_v7, %v4088_v39  ;;  %1378 = vst [vmem:[#allocation1 + $0x2] ss:$4 sm:$0xff] %v1105_v50 }
 0x126   : > { %v2765_v15 = vunpack.c.l.b16 %v2717_v57  ;;  %v2766_v44 = vunpack.c.l.b16 %v2718_v36  ;;  %v1856_v61 = vadd.f32 %v1809_v26, %v1701_v29  ;;  %v1975_v2 = vmul.f32 %v3764_v7, %v4079_v20  ;;  %1379 = vst [vmem:[#allocation1 + $0x3] ss:$4 sm:$0xff] %v4163_v62  ;;  %v4242_v62 = vld [vmem:[%s4926_s4] ss:$0 sm:$0xff] }
 0x127   : > { %v1035_v47 = vmin.f32 %v1012_v25, 6.0  ;;  %v1921_v8 = vadd.f32 %v1905_v56, %v1855_v3  ;;  %v2025_v11 = vrot.slane %v1973_v10, 1  ;;  %v2026_v42 = vrot.slane %v1974_v52, 1 }
 0x128   : > { %v926_v12 = vpop.f32.mrf.mxu2  ;;  %v2780_v21 = vpack.c.b16 %v2766_v44, %v2765_v15  ;;  %v1922_v63 = vadd.f32 %v1906_v34, %v1856_v61  ;;  %v2028_v49 = vrot.slane %v1975_v2, 1  ;;  %v2127_v16 = vmul.f32 %v3791_v19, %v4035_v23 }
 0x129   : > { %v1109_v50 = vrot.slane %v1035_v47, 2  ;;  %v1110_v17 = vrot.slane %v1035_v47, 4  ;;  %v1111_v6 = vrot.slane %v1035_v47, 6  ;;  %v965_v24 = vmul.f32 %v3671_v58, %v926_v12 }
 0x12a   : > { %v4202_v22 = vld.sshfl [vmem:[#allocation1 + $0x20] sm:$0xff pattern:$0x73625140]  ;;  %2856 = vmatmul.bf16.gmra.mxu1 %v2780_v21  ;;  %v2027_v7 = vsel %vm1639_vm14, %v2025_v11, %v2026_v42  ;;  %v2029_v48 = vsel %vm1639_vm14, %v2026_v42, %v2028_v49  ;;  %v2128_v29 = vmul.f32 %v3791_v19, %v4088_v39  ;;  %v2129_v45 = vmul.f32 %v3791_v19, %v4079_v20 }
 0x12b   : > { %1387 = vst [vmem:[#allocation1 + $0x20] ss:$4 sm:$0xff] %v1110_v17  ;;  %v990_v33 = vadd.f32 %v3678_v0, %v965_v24  ;;  %v2075_v54 = vadd.f32 %v2027_v7, %v1921_v8  ;;  %v2076_v9 = vadd.f32 %v2029_v48, %v1922_v63  ;;  %v2179_v40 = vrot.slane %v2127_v16, 2  ;;  %v4250_v17 = vld [vmem:[%s4926_s4 + $0x1] ss:$0 sm:$0xff] }
 0x12c   : > { %1388 = vst [vmem:[#allocation1 + $0x21] ss:$4 sm:$0xff] %v1111_v6  ;;  %v2180_v58 = vrot.slane %v2128_v29, 2  ;;  %v2182_v41 = vrot.slane %v2129_v45, 2  ;;  %v2279_v14 = vmul.f32 %v3883_v35, %v4155_v1  ;;  %v2280_v31 = vmul.f32 %v3883_v35, %v4151_v38 }
 0x12d   : > { %v1013_v56 = vmax.f32 %v990_v33, 0.0  ;;  %v2347_v34 = vmul.f32 %v3903_v53, %v4155_v1  ;;  %v2348_v57 = vmul.f32 %v3903_v53, %v4151_v38  ;;  %v2349_v0 = vmul.f32 %v3903_v53, %v4183_v28  ;;  %v1381_v36 = vld.sshfl [vmem:[#allocation1] sm:$0xff pattern:$0x73625140] }
 0x12e   : > { %v2181_v43 = vsel %vm1794_vm15, %v2179_v40, %v2180_v58  ;;  %v2183_v10 = vsel %vm1794_vm15, %v2180_v58, %v2182_v41  ;;  %v2501_v25 = vmul.f32 %v3917_v4, %v4155_v1  ;;  %v2502_v26 = vmul.f32 %v3917_v4, %v4151_v38  ;;  %1383 = vst [vmem:[#allocation1] ss:$4 sm:$0xff] %v1107_v27 }
 0x12f   : > { %v4229_v3 = vmin.f32 %v1013_v56, 6.0  ;;  %v2229_v52 = vadd.f32 %v2181_v43, %v2075_v54  ;;  %v2230_v15 = vadd.f32 %v2183_v10, %v2076_v9  ;;  %v2399_v44 = vrot.slane %v2347_v34, 1  ;;  %1384 = vst [vmem:[#allocation1 + $0x1] ss:$4 sm:$0xff] %v1108_v30 }
 0x130   : > { %v929_v61 = vpop.f32.mrf.mxu2  ;;  %v2400_v2 = vrot.slane %v2348_v57, 1  ;;  %v2402_v8 = vrot.slane %v2349_v0, 1  ;;  %v2503_v11 = vmul.f32 %v3917_v4, %v4183_v28  ;;  %v2553_v42 = vrot.slane %v2501_v25, 2  ;;  %1385 = vst [vmem:[#allocation1 + $0x2] ss:$4 sm:$0xff] %v1035_v47 }
 0x131   : > { %v1112_v12 = vrot.slane %v4229_v3, 2  ;;  %v1113_v27 = vrot.slane %v4229_v3, 4  ;;  %v1114_v21 = vrot.slane %v4229_v3, 6  ;;  %1389 = vst [vmem:[#allocation1 + $0x22] ss:$4 sm:$0xff] %v4229_v3  ;;  %v966_v30 = vmul.f32 %v4242_v62, %v929_v61 }
 0x132   : > { %v2295_v63 = vadd.f32 %v2279_v14, %v2229_v52  ;;  %v2296_v49 = vadd.f32 %v2280_v31, %v2230_v15  ;;  %v2401_v16 = vsel %vm1639_vm14, %v2399_v44, %v2400_v2  ;;  %v2403_v47 = vsel %vm1639_vm14, %v2400_v2, %v2402_v8  ;;  %1386 = vst [vmem:[#allocation1 + $0x3] ss:$4 sm:$0xff] %v1109_v50 }
 0x133   : > { %1390 = vst [vmem:[#allocation1 + $0x23] ss:$4 sm:$0xff] %v1112_v12  ;;  %v991_v6 = vadd.f32 %v4250_v17, %v966_v30  ;;  %v2554_v24 = vrot.slane %v2502_v26, 2  ;;  %v2556_v7 = vrot.slane %v2503_v11, 2  ;;  %v1139_v48 = vadd.s32 5, %v3691_v32 }
 0x134   : > { %v2449_v29 = vadd.f32 %v2401_v16, %v2295_v63  ;;  %v2450_v45 = vadd.f32 %v2403_v47, %v2296_v49  ;;  %v1531_v33 = vmul.f32 %v3742_v59, %v4035_v23  ;;  %v1532_v50 = vmul.f32 %v3742_v59, %v4088_v39 }
 0x135   : > { %v1014_v54 = vmax.f32 %v991_v6, 0.0  ;;  %v2555_v9 = vsel %vm1794_vm15, %v2553_v42, %v2554_v24  ;;  %v2557_v40 = vsel %vm1794_vm15, %v2554_v24, %v2556_v7  ;;  %vm1153_vm5 = vcmp.ge.s32.totalorder %v1139_v48, 1 }
 0x136   : > { %v2603_v58 = vadd.f32 %v2555_v9, %v2449_v29  ;;  %v2604_v41 = vadd.f32 %v2557_v40, %v2450_v45  ;;  %vm1163_vm6 = vcmp.le.s32.totalorder %v1139_v48, 16  ;;  %v1600_v14 = vmul.f32 %v3713_v46, %v4035_v23 }
 0x137   : > { %v4262_v31 = vmin.f32 %v1014_v54, 6.0  ;;  %vm1173_vm8 = vmand %vm1153_vm5, %vm1163_vm6  ;;  %v1601_v56 = vmul.f32 %v3713_v46, %v4088_v39  ;;  %v1602_v59 = vmul.f32 %v3713_v46, %v4079_v20  ;;  %v1755_v34 = vmul.f32 %v3736_v55, %v4035_v23 }
 0x138   : > { %v931_v57 = vpop.f32.mrf.mxu2  ;;  %v2654_v0 = vmul.f32 %v4002_v60, %v2603_v58  ;;  %v2655_v43 = vmul.f32 %v4002_v60, %v2604_v41  ;;  %vm1196_vm9 = vmand %vm1173_vm8, %vm1178_vm7  ;;  %v4274_v10 = vsel %vm1173_vm8, %v1381_v36, 0.0  ;;  %v1655_v25 = vrot.slane %v1600_v14, 1 }
 0x139   : > { %v1115_v26 = vrot.slane %v4262_v31, 2  ;;  %v1116_v52 = vrot.slane %v4262_v31, 4  ;;  %v1117_v46 = vrot.slane %v4262_v31, 6  ;;  %v967_v15 = vmul.f32 %v4242_v62, %v931_v57  ;;  %vm1231_vm10 = vmand %vm1173_vm8, %vm1213_vm13  ;;  %v4307_v41 = vld.sshfl [vmem:[#allocation1] sm:$0xff pattern:$0x73625140] }
 0x13a   : > { %v4282_v23 = vld.sshfl [vmem:[#allocation1 + $0x20] sm:$0xff pattern:$0x73625140]  ;;  %v2671_v44 = vadd.f32 %v4007_v5, %v2654_v0  ;;  %v2672_v61 = vadd.f32 %v4007_v5, %v2655_v43  ;;  %v4287_v36 = vsel %vm1196_vm9, %v4175_v18, 0.0  ;;  %v4290_v2 = vsel %vm1231_vm10, %v4202_v22, 0.0 }
 0x13b   : > { %1395 = vst [vmem:[#allocation1 + $0x20] ss:$4 sm:$0xff] %v1114_v21  ;;  %v992_v8 = vadd.f32 %v4250_v17, %v967_v15  ;;  %v1656_v11 = vrot.slane %v1601_v56, 1  ;;  %v1658_v42 = vrot.slane %v1602_v59, 1  ;;  %v1756_v12 = vmul.f32 %v3736_v55, %v4088_v39 }
 0x13c   : > { %1396 = vst [vmem:[#allocation1 + $0x21] ss:$4 sm:$0xff] %v4262_v31  ;;  %v2687_v30 = vmax.f32 %v2671_v44, 0.0  ;;  %v2688_v63 = vmax.f32 %v2672_v61, 0.0  ;;  %v1757_v49 = vmul.f32 %v3736_v55, %v4079_v20  ;;  %v1810_v18 = vrot.slane %v1755_v34, 2 }
 0x13d   : > { %1397 = vst [vmem:[#allocation1 + $0x22] ss:$4 sm:$0xff] %v1115_v26  ;;  %v1015_v16 = vmax.f32 %v992_v8, 0.0  ;;  %v1657_v22 = vsel %vm1639_vm14, %v1655_v25, %v1656_v11  ;;  %v1659_v21 = vsel %vm1639_vm14, %v1656_v11, %v1658_v42  ;;  %v1811_v47 = vrot.slane %v1756_v12, 2  ;;  %v4320_v25 = vld [vmem:[%s4924_s2 + $0x4] ss:$0 sm:$0xff] }
 0x13e   : > { %1398 = vst [vmem:[#allocation1 + $0x23] ss:$4 sm:$0xff] %v1116_v52  ;;  %v2703_v6 = vmin.f32 %v2687_v30, 6.0  ;;  %v2704_v24 = vmin.f32 %v2688_v63, 6.0  ;;  %v1702_v7 = vadd.f32 %v1657_v22, %v1531_v33  ;;  %v1703_v39 = vadd.f32 %v1659_v21, %v1532_v50  ;;  %v4333_v44 = vld [vmem:[%s4924_s2 + $0x5] ss:$0 sm:$0xff] }
 0x13f   : > { %v4300_v48 = vmin.f32 %v1015_v16, 6.0  ;;  %v1812_v29 = vsel %vm1794_vm15, %v1810_v18, %v1811_v47  ;;  %v1813_v45 = vrot.slane %v1757_v49, 2  ;;  %v1907_v55 = vmul.f32 %v3783_v13, %v4155_v1  ;;  %1393 = vst [vmem:[#allocation1] ss:$4 sm:$0xff] %v1113_v27 }
 0x140   : > { %v934_v20 = vpop.f32.mrf.mxu2  ;;  %v2719_v54 = vpack.c.bf16 %v2703_v6, %v2703_v6  ;;  %v2720_v9 = vpack.c.bf16 %v2704_v24, %v2704_v24  ;;  %v1857_v40 = vadd.f32 %v1812_v29, %v1702_v7  ;;  %v1908_v58 = vmul.f32 %v3783_v13, %v4151_v38 }
 0x141   : > { %v1118_v33 = vrot.slane %v4300_v48, 2  ;;  %v1119_v50 = vrot.slane %v4300_v48, 4  ;;  %v1120_v14 = vrot.slane %v4300_v48, 6  ;;  %v968_v56 = vmul.f32 %v4242_v62, %v934_v20 }
 0x142   : > { %v2767_v59 = vunpack.c.l.b16 %v2719_v54  ;;  %v2768_v34 = vunpack.c.l.b16 %v2720_v9  ;;  %v1814_v57 = vsel %vm1794_vm15, %v1811_v47, %v1813_v45  ;;  %v1923_v0 = vadd.f32 %v1907_v55, %v1857_v40 }
 0x143   : > { %v993_v13 = vadd.f32 %v4250_v17, %v968_v56  ;;  %v1858_v43 = vadd.f32 %v1814_v57, %v1703_v39  ;;  %v1976_v26 = vmul.f32 %v4320_v25, %v4155_v1  ;;  %v1977_v3 = vmul.f32 %v4320_v25, %v4151_v38 }
 0x144   : > { %v2781_v27 = vpack.c.b16 %v2768_v34, %v2767_v59  ;;  %v1978_v52 = vmul.f32 %v4320_v25, %v4183_v28  ;;  %v2130_v15 = vmul.f32 %v3791_v19, %v4155_v1  ;;  %v2131_v61 = vmul.f32 %v4333_v44, %v4151_v38 }
 0x145   : > { %v1016_v8 = vmax.f32 %v993_v13, 0.0  ;;  %v1924_v11 = vadd.f32 %v1908_v58, %v1858_v43  ;;  %v2030_v42 = vrot.slane %v1976_v26, 1  ;;  %v2031_v12 = vrot.slane %v1977_v3, 1 }
 0x146   : > { %2861 = vmatmul.bf16.gmra.mxu1 %v2781_v27  ;;  %v2033_v30 = vrot.slane %v1978_v52, 1  ;;  %v2132_v63 = vmul.f32 %v4333_v44, %v4183_v28  ;;  %v2184_v49 = vrot.slane %v2130_v15, 2  ;;  %v2185_v18 = vrot.slane %v2131_v61, 2  ;;  %v4348_v29 = vld.sshfl [vmem:[#allocation1] sm:$0xff pattern:$0x73625140] }
 0x147   : > { %v4339_v19 = vmin.f32 %v1016_v8, 6.0  ;;  %v2032_v16 = vsel %vm1639_vm14, %v2030_v42, %v2031_v12  ;;  %v2281_v22 = vmul.f32 %v3883_v35, %v4287_v36  ;;  %v2282_v21 = vmul.f32 %v3883_v35, %v4274_v10  ;;  %1400 = vst [vmem:[#allocation1] ss:$4 sm:$0xff] %v1117_v46 }
 0x148   : > { %v936_v47 = vpop.f32.mrf.mxu2  ;;  %v2034_v6 = vsel %vm1639_vm14, %v2031_v12, %v2033_v30  ;;  %v2077_v24 = vadd.f32 %v2032_v16, %v1923_v0  ;;  %v2186_v7 = vsel %vm1794_vm15, %v2184_v49, %v2185_v18  ;;  %v2187_v39 = vrot.slane %v2132_v63, 2  ;;  %1401 = vst [vmem:[#allocation1 + $0x1] ss:$4 sm:$0xff] %v4300_v48 }
 0x149   : > { %v1121_v45 = vrot.slane %v4339_v19, 2  ;;  %v1122_v55 = vrot.slane %v4339_v19, 4  ;;  %v1123_v20 = vrot.slane %v4339_v19, 6  ;;  %v969_v54 = vmul.f32 %v4242_v62, %v936_v47  ;;  %1402 = vst [vmem:[#allocation1 + $0x2] ss:$4 sm:$0xff] %v1118_v33 }
 0x14a   : > { %v2078_v35 = vadd.f32 %v2034_v6, %v1924_v11  ;;  %v2188_v9 = vsel %vm1794_vm15, %v2185_v18, %v2187_v39  ;;  %v2231_v40 = vadd.f32 %v2186_v7, %v2077_v24  ;;  %v2350_v58 = vmul.f32 %v3903_v53, %v4287_v36  ;;  %1403 = vst [vmem:[#allocation1 + $0x3] ss:$4 sm:$0xff] %v1119_v50 }
 0x14b   : > { %v994_v56 = vadd.f32 %v4250_v17, %v969_v54  ;;  %v939_v59 = vpop.f32.mrf.mxu3  ;;  %v2351_v34 = vmul.f32 %v3903_v53, %v4274_v10  ;;  %v2352_v57 = vmul.f32 %v3903_v53, %v4290_v2  ;;  %v2504_v31 = vmul.f32 %v3917_v4, %v4287_v36  ;;  %v4388_v54 = vld [vmem:[%s4924_s2] ss:$0 sm:$0xff] }
 0x14c   : > { %v970_v46 = vmul.f32 %v4242_v62, %v939_v59  ;;  %v2232_v0 = vadd.f32 %v2188_v9, %v2078_v35  ;;  %v2297_v13 = vadd.f32 %v2281_v22, %v2231_v40  ;;  %v2404_v43 = vrot.slane %v2350_v58, 1  ;;  %v4397_v40 = vld [vmem:[%s4924_s2 + $0x1] ss:$0 sm:$0xff] }
 0x14d   : > { %v1017_v26 = vmax.f32 %v994_v56, 0.0  ;;  %v2405_v3 = vrot.slane %v2351_v34, 1  ;;  %v2407_v27 = vrot.slane %v2352_v57, 1  ;;  %v2505_v52 = vmul.f32 %v3917_v4, %v4274_v10 }
 0x14e   : > { %v995_v15 = vadd.f32 %v4250_v17, %v970_v46  ;;  %v2298_v61 = vadd.f32 %v2282_v21, %v2232_v0  ;;  %v2506_v53 = vmul.f32 %v3917_v4, %v4290_v2  ;;  %v2558_v8 = vrot.slane %v2504_v31, 2 }
 0x14f   : > { %v4373_v33 = vmin.f32 %v1017_v26, 6.0  ;;  %v2406_v11 = vsel %vm1639_vm14, %v2404_v43, %v2405_v3  ;;  %v2408_v42 = vsel %vm1639_vm14, %v2405_v3, %v2407_v27  ;;  %v2559_v50 = vrot.slane %v2505_v52, 2  ;;  %v4422_v52 = vld [vmem:[%s4924_s2 + $0x2] ss:$0 sm:$0xff] }
 0x150   : > { %v1018_v12 = vmax.f32 %v995_v15, 0.0  ;;  %v2451_v30 = vadd.f32 %v2406_v11, %v2297_v13  ;;  %v2452_v63 = vadd.f32 %v2408_v42, %v2298_v61  ;;  %v2561_v49 = vrot.slane %v2506_v53, 2 }
 0x151   : > { %v1124_v18 = vrot.slane %v4373_v33, 2  ;;  %v1125_v16 = vrot.slane %v4373_v33, 4  ;;  %v1126_v22 = vrot.slane %v4373_v33, 6  ;;  %v2560_v4 = vsel %vm1794_vm15, %v2558_v8, %v2559_v50 }
 0x152   : > { %v4381_v21 = vmin.f32 %v1018_v12, 6.0  ;;  %v2562_v47 = vsel %vm1794_vm15, %v2559_v50, %v2561_v49  ;;  %v2605_v6 = vadd.f32 %v2560_v4, %v2451_v30  ;;  %v1140_v24 = vadd.s32 6, %v3691_v32  ;;  %v4436_v12 = vld.sshfl [vmem:[#allocation1 + $0x20] sm:$0xff pattern:$0x73625140] }
 0x153   : > { %v941_v7 = vpop.f32.mrf.mxu3  ;;  %v2606_v39 = vadd.f32 %v2562_v47, %v2452_v63  ;;  %v1533_v35 = vmul.f32 %v4388_v54, %v4155_v1  ;;  %v1534_v9 = vmul.f32 %v4388_v54, %v4151_v38  ;;  %v1603_v58 = vmul.f32 %v4397_v40, %v4155_v1  ;;  %1404 = vst [vmem:[#allocation1 + $0x20] ss:$4 sm:$0xff] %v1120_v14 }
 0x154   : > { %v1127_v56 = vrot.slane %v4381_v21, 2  ;;  %v1128_v59 = vrot.slane %v4381_v21, 4  ;;  %v1129_v34 = vrot.slane %v4381_v21, 6  ;;  %v971_v57 = vmul.f32 %v4242_v62, %v941_v7 }
 0x155   : > { %v2656_v31 = vmul.f32 %v4002_v60, %v2605_v6  ;;  %v2657_v46 = vmul.f32 %v4002_v60, %v2606_v39  ;;  %vm1154_vm11 = vcmp.ge.s32.totalorder %v1140_v24, 1  ;;  %vm1164_vm12 = vcmp.le.s32.totalorder %v1140_v24, 16 }
 0x156   : > { %v996_v0 = vadd.f32 %v4250_v17, %v971_v57  ;;  %vm1174_vm0 = vmand %vm1154_vm11, %vm1164_vm12  ;;  %v1604_v13 = vmul.f32 %v4397_v40, %v4151_v38  ;;  %v1605_v43 = vmul.f32 %v4397_v40, %v4183_v28  ;;  %v1660_v26 = vrot.slane %v1603_v58, 1 }
 0x157   : > { %v2673_v3 = vadd.f32 %v4007_v5, %v2656_v31  ;;  %v2674_v27 = vadd.f32 %v4007_v5, %v2657_v46  ;;  %vm1199_vm1 = vmand %vm1174_vm0, %vm1178_vm7  ;;  %v4417_v60 = vsel %vm1174_vm0, %v4282_v23, 0.0  ;;  %v1758_v15 = vmul.f32 %v4422_v52, %v4155_v1 }
 0x158   : > { %v1019_v61 = vmax.f32 %v996_v0, 0.0  ;;  %vm1234_vm2 = vmand %vm1174_vm0, %vm1213_vm13  ;;  %v4429_v5 = vsel %vm1199_vm1, %v4307_v41, 0.0  ;;  %v1661_v53 = vrot.slane %v1604_v13, 1  ;;  %v1663_v8 = vrot.slane %v1605_v43, 1 }
 0x159   : > { %v2689_v11 = vmax.f32 %v2673_v3, 0.0  ;;  %v2690_v23 = vmax.f32 %v2674_v27, 0.0  ;;  %v4432_v42 = vsel %vm1234_vm2, %v4348_v29, 0.0  ;;  %v1759_v50 = vmul.f32 %v4422_v52, %v4151_v38  ;;  %v4460_v0 = vld.sshfl [vmem:[#allocation1] sm:$0xff pattern:$0x73625140] }
 0x15a   : > { %v4438_v1 = vmin.f32 %v1019_v61, 6.0  ;;  %v1662_v30 = vsel %vm1639_vm14, %v1660_v26, %v1661_v53  ;;  %v1664_v63 = vsel %vm1639_vm14, %v1661_v53, %v1663_v8  ;;  %v1760_v41 = vmul.f32 %v4422_v52, %v4183_v28  ;;  %1407 = vst [vmem:[#allocation1] ss:$4 sm:$0xff] %v4339_v19  ;;  %v4493_v19 = vld [vmem:[%s4924_s2 + $0x6] ss:$0 sm:$0xff] }
 0x15b   : > { %v944_v49 = vpop.f32.mrf.mxu3  ;;  %v2705_v29 = vmin.f32 %v2689_v11, 6.0  ;;  %v2706_v4 = vmin.f32 %v2690_v23, 6.0  ;;  %v1704_v47 = vadd.f32 %v1662_v30, %v1533_v35  ;;  %v1705_v6 = vadd.f32 %v1664_v63, %v1534_v9  ;;  %v4454_v35 = vld [vmem:[%s4924_s2 + $0x3] ss:$0 sm:$0xff]  ;;  %1408 = vst [vmem:[#allocation1 + $0x1] ss:$4 sm:$0xff] %v1121_v45 }
 0x15c   : > { %v1130_v38 = vrot.slane %v4438_v1, 2  ;;  %v1131_v24 = vrot.slane %v4438_v1, 4  ;;  %v1132_v7 = vrot.slane %v4438_v1, 6  ;;  %v972_v39 = vmul.f32 %v4242_v62, %v944_v49  ;;  %v4473_v23 = vld.sshfl [vmem:[#allocation1 + $0x20] sm:$0xff pattern:$0x73625140] }
 0x15d   : > { %v2721_v58 = vpack.c.bf16 %v2705_v29, %v2705_v29  ;;  %v2722_v57 = vpack.c.bf16 %v2706_v4, %v2706_v4  ;;  %v1815_v31 = vrot.slane %v1758_v15, 2  ;;  %v1816_v28 = vrot.slane %v1759_v50, 2  ;;  %1409 = vst [vmem:[#allocation1 + $0x2] ss:$4 sm:$0xff] %v1122_v55 }
 0x15e   : > { %v997_v48 = vadd.f32 %v4250_v17, %v972_v39  ;;  %v1818_v14 = vrot.slane %v1760_v41, 2  ;;  %v1909_v9 = vmul.f32 %v4454_v35, %v4287_v36  ;;  %v1910_v46 = vmul.f32 %v4454_v35, %v4274_v10  ;;  %1410 = vst [vmem:[#allocation1 + $0x3] ss:$4 sm:$0xff] %v1123_v20 }
 0x15f   : > { %v2769_v62 = vunpack.c.l.b16 %v2721_v58  ;;  %v2770_v13 = vunpack.c.l.b16 %v2722_v57  ;;  %v1817_v43 = vsel %vm1794_vm15, %v1815_v31, %v1816_v28  ;;  %v1979_v17 = vmul.f32 %v4320_v25, %v4287_v36  ;;  %1411 = vst [vmem:[#allocation1 + $0x20] ss:$4 sm:$0xff] %v4373_v33 }
 0x160   : > { %v1020_v26 = vmax.f32 %v997_v48, 0.0  ;;  %v1819_v3 = vsel %vm1794_vm15, %v1816_v28, %v1818_v14  ;;  %v1859_v27 = vadd.f32 %v1817_v43, %v1704_v47  ;;  %v1980_v15 = vmul.f32 %v4320_v25, %v4274_v10  ;;  %1412 = vst [vmem:[#allocation1 + $0x21] ss:$4 sm:$0xff] %v1124_v18  ;;  %v4522_v43 = vld [vmem:[%s4924_s2 + $0x8] ss:$0 sm:$0xff] }
 0x161   : > { %v2782_v61 = vpack.c.b16 %v2770_v13, %v2769_v62  ;;  %v1860_v53 = vadd.f32 %v1819_v3, %v1705_v6  ;;  %v1981_v8 = vmul.f32 %v4320_v25, %v4290_v2  ;;  %v2035_v11 = vrot.slane %v1979_v17, 1  ;;  %1413 = vst [vmem:[#allocation1 + $0x22] ss:$4 sm:$0xff] %v1125_v16 }
 0x162   : > { %v4477_v50 = vmin.f32 %v1020_v26, 6.0  ;;  %v1925_v30 = vadd.f32 %v1909_v9, %v1859_v27  ;;  %v2036_v63 = vrot.slane %v1980_v15, 1  ;;  %v2133_v41 = vmul.f32 %v4333_v44, %v4287_v36  ;;  %v4507_v9 = vld [vmem:[%s4924_s2 + $0x7] ss:$0 sm:$0xff]  ;;  %1414 = vst [vmem:[#allocation1 + $0x23] ss:$4 sm:$0xff] %v1126_v22 }
 0x163   : > { %2866 = vmatmul.bf16.gmra.mxu1 %v2782_v61  ;;  %v946_v45 = vpop.f32.mrf.mxu3  ;;  %v1926_v49 = vadd.f32 %v1910_v46, %v1860_v53  ;;  %v2038_v29 = vrot.slane %v1981_v8, 1  ;;  %v2134_v4 = vmul.f32 %v4333_v44, %v4274_v10  ;;  %v2135_v55 = vmul.f32 %v4333_v44, %v4290_v2 }
 0x164   : > { %v1133_v47 = vrot.slane %v4477_v50, 2  ;;  %v2037_v6 = vsel %vm1639_vm14, %v2035_v11, %v2036_v63  ;;  %v2189_v39 = vrot.slane %v2133_v41, 2  ;;  %v2283_v20 = vmul.f32 %v4493_v19, %v4429_v5 }
 0x165   : > { %v2039_v58 = vsel %vm1639_vm14, %v2036_v63, %v2038_v29  ;;  %v2079_v57 = vadd.f32 %v2037_v6, %v1925_v30  ;;  %v2190_v31 = vrot.slane %v2134_v4, 2  ;;  %v2192_v28 = vrot.slane %v2135_v55, 2 }
 0x166   : > { %v2080_v48 = vadd.f32 %v2039_v58, %v1926_v49  ;;  %v2284_v14 = vmul.f32 %v4493_v19, %v4417_v60  ;;  %v2353_v18 = vmul.f32 %v4507_v9, %v4429_v5  ;;  %v2354_v46 = vmul.f32 %v4507_v9, %v4417_v60 }
 0x167   : > { %v2191_v16 = vsel %vm1794_vm15, %v2189_v39, %v2190_v31  ;;  %v2193_v62 = vsel %vm1794_vm15, %v2190_v31, %v2192_v28  ;;  %v2355_v13 = vmul.f32 %v4507_v9, %v4432_v42  ;;  %v2507_v17 = vmul.f32 %v4522_v43, %v4429_v5 }
 0x168   : > { %v2233_v26 = vadd.f32 %v2191_v16, %v2079_v57  ;;  %v2234_v3 = vadd.f32 %v2193_v62, %v2080_v48  ;;  %v2409_v27 = vrot.slane %v2353_v18, 1  ;;  %v2410_v33 = vrot.slane %v2354_v46, 1 }
 0x169   : > { %v2412_v22 = vrot.slane %v2355_v13, 1  ;;  %v2508_v15 = vmul.f32 %v4522_v43, %v4417_v60  ;;  %v2509_v61 = vmul.f32 %v4522_v43, %v4432_v42  ;;  %v2563_v53 = vrot.slane %v2507_v17, 2 }
 0x16a   : > { %v2299_v8 = vadd.f32 %v2283_v20, %v2233_v26  ;;  %v2300_v11 = vadd.f32 %v2284_v14, %v2234_v3  ;;  %v2411_v30 = vsel %vm1639_vm14, %v2409_v27, %v2410_v33  ;;  %v1141_v63 = vadd.s32 7, %v3691_v32 }
 0x16b   : > { %v2413_v41 = vsel %vm1639_vm14, %v2410_v33, %v2412_v22  ;;  %v2564_v45 = vrot.slane %v2508_v15, 2  ;;  %v2566_v49 = vrot.slane %v2509_v61, 2  ;;  %v1535_v29 = vmul.f32 %v4388_v54, %v4287_v36  ;;  %v4574_v33 = vld [vmem:[%s4926_s4 + $0x3] ss:$0 sm:$0xff] }
 0x16c   : > { %v2453_v4 = vadd.f32 %v2411_v30, %v2299_v8  ;;  %v2454_v55 = vadd.f32 %v2413_v41, %v2300_v11  ;;  %vm1155_vm3 = vcmp.ge.s32.totalorder %v1141_v63, 1  ;;  %vm1165_vm4 = vcmp.le.s32.totalorder %v1141_v63, 16 }
 0x16d   : > { %v2565_v6 = vsel %vm1794_vm15, %v2563_v53, %v2564_v45  ;;  %v2567_v39 = vsel %vm1794_vm15, %v2564_v45, %v2566_v49  ;;  %vm1175_vm5 = vmand %vm1155_vm3, %vm1165_vm4  ;;  %v1536_v20 = vmul.f32 %v4388_v54, %v4274_v10  ;;  %v1606_v58 = vmul.f32 %v4397_v40, %v4287_v36  ;;  %v4584_v45 = vld.sshfl [vmem:[#allocation1] sm:$0xff pattern:$0x73625140] }
 0x16e   : > { %v2607_v57 = vadd.f32 %v2565_v6, %v2453_v4  ;;  %v2608_v31 = vadd.f32 %v2567_v39, %v2454_v55  ;;  %vm1202_vm6 = vmand %vm1175_vm5, %vm1178_vm7  ;;  %v4544_v28 = vsel %vm1175_vm5, %v4460_v0, 0.0  ;;  %v1607_v48 = vmul.f32 %v4397_v40, %v4274_v10  ;;  %v4560_v0 = vld [vmem:[%s4926_s4 + $0x2] ss:$0 sm:$0xff]  ;;  %1417 = vst [vmem:[#allocation1] ss:$4 sm:$0xff] %v4381_v21 }
 0x16f   : > { %vm1237_vm8 = vmand %vm1175_vm5, %vm1213_vm13  ;;  %v4551_v14 = vsel %vm1202_vm6, %v4436_v12, 0.0  ;;  %v1608_v18 = vmul.f32 %v4397_v40, %v4290_v2  ;;  %v1665_v46 = vrot.slane %v1606_v58, 1  ;;  %v1761_v16 = vmul.f32 %v4422_v52, %v4287_v36  ;;  %v4592_v6 = vld.sshfl [vmem:[#allocation1 + $0x20] sm:$0xff pattern:$0x73625140] }
 0x170   : > { %v2658_v62 = vmul.f32 %v4560_v0, %v2607_v57  ;;  %v2659_v13 = vmul.f32 %v4560_v0, %v2608_v31  ;;  %v4565_v17 = vsel %vm1237_vm8, %v4473_v23, 0.0  ;;  %v1666_v12 = vrot.slane %v1607_v48, 1  ;;  %1419 = vst [vmem:[#allocation1 + $0x20] ss:$4 sm:$0xff] %v1127_v56 }
 0x171   : > { %v1668_v26 = vrot.slane %v1608_v18, 1  ;;  %v1762_v3 = vmul.f32 %v4422_v52, %v4274_v10  ;;  %v1763_v36 = vmul.f32 %v4422_v52, %v4290_v2  ;;  %v1820_v27 = vrot.slane %v1761_v16, 2  ;;  %1420 = vst [vmem:[#allocation1 + $0x21] ss:$4 sm:$0xff] %v1128_v59 }
 0x172   : > { %v2675_v22 = vadd.f32 %v4574_v33, %v2658_v62  ;;  %v2676_v15 = vadd.f32 %v4574_v33, %v2659_v13  ;;  %v1667_v23 = vsel %vm1639_vm14, %v1665_v46, %v1666_v12  ;;  %v1911_v61 = vmul.f32 %v4454_v35, %v4429_v5  ;;  %1421 = vst [vmem:[#allocation1 + $0x22] ss:$4 sm:$0xff] %v1129_v34 }
 0x173   : > { %v1669_v10 = vsel %vm1639_vm14, %v1666_v12, %v1668_v26  ;;  %v1706_v53 = vadd.f32 %v1667_v23, %v1535_v29  ;;  %v1821_v8 = vrot.slane %v1762_v3, 2  ;;  %v1823_v2 = vrot.slane %v1763_v36, 2  ;;  %1422 = vst [vmem:[#allocation1 + $0x23] ss:$4 sm:$0xff] %v4438_v1 }
 0x174   : > { %v2691_v11 = vmax.f32 %v2675_v22, 0.0  ;;  %v2692_v30 = vmax.f32 %v2676_v15, 0.0  ;;  %v1707_v63 = vadd.f32 %v1669_v10, %v1536_v20  ;;  %v1912_v41 = vmul.f32 %v4454_v35, %v4417_v60 }
 0x175   : > { %v1822_v49 = vsel %vm1794_vm15, %v1820_v27, %v1821_v8  ;;  %v1824_v4 = vsel %vm1794_vm15, %v1821_v8, %v1823_v2  ;;  %v1982_v55 = vmul.f32 %v4320_v25, %v4429_v5  ;;  %v1983_v29 = vmul.f32 %v4320_v25, %v4417_v60 }
 0x176   : > { %v2707_v39 = vmin.f32 %v2691_v11, 6.0  ;;  %v2708_v20 = vmin.f32 %v2692_v30, 6.0  ;;  %v1861_v58 = vadd.f32 %v1822_v49, %v1706_v53  ;;  %v1862_v57 = vadd.f32 %v1824_v4, %v1707_v63  ;;  %v1418_v11 = vld.sshfl [vmem:[#allocation1] sm:$0xff pattern:$0x73625140] }
 0x177   : > { %v1984_v31 = vmul.f32 %v4320_v25, %v4432_v42  ;;  %v2040_v48 = vrot.slane %v1982_v55, 1  ;;  %v2041_v18 = vrot.slane %v1983_v29, 1  ;;  %v2136_v46 = vmul.f32 %v4333_v44, %v4429_v5  ;;  %1424 = vst [vmem:[#allocation1] ss:$4 sm:$0xff] %v1130_v38 }
 0x178   : > { %v2723_v16 = vpack.c.bf16 %v2707_v39, %v2707_v39  ;;  %v2724_v62 = vpack.c.bf16 %v2708_v20, %v2708_v20  ;;  %v1927_v13 = vadd.f32 %v1911_v61, %v1861_v58  ;;  %v1928_v12 = vadd.f32 %v1912_v41, %v1862_v57  ;;  %1425 = vst [vmem:[#allocation1 + $0x1] ss:$4 sm:$0xff] %v1131_v24 }
 0x179   : > { %v2042_v56 = vsel %vm1639_vm14, %v2040_v48, %v2041_v18  ;;  %v2043_v26 = vrot.slane %v1984_v31, 1  ;;  %v2137_v3 = vmul.f32 %v4333_v44, %v4417_v60  ;;  %v2138_v36 = vmul.f32 %v4333_v44, %v4432_v42  ;;  %1426 = vst [vmem:[#allocation1 + $0x2] ss:$4 sm:$0xff] %v1132_v7 }
 0x17a   : > { %v2771_v27 = vunpack.c.l.b16 %v2723_v16  ;;  %v2772_v59 = vunpack.c.l.b16 %v2724_v62  ;;  %v2081_v22 = vadd.f32 %v2042_v56, %v1927_v13  ;;  %v2194_v15 = vrot.slane %v2136_v46, 2  ;;  %1427 = vst [vmem:[#allocation1 + $0x3] ss:$4 sm:$0xff] %v4477_v50 }
 0x17b   : > { %v2044_v23 = vsel %vm1639_vm14, %v2041_v18, %v2043_v26  ;;  %v2195_v61 = vrot.slane %v2137_v3, 2  ;;  %v2197_v21 = vrot.slane %v2138_v36, 2  ;;  %v2285_v34 = vmul.f32 %v4493_v19, %v4551_v14 }
 0x17c   : > { %v2783_v10 = vpack.c.b16 %v2772_v59, %v2771_v27  ;;  %v2082_v53 = vadd.f32 %v2044_v23, %v1928_v12  ;;  %v2286_v8 = vmul.f32 %v4493_v19, %v4544_v28  ;;  %v2356_v2 = vmul.f32 %v4507_v9, %v4551_v14 }
 0x17d   : > { %v2196_v30 = vsel %vm1794_vm15, %v2194_v15, %v2195_v61  ;;  %v2198_v63 = vsel %vm1794_vm15, %v2195_v61, %v2197_v21  ;;  %v2357_v41 = vmul.f32 %v4507_v9, %v4544_v28  ;;  %v2358_v49 = vmul.f32 %v4507_v9, %v4565_v17 }
 0x17e   : > { %2871 = vmatmul.bf16.gmra.mxu1 %v2783_v10  ;;  %v2235_v4 = vadd.f32 %v2196_v30, %v2081_v22  ;;  %v2236_v55 = vadd.f32 %v2198_v63, %v2082_v53  ;;  %v2414_v29 = vrot.slane %v2356_v2, 1  ;;  %v2510_v39 = vmul.f32 %v4522_v43, %v4551_v14 }
 0x17f   : > { %v2415_v20 = vrot.slane %v2357_v41, 1  ;;  %v2417_v58 = vrot.slane %v2358_v49, 1  ;;  %v2511_v57 = vmul.f32 %v4522_v43, %v4544_v28  ;;  %v2512_v31 = vmul.f32 %v4522_v43, %v4565_v17 }
 0x180   : > { %v2301_v38 = vadd.f32 %v2285_v34, %v2235_v4  ;;  %v2302_v48 = vadd.f32 %v2286_v8, %v2236_v55  ;;  %v2568_v18 = vrot.slane %v2510_v39, 2  ;;  %v1142_v46 = vadd.s32 8, %v3691_v32 }
 0x181   : > { %v2416_v24 = vsel %vm1639_vm14, %v2414_v29, %v2415_v20  ;;  %v2418_v16 = vsel %vm1639_vm14, %v2415_v20, %v2417_v58  ;;  %v2569_v62 = vrot.slane %v2511_v57, 2  ;;  %v2571_v13 = vrot.slane %v2512_v31, 2 }
 0x182   : > { %v2455_v12 = vadd.f32 %v2416_v24, %v2301_v38  ;;  %v2456_v56 = vadd.f32 %v2418_v16, %v2302_v48  ;;  %vm1156_vm9 = vcmp.ge.s32.totalorder %v1142_v46, 1  ;;  %vm1166_vm10 = vcmp.le.s32.totalorder %v1142_v46, 16 }
 0x183   : > { %v2570_v1 = vsel %vm1794_vm15, %v2568_v18, %v2569_v62  ;;  %v2572_v7 = vsel %vm1794_vm15, %v2569_v62, %v2571_v13  ;;  %vm1176_vm11 = vmand %vm1156_vm9, %vm1166_vm10  ;;  %v1537_v26 = vmul.f32 %v4388_v54, %v4429_v5  ;;  %v1538_v3 = vmul.f32 %v4388_v54, %v4417_v60 }
 0x184   : > { %v2609_v36 = vadd.f32 %v2570_v1, %v2455_v12  ;;  %v2610_v27 = vadd.f32 %v2572_v7, %v2456_v56  ;;  %vm1205_vm12 = vmand %vm1176_vm11, %vm1178_vm7  ;;  %v4649_v59 = vsel %vm1176_vm11, %v4592_v6, 0.0  ;;  %v1609_v22 = vmul.f32 %v4397_v40, %v4429_v5  ;;  %v4664_v6 = vld.sshfl [vmem:[#allocation1 + $0x20] sm:$0xff pattern:$0x73625140] }
 0x185   : > { %vm1240_vm0 = vmand %vm1176_vm11, %vm1213_vm13  ;;  %v4656_v15 = vsel %vm1205_vm12, %v4584_v45, 0.0  ;;  %v1610_v23 = vmul.f32 %v4397_v40, %v4417_v60  ;;  %v1611_v61 = vmul.f32 %v4397_v40, %v4432_v42  ;;  %v1764_v21 = vmul.f32 %v4422_v52, %v4429_v5  ;;  %1428 = vst [vmem:[#allocation1 + $0x20] ss:$4 sm:$0xff] %v1133_v47 }
 0x186   : > { %v2660_v34 = vmul.f32 %v4560_v0, %v2609_v36  ;;  %v2661_v10 = vmul.f32 %v4560_v0, %v2610_v27  ;;  %v4668_v53 = vsel %vm1240_vm0, %v1418_v11, 0.0  ;;  %v1670_v8 = vrot.slane %v1609_v22, 1 }
 0x187   : > { %v1671_v45 = vrot.slane %v1610_v23, 1  ;;  %v1673_v2 = vrot.slane %v1611_v61, 1  ;;  %v1765_v30 = vmul.f32 %v4422_v52, %v4417_v60  ;;  %v1766_v5 = vmul.f32 %v4422_v52, %v4432_v42 }
 0x188   : > { %v2677_v63 = vadd.f32 %v4574_v33, %v2660_v34  ;;  %v2678_v41 = vadd.f32 %v4574_v33, %v2661_v10  ;;  %v1825_v49 = vrot.slane %v1764_v21, 2  ;;  %v1913_v11 = vmul.f32 %v4454_v35, %v4551_v14 }
 0x189   : > { %v1672_v4 = vsel %vm1639_vm14, %v1670_v8, %v1671_v45  ;;  %v1674_v50 = vsel %vm1639_vm14, %v1671_v45, %v1673_v2  ;;  %v1826_v47 = vrot.slane %v1765_v30, 2  ;;  %v1828_v55 = vrot.slane %v1766_v5, 2 }
 0x18a   : > { %v2693_v29 = vmax.f32 %v2677_v63, 0.0  ;;  %v2694_v39 = vmax.f32 %v2678_v41, 0.0  ;;  %v1708_v60 = vadd.f32 %v1672_v4, %v1537_v26  ;;  %v1709_v20 = vadd.f32 %v1674_v50, %v1538_v3 }
 0x18b   : > { %v1827_v42 = vsel %vm1794_vm15, %v1825_v49, %v1826_v47  ;;  %v1829_v58 = vsel %vm1794_vm15, %v1826_v47, %v1828_v55  ;;  %v1914_v57 = vmul.f32 %v4454_v35, %v4544_v28  ;;  %v1985_v31 = vmul.f32 %v4320_v25, %v4551_v14 }
 0x18c   : > { %v2709_v38 = vmin.f32 %v2693_v29, 6.0  ;;  %v2710_v48 = vmin.f32 %v2694_v39, 6.0  ;;  %v1863_v18 = vadd.f32 %v1827_v42, %v1708_v60  ;;  %v1864_v46 = vadd.f32 %v1829_v58, %v1709_v20 }
 0x18d   : > { %v1986_v24 = vmul.f32 %v4320_v25, %v4544_v28  ;;  %v1987_v16 = vmul.f32 %v4320_v25, %v4565_v17  ;;  %v2045_v62 = vrot.slane %v1985_v31, 1  ;;  %v2139_v13 = vmul.f32 %v4333_v44, %v4551_v14 }
 0x18e   : > { %v2725_v12 = vpack.c.bf16 %v2709_v38, %v2709_v38  ;;  %v2726_v56 = vpack.c.bf16 %v2710_v48, %v2710_v48  ;;  %v1929_v1 = vadd.f32 %v1913_v11, %v1863_v18  ;;  %v1930_v7 = vadd.f32 %v1914_v57, %v1864_v46 }
 0x18f   : > { %v2046_v26 = vrot.slane %v1986_v24, 1  ;;  %v2048_v3 = vrot.slane %v1987_v16, 1  ;;  %v2140_v36 = vmul.f32 %v4333_v44, %v4544_v28  ;;  %v2141_v27 = vmul.f32 %v4333_v44, %v4565_v17 }
 0x190   : > { %v2773_v22 = vunpack.c.l.b16 %v2725_v12  ;;  %v2774_v23 = vunpack.c.l.b16 %v2726_v56  ;;  %v2199_v61 = vrot.slane %v2139_v13, 2  ;;  %v2287_v21 = vmul.f32 %v4493_v19, %v4656_v15 }
 0x191   : > { %v2047_v34 = vsel %vm1639_vm14, %v2045_v62, %v2046_v26  ;;  %v2049_v10 = vsel %vm1639_vm14, %v2046_v26, %v2048_v3  ;;  %v2200_v8 = vrot.slane %v2140_v36, 2  ;;  %v2202_v45 = vrot.slane %v2141_v27, 2  ;;  %v1429_v26 = vld.sshfl [vmem:[#allocation1] sm:$0xff pattern:$0x73625140] }
 0x192   : > { %v2784_v2 = vpack.c.b16 %v2774_v23, %v2773_v22  ;;  %v2083_v30 = vadd.f32 %v2047_v34, %v1929_v1  ;;  %v2084_v5 = vadd.f32 %v2049_v10, %v1930_v7  ;;  %v2288_v63 = vmul.f32 %v4493_v19, %v4649_v59  ;;  %v1430_v22 = vld.sshfl [vmem:[#allocation1 + $0x20] sm:$0xff pattern:$0x73625140] }
 0x193   : > { %v2201_v41 = vsel %vm1794_vm15, %v2199_v61, %v2200_v8  ;;  %v2203_v49 = vsel %vm1794_vm15, %v2200_v8, %v2202_v45  ;;  %v2359_v11 = vmul.f32 %v4507_v9, %v4656_v15  ;;  %v2360_v4 = vmul.f32 %v4507_v9, %v4649_v59 }
 0x194   : > { %2876 = vmatmul.bf16.vlgmr.msrb.gmra.mxu3 %v2784_v2  ;;  %v2237_v50 = vadd.f32 %v2201_v41, %v2083_v30  ;;  %v2238_v47 = vadd.f32 %v2203_v49, %v2084_v5  ;;  %v2361_v55 = vmul.f32 %v4507_v9, %v4668_v53  ;;  %v2513_v29 = vmul.f32 %v4522_v43, %v4656_v15 }
 0x195   : > { %v2419_v39 = vrot.slane %v2359_v11, 1  ;;  %v2420_v60 = vrot.slane %v2360_v4, 1  ;;  %v2514_v20 = vmul.f32 %v4522_v43, %v4649_v59  ;;  %v2515_v42 = vmul.f32 %v4522_v43, %v4668_v53 }
 0x196   : > { %v2303_v58 = vadd.f32 %v2287_v21, %v2237_v50  ;;  %v2304_v57 = vadd.f32 %v2288_v63, %v2238_v47  ;;  %v2422_v31 = vrot.slane %v2361_v55, 1  ;;  %v2573_v38 = vrot.slane %v2513_v29, 2 }
 0x197   : > { %v2421_v48 = vsel %vm1639_vm14, %v2419_v39, %v2420_v60  ;;  %v2574_v18 = vrot.slane %v2514_v20, 2  ;;  %v2576_v46 = vrot.slane %v2515_v42, 2  ;;  %v1143_v24 = vadd.s32 9, %v3691_v32  ;;  %v2852_v29 = vpop.f32.mrf.mxu1 }
 0x198   : > { %v2423_v16 = vsel %vm1639_vm14, %v2420_v60, %v2422_v31  ;;  %v2457_v62 = vadd.f32 %v2421_v48, %v2303_v58  ;;  %v1539_v13 = vmul.f32 %v4388_v54, %v4551_v14  ;;  %v1540_v12 = vmul.f32 %v4388_v54, %v4544_v28 }
 0x199   : > { %v2458_v56 = vadd.f32 %v2423_v16, %v2304_v57  ;;  %v2575_v1 = vsel %vm1794_vm15, %v2573_v38, %v2574_v18  ;;  %v2577_v7 = vsel %vm1794_vm15, %v2574_v18, %v2576_v46  ;;  %vm1157_vm1 = vcmp.ge.s32.totalorder %v1143_v24, 1 }
 0x19a   : > { %v2611_v3 = vadd.f32 %v2575_v1, %v2457_v62  ;;  %vm1167_vm2 = vcmp.le.s32.totalorder %v1143_v24, 16  ;;  %v1612_v32 = vmul.f32 %v4397_v40, %v4551_v14  ;;  %v1613_v36 = vmul.f32 %v4397_v40, %v4544_v28 }
 0x19b   : > { %v2612_v27 = vadd.f32 %v2577_v7, %v2458_v56  ;;  %vm1177_vm3 = vmand %vm1157_vm1, %vm1167_vm2  ;;  %v1614_v54 = vmul.f32 %v4397_v40, %v4565_v17  ;;  %v1767_v23 = vmul.f32 %v4422_v52, %v4551_v14  ;;  %v1768_v61 = vmul.f32 %v4422_v52, %v4544_v28 }
 0x19c   : > { %v2662_v21 = vmul.f32 %v4560_v0, %v2611_v3  ;;  %vm1208_vm4 = vmand %vm1177_vm3, %vm1178_vm7  ;;  %v4740_v34 = vsel %vm1177_vm3, %v1429_v26, 0.0  ;;  %v1675_v10 = vrot.slane %v1612_v32, 1  ;;  %v1676_v8 = vrot.slane %v1613_v36, 1 }
 0x19d   : > { %v2663_v45 = vmul.f32 %v4560_v0, %v2612_v27  ;;  %vm1243_vm5 = vmand %vm1177_vm3, %vm1213_vm13  ;;  %v1488_v40 = vsel %vm1208_vm4, %v4664_v6, 0.0  ;;  %v1678_v14 = vrot.slane %v1614_v54, 1  ;;  %v1769_v28 = vmul.f32 %v4422_v52, %v4565_v17 }
 0x19e   : > { %v2679_v2 = vadd.f32 %v4574_v33, %v2662_v21  ;;  %v4749_v30 = vsel %vm1243_vm5, %v1430_v22, 0.0  ;;  %v1677_v37 = vsel %vm1639_vm14, %v1675_v10, %v1676_v8  ;;  %v1830_v5 = vrot.slane %v1767_v23, 2 }
 0x19f   : > { %v2680_v63 = vadd.f32 %v4574_v33, %v2663_v45  ;;  %v1679_v41 = vsel %vm1639_vm14, %v1676_v8, %v1678_v14  ;;  %v1710_v49 = vadd.f32 %v1677_v37, %v1539_v13  ;;  %v1831_v51 = vrot.slane %v1768_v61, 2  ;;  %v2854_v61 = vpop.f32.mrf.mxu1  ;;  %v4796_v37 = vld [vmem:[%s4926_s4 + $0x5] ss:$0 sm:$0xff] }
 0x1a0   : > { %v2695_v11 = vmax.f32 %v2679_v2, 0.0  ;;  %v1711_v4 = vadd.f32 %v1679_v41, %v1540_v12  ;;  %v1833_v6 = vrot.slane %v1769_v28, 2  ;;  %v1915_v50 = vmul.f32 %v4454_v35, %v4656_v15 }
 0x1a1   : > { %v2696_v52 = vmax.f32 %v2680_v63, 0.0  ;;  %v1832_v17 = vsel %vm1794_vm15, %v1830_v5, %v1831_v51  ;;  %v1916_v47 = vmul.f32 %v4454_v35, %v4649_v59  ;;  %v1988_v55 = vmul.f32 %v4320_v25, %v4656_v15 }
 0x1a2   : > { %v2711_v39 = vmin.f32 %v2695_v11, 6.0  ;;  %v1834_v60 = vsel %vm1794_vm15, %v1831_v51, %v1833_v6  ;;  %v1865_v20 = vadd.f32 %v1832_v17, %v1710_v49  ;;  %v1989_v42 = vmul.f32 %v4320_v25, %v4649_v59 }
 0x1a3   : > { %v2712_v58 = vmin.f32 %v2696_v52, 6.0  ;;  %v1866_v57 = vadd.f32 %v1834_v60, %v1711_v4  ;;  %v1990_v31 = vmul.f32 %v4320_v25, %v4668_v53  ;;  %v2050_v38 = vrot.slane %v1988_v55, 1 }
 0x1a4   : > { %v2727_v48 = vpack.c.bf16 %v2711_v39, %v2711_v39  ;;  %v1931_v18 = vadd.f32 %v1915_v50, %v1865_v20  ;;  %v2051_v35 = vrot.slane %v1989_v42, 1  ;;  %v2142_v46 = vmul.f32 %v4333_v44, %v4656_v15  ;;  %v3155_v50 = vld [vmem:[%s3535_s12 + $0x19] sm:$0xff] }
 0x1a5   : > { %v2728_v24 = vpack.c.bf16 %v2712_v58, %v2712_v58  ;;  %v1932_v16 = vadd.f32 %v1916_v47, %v1866_v57  ;;  %v2053_v62 = vrot.slane %v1990_v31, 1  ;;  %v2143_v13 = vmul.f32 %v4333_v44, %v4649_v59  ;;  %v3156_v47 = vld [vmem:[%s3535_s12 + $0x21] sm:$0xff] }
 0x1a6   : > { %v2775_v12 = vunpack.c.l.b16 %v2727_v48  ;;  %v2052_v56 = vsel %vm1639_vm14, %v2050_v38, %v2051_v35  ;;  %v2144_v1 = vmul.f32 %v4333_v44, %v4668_v53  ;;  %v2204_v25 = vrot.slane %v2142_v46, 2  ;;  %v4784_v53 = vld [vmem:[%s4926_s4 + $0x4] ss:$0 sm:$0xff]  ;;  %v3157_v48 = vld [vmem:[%s3535_s12 + $0x31] sm:$0xff] }
 0x1a7   : > { %v2776_v7 = vunpack.c.l.b16 %v2728_v24  ;;  %v2054_v26 = vsel %vm1639_vm14, %v2051_v35, %v2053_v62  ;;  %v2085_v3 = vadd.f32 %v2052_v56, %v1931_v18  ;;  %v2205_v32 = vrot.slane %v2143_v13, 2  ;;  %v2857_v42 = vpop.f32.mrf.mxu1 }
 0x1a8   : > { %v2086_v15 = vadd.f32 %v2054_v26, %v1932_v16  ;;  %v2207_v36 = vrot.slane %v2144_v1, 2  ;;  %v2289_v27 = vmul.f32 %v4493_v19, %v1488_v40  ;;  %v2290_v59 = vmul.f32 %v4493_v19, %v4740_v34 }
 0x1a9   : > { %v2785_v22 = vpack.c.b16 %v2776_v7, %v2775_v12  ;;  %v2206_v54 = vsel %vm1794_vm15, %v2204_v25, %v2205_v32  ;;  %v2362_v23 = vmul.f32 %v4507_v9, %v1488_v40  ;;  %v2363_v44 = vmul.f32 %v4507_v9, %v4740_v34  ;;  %v3158_v7 = vld [vmem:[%s3535_s12 + $0x39] sm:$0xff] }
 0x1aa   : > { %v2208_v21 = vsel %vm1794_vm15, %v2205_v32, %v2207_v36  ;;  %v2239_v10 = vadd.f32 %v2206_v54, %v2085_v3  ;;  %v2364_v19 = vmul.f32 %v4507_v9, %v4749_v30  ;;  %v2516_v8 = vmul.f32 %v4522_v43, %v1488_v40 }
 0x1ab   : > { %2881 = vmatmul.bf16.gmra.mxu3 %v2785_v22  ;;  %v2240_v45 = vadd.f32 %v2208_v21, %v2086_v15  ;;  %v2424_v14 = vrot.slane %v2362_v23, 1  ;;  %v2425_v28 = vrot.slane %v2363_v44, 1  ;;  %v2517_v2 = vmul.f32 %v4522_v43, %v4740_v34 }
 0x1ac   : > { %v2305_v5 = vadd.f32 %v2289_v27, %v2239_v10  ;;  %v2427_v63 = vrot.slane %v2364_v19, 1  ;;  %v2518_v9 = vmul.f32 %v4522_v43, %v4749_v30  ;;  %v2578_v40 = vrot.slane %v2516_v8, 2 }
 0x1ad   : > { %v2306_v41 = vadd.f32 %v2290_v59, %v2240_v45  ;;  %v2426_v49 = vsel %vm1639_vm14, %v2424_v14, %v2425_v28  ;;  %v2579_v51 = vrot.slane %v2517_v2, 2  ;;  %v2894_v34 = vmul.f32 %v4784_v53, %v2852_v29  ;;  %v3159_v59 = vld [vmem:[%s3535_s12 + $0x49] sm:$0xff]  ;;  %v3161_v45 = vld [vmem:[%s3535_s12 + $0x61] sm:$0xff] }
 0x1ae   : > { %v2428_v11 = vsel %vm1639_vm14, %v2425_v28, %v2427_v63  ;;  %v2459_v4 = vadd.f32 %v2426_v49, %v2305_v5  ;;  %v2581_v6 = vrot.slane %v2518_v9, 2  ;;  %v2895_v52 = vmul.f32 %v4784_v53, %v2854_v61  ;;  %v3160_v61 = vld [vmem:[%s3535_s12 + $0x51] sm:$0xff]  ;;  %v3162_v63 = vld [vmem:[%s3535_s12 + $0x69] sm:$0xff] }
 0x1af   : > { %v2460_v17 = vadd.f32 %v2428_v11, %v2306_v41  ;;  %v2580_v43 = vsel %vm1794_vm15, %v2578_v40, %v2579_v51  ;;  %v2912_v30 = vadd.f32 %v4796_v37, %v2894_v34  ;;  %v2896_v31 = vmul.f32 %v4784_v53, %v2857_v42  ;;  %v2859_v12 = vpop.f32.mrf.mxu1 }
 0x1b0   : > { %v2582_v55 = vsel %vm1794_vm15, %v2579_v51, %v2581_v6  ;;  %v2613_v39 = vadd.f32 %v2580_v43, %v2459_v4  ;;  %v2913_v60 = vadd.f32 %v4796_v37, %v2895_v52  ;;  %v2897_v1 = vmul.f32 %v4784_v53, %v2859_v12  ;;  %v3163_v51 = vld [vmem:[%s3535_s12 + $0x79] sm:$0xff]  ;;  %v3169_v12 = vld [vmem:[%s3535_s12 + $0xc1] sm:$0xff] }
 0x1b1   : > { %v2614_v29 = vadd.f32 %v2582_v55, %v2460_v17  ;;  %v2947_v20 = vadd.f32 %v3155_v50, %v2912_v30  ;;  %v2914_v35 = vadd.f32 %v4796_v37, %v2896_v31  ;;  %v3164_v50 = vld [vmem:[%s3535_s12 + $0x81] sm:$0xff] }
 0x1b2   : > { %v2664_v58 = vmul.f32 %v4560_v0, %v2613_v39  ;;  %v2948_v57 = vadd.f32 %v3156_v47, %v2913_v60  ;;  %v2915_v3 = vadd.f32 %v4796_v37, %v2897_v1  ;;  %v3165_v47 = vld [vmem:[%s3535_s12 + $0x91] sm:$0xff] }
 0x1b3   : > { %v2665_v38 = vmul.f32 %v4560_v0, %v2614_v29  ;;  %2963 = vst [vmem:[%s4815_s8] sm:$0xff] %v2947_v20  ;;  %v2949_v16 = vadd.f32 %v3157_v48, %v2914_v35  ;;  %v3166_v20 = vld [vmem:[%s3535_s12 + $0x99] sm:$0xff] }
 0x1b4   : > { %v2681_v18 = vadd.f32 %v4574_v33, %v2664_v58  ;;  %2964 = vst [vmem:[%s4815_s8 + $0x8] sm:$0xff] %v2948_v57  ;;  %v2950_v32 = vadd.f32 %v3158_v7, %v2915_v3 }
 0x1b5   : > { %v2682_v46 = vadd.f32 %v4574_v33, %v2665_v38  ;;  %2965 = vst [vmem:[%s4815_s8 + $0x10] sm:$0xff] %v2949_v16  ;;  %v3167_v38 = vld [vmem:[%s3535_s12 + $0xa9] sm:$0xff] }
 0x1b6   : > { %v2697_v24 = vmax.f32 %v2681_v18, 0.0  ;;  %2966 = vst [vmem:[%s4815_s8 + $0x18] sm:$0xff] %v2950_v32 }
 0x1b7   : > { %v2698_v62 = vmax.f32 %v2682_v46, 0.0 }
 0x1b8   : > { %v2713_v0 = vmin.f32 %v2697_v24, 6.0  ;;  %v3168_v24 = vld [vmem:[%s3535_s12 + $0xb1] sm:$0xff] }
 0x1b9   : > { %v2714_v13 = vmin.f32 %v2698_v62, 6.0 }
 0x1ba   : > { %v2729_v56 = vpack.c.bf16 %v2713_v0, %v2713_v0 }
 0x1bb   : > { %v2730_v25 = vpack.c.bf16 %v2714_v13, %v2714_v13 }
 0x1bc   : > { %v2777_v26 = vunpack.c.l.b16 %v2729_v56 }
 0x1bd   : > { %v2778_v33 = vunpack.c.l.b16 %v2730_v25 }
 0x1bf   : > { %v2786_v15 = vpack.c.b16 %v2778_v33, %v2777_v26  ;;  %v3170_v26 = vld [vmem:[%s3535_s12 + $0xc9] sm:$0xff]  ;;  %s3341_s12 = scalar_lea.hbm %s4927_s5, 512 }
 0x1c0   : > { %p3343_p4 = scmp.lt.s32.totalorder %s3341_s12, %s3337_s9 }
 0x1c1   : > { %2886 = vmatmul.bf16.gmra.mxu3 %v2786_v15 }
 0x1c2   : > { %p3344_p5 = por %p3343_p4, %p3342_p2 }
 0x1c3   : > { %v2862_v36 = vpop.f32.mrf.mxu1 }
 0x1c4   : > { %v2898_v27 = vmul.f32 %v4784_v53, %v2862_v36  ;;  %p3345_p6 = pnand %p3344_p5, %p3340_p1 }
 0x1c6   : > { %v2916_v22 = vadd.f32 %v4796_v37, %v2898_v27 }
 0x1c8   : > { %v2951_v54 = vadd.f32 %v3159_v59, %v2916_v22 }
 0x1ca   : > { %2967 = vst [vmem:[%s4815_s8 + $0x20] sm:$0xff] %v2951_v54 }
 0x1cb   : > { %v2864_v23 = vpop.f32.mrf.mxu1 }
 0x1cc   : > { %v2899_v44 = vmul.f32 %v4784_v53, %v2864_v23 }
 0x1ce   : > { %v2917_v21 = vadd.f32 %v4796_v37, %v2899_v44 }
 0x1d0   : > { %v2952_v10 = vadd.f32 %v3160_v61, %v2917_v21 }
 0x1d2   : > { %2968 = vst [vmem:[%s4815_s8 + $0x28] sm:$0xff] %v2952_v10 }
 0x1e0   : > { %v2867_v19 = vpop.f32.mrf.mxu1 }
 0x1e1   : > { %v2900_v8 = vmul.f32 %v4784_v53, %v2867_v19 }
 0x1e3   : > { %v2918_v14 = vadd.f32 %v4796_v37, %v2900_v8 }
 0x1e5   : > { %v2953_v28 = vadd.f32 %v3161_v45, %v2918_v14 }
 0x1e7   : > { %2969 = vst [vmem:[%s4815_s8 + $0x30] sm:$0xff] %v2953_v28 }
 0x1e8   : > { %v2869_v2 = vpop.f32.mrf.mxu1 }
 0x1e9   : > { %v2901_v5 = vmul.f32 %v4784_v53, %v2869_v2 }
 0x1eb   : > { %v2919_v9 = vadd.f32 %v4796_v37, %v2901_v5 }
 0x1ed   : > { %v2954_v40 = vadd.f32 %v3162_v63, %v2919_v9 }
 0x1ef   : > { %2970 = vst [vmem:[%s4815_s8 + $0x38] sm:$0xff] %v2954_v40 }
 0x1fb   : > { %v2872_v41 = vpop.f32.mrf.mxu1 }
 0x1fc   : > { %v2902_v49 = vmul.f32 %v4784_v53, %v2872_v41 }
 0x1fe   : > { %v2920_v34 = vadd.f32 %v4796_v37, %v2902_v49 }
 0x200   : > { %v2955_v11 = vadd.f32 %v3163_v51, %v2920_v34 }
 0x202   : > { %2971 = vst [vmem:[%s4815_s8 + $0x40] sm:$0xff] %v2955_v11 }
 0x203   : > { %v2874_v4 = vpop.f32.mrf.mxu1 }
 0x204   : > { %v2903_v6 = vmul.f32 %v4784_v53, %v2874_v4 }
 0x206   : > { %v2921_v52 = vadd.f32 %v4796_v37, %v2903_v6 }
 0x208   : > { %v2956_v17 = vadd.f32 %v3164_v50, %v2921_v52 }
 0x20a   : > { %2972 = vst [vmem:[%s4815_s8 + $0x48] sm:$0xff] %v2956_v17 }
 0x217   : > { %v2877_v43 = vpop.f32.mrf.mxu3 }
 0x218   : > { %v2904_v30 = vmul.f32 %v4784_v53, %v2877_v43 }
 0x21a   : > { %v2922_v55 = vadd.f32 %v4796_v37, %v2904_v30 }
 0x21c   : > { %v2957_v39 = vadd.f32 %v3165_v47, %v2922_v55 }
 0x21e   : > { %2973 = vst [vmem:[%s4815_s8 + $0x50] sm:$0xff] %v2957_v39 }
 0x21f   : > { %v2879_v60 = vpop.f32.mrf.mxu3 }
 0x220   : > { %v2905_v29 = vmul.f32 %v4784_v53, %v2879_v60 }
 0x222   : > { %v2923_v42 = vadd.f32 %v4796_v37, %v2905_v29 }
 0x224   : > { %v2958_v58 = vadd.f32 %v3166_v20, %v2923_v42 }
 0x226   : > { %2974 = vst [vmem:[%s4815_s8 + $0x58] sm:$0xff] %v2958_v58 }
 0x22e   : > { %v2882_v57 = vpop.f32.mrf.mxu3 }
 0x22f   : > { %v2906_v31 = vmul.f32 %v4784_v53, %v2882_v57 }
 0x231   : > { %v2924_v48 = vadd.f32 %v4796_v37, %v2906_v31 }
 0x233   : > { %v2959_v18 = vadd.f32 %v3167_v38, %v2924_v48 }
 0x235   : > { %2975 = vst [vmem:[%s4815_s8 + $0x60] sm:$0xff] %v2959_v18 }
 0x236   : > { %v2884_v35 = vpop.f32.mrf.mxu3 }
 0x237   : > { %v2907_v46 = vmul.f32 %v4784_v53, %v2884_v35 }
 0x239   : > { %v2925_v16 = vadd.f32 %v4796_v37, %v2907_v46 }
 0x23b   : > { %v2960_v62 = vadd.f32 %v3168_v24, %v2925_v16 }
 0x23d   : > { %2976 = vst [vmem:[%s4815_s8 + $0x68] sm:$0xff] %v2960_v62 }
 0x244   : > { %v2887_v0 = vpop.f32.mrf.mxu3 }
 0x245   : > { %v2908_v13 = vmul.f32 %v4784_v53, %v2887_v0 }
 0x247   : > { %v2926_v56 = vadd.f32 %v4796_v37, %v2908_v13 }
 0x249   : > { %v2961_v1 = vadd.f32 %v3169_v12, %v2926_v56 }
 0x24b   : > { %2977 = vst [vmem:[%s4815_s8 + $0x70] sm:$0xff] %v2961_v1 }
 0x24c   : > { %v2889_v25 = vpop.f32.mrf.mxu3 }
 0x24d   : > { %v2909_v7 = vmul.f32 %v4784_v53, %v2889_v25 }
 0x24f   : > { %v2927_v3 = vadd.f32 %v4796_v37, %v2909_v7 }
 0x251   : > { %v2962_v33 = vadd.f32 %v3170_v26, %v2927_v3 }
 0x253   : > { %2978 = vst [vmem:[%s4815_s8 + $0x78] sm:$0xff] %v2962_v33 }
 0x254   : > { %3348 = shalt.err (!%p3345_p6)
}
 0x255   : > { %s3417_s17 = smov 128   ;;  %s3418_s8 = smov 8  }
 0x256   : > { %3220 = dma.vmem_to_hbm [thread:$0]  (%p3500_p3), %s2996_s21, 2048, %s2998_s22, %s2980_s27, %s3417_s17, %s3417_s17, %s3418_s8  }
 0x257 PF: > { %p3226_p7 = scmp.ge.s32.totalorder %s3415_s25, 2  ;;  %s3012_s16 = sand.u32 1, %s3387_s18  }
 0x258   : > { %s3013_s26 = scalar_lea.sflag [#allocation4], %s3012_s16 }
 0x259   : > { %p3223_p9 = pnand %p3226_p7, %p3509_p8 }
 0x25b   : > { %p3224_p10 = pneg %p3223_p9 }
 0x25d   : > { %3382 = dma.done.wait (%p3224_p10), %s3013_s26, 2048  }
 0x25e   : > { %3384 = vsyncadd (%p3224_p10), %s3013_s26, 4294965248  ;;  %s18_s25 = sadd.s32 1, %s3415_s25   ;;  %s4954_s18 = smov %s3391_s19 }
 0x25f   : > { %p15_p11 = scmp.ge.s32.totalorder %s18_s25, 6   ;;  %s4955_s19 = smov %s3395_s20 }
 0x260   : > { %s4956_s20 = smov %s3518_s11  ;;  %s4957_s21 = smov %s3407_s23 }
 0x261   : > { %s4958_s22 = smov %s3411_s24  ;;  %s4959_s23 = smov %s4962_s28 }
 0x262   : > { %s4960_s24 = smov %s4966_s29  ;;  %17 = sbr.rel (!%p15_p11) target bundleno = 5 (0x5), region = 91 }
 0x267   :  { %3019 = vsyncpa [#allocation4], 1 }
 0x268   :  { %3021 = vsyncpa [#allocation4 + $0x1], 1 }

</bundles_post_ra>
